<compile_context>
chip_gen: v5e
topology: v5e:2x2
jax: 0.10.0
libtpu: 0.0.40
codegen_flags: <defaults>
</compile_context>

<pallas_src>
import functools
import math

import jax
import jax.numpy as jnp
from jax.experimental import pallas as pl
from jax.experimental.pallas import tpu as pltpu

F32 = jnp.float32
LN_EPS = 1e-5
MASK_NEG = -1e30  # additive mask value; exp() of it underflows to exactly 0 in f32


# ---------------------------------------------------------------------------
# in-kernel math helpers
# ---------------------------------------------------------------------------
def _layer_norm(x, g, b):
    mu = jnp.mean(x, axis=-1, keepdims=True)
    xc = x - mu
    var = jnp.mean(xc * xc, axis=-1, keepdims=True)
    return xc * jax.lax.rsqrt(var + LN_EPS) * g + b


def _gelu(x):
    # tanh-approximate GELU (transcendental goes to the EUP slot).
    # NOTE: HF BART uses exact erf-GELU; deviation is ~1e-3 on activations.
    c = math.sqrt(2.0 / math.pi)
    return 0.5 * x * (1.0 + jnp.tanh(c * (x + 0.044715 * x * x * x)))


def _softmax_rows(s):
    s = s - jnp.max(s, axis=-1, keepdims=True)
    p = jnp.exp(s)
    return p * pl.reciprocal(jnp.sum(p, axis=-1, keepdims=True), approx=True)


def _attention(q, k, v, key_bias, heads, causal):
    # q: (Tq, D), k/v: (Tk, D).  Head split = static lane slices; the head loop
    # is unrolled at trace time (heads is a compile-time constant).
    # NOTE: a fully masked key row yields a uniform softmax (same as additive
    # finfo.min masking in the original kernel) — not hit with valid inputs.
    tq, d = q.shape
    tk = k.shape[0]
    dh = d // heads
    scale = dh ** -0.5
    dn = (((1,), (1,)), ((), ()))  # contract last dims: q @ k^T ("NT" matmul)

    causal_bias = None
    if causal:
        rows = jax.lax.broadcasted_iota(jnp.int32, (tq, tk), 0)
        cols = jax.lax.broadcasted_iota(jnp.int32, (tq, tk), 1)
        causal_bias = jnp.where(rows >= cols, 0.0, MASK_NEG).astype(F32)

    outs = []
    for h in range(heads):
        sl = slice(h * dh, (h + 1) * dh)
        s = jax.lax.dot_general(q[:, sl] * scale, k[:, sl], dn,
                                preferred_element_type=F32)      # (Tq, Tk)
        if key_bias is not None:
            s = s + key_bias                                     # (1, Tk) broadcast
        if causal_bias is not None:
            s = s + causal_bias
        p = _softmax_rows(s)
        outs.append(jnp.dot(p, v[:, sl], preferred_element_type=F32))   # (Tq, dh)
    return jnp.concatenate(outs, axis=-1)                        # (Tq, D)


# ---------------------------------------------------------------------------
# fused encoder stack kernel  (grid = (batch, enc_layer))
# ---------------------------------------------------------------------------
def _encoder_stack_kernel(x_ref, mask_ref, eg_ref, eb_ref,
                          qkv_w_ref, qkv_b_ref, ow_ref, ob_ref,
                          sag_ref, sab_ref,
                          f1w_ref, f1b_ref, f2w_ref, f2b_ref,
                          fng_ref, fnb_ref,
                          out_ref, *, heads):
    layer = pl.program_id(1)

    @pl.when(layer == 0)
    def _():
        # embedding layer-norm, once per batch block; out_ref (VMEM-resident
        # across the layer axis) carries the residual stream.
        out_ref[0] = _layer_norm(x_ref[0], eg_ref[...], eb_ref[...])

    h = out_ref[0]                                       # (S, D)
    d = h.shape[-1]
    key_bias = (1.0 - mask_ref[0]) * MASK_NEG            # (1, S): 0 valid / -1e30 pad

    # --- self-attention (fused QKV projection) ---
    qkv = jnp.dot(h, qkv_w_ref[...], preferred_element_type=F32) + qkv_b_ref[...]
    a = _attention(qkv[:, :d], qkv[:, d:2 * d], qkv[:, 2 * d:],
                   key_bias, heads, causal=False)
    a = jnp.dot(a, ow_ref[...], preferred_element_type=F32) + ob_ref[...]
    h = _layer_norm(h + a, sag_ref[...], sab_ref[...])

    # --- FFN ---
    ff = _gelu(jnp.dot(h, f1w_ref[...], preferred_element_type=F32) + f1b_ref[...])
    ff = jnp.dot(ff, f2w_ref[...], preferred_element_type=F32) + f2b_ref[...]
    out_ref[0] = _layer_norm(h + ff, fng_ref[...], fnb_ref[...])


# ---------------------------------------------------------------------------
# fused decoder stack kernel + pixel heads  (grid = (batch, dec_layer))
# ---------------------------------------------------------------------------
def _decoder_stack_kernel(init_ref, enc_ref, mask_ref,
                          sqkv_w_ref, sqkv_b_ref, sow_ref, sob_ref, sag_ref, sab_ref,
                          cqw_ref, cqb_ref, ckvw_ref, ckvb_ref, cow_ref, cob_ref,
                          cag_ref, cab_ref,
                          f1w_ref, f1b_ref, f2w_ref, f2b_ref, fng_ref, fnb_ref,
                          pw_ref, pb_ref,
                          out_ref, h_scr, *, heads):
    layer = pl.program_id(1)
    n_layers = pl.num_programs(1)

    @pl.when(layer == 0)
    def _():
        h_scr[...] = init_ref[...]          # LN(zeros + decoder positional emb)

    h = h_scr[...]                          # (P, D) residual stream (VMEM scratch)
    d = h.shape[-1]
    enc = enc_ref[0]                        # (S, D) encoder hidden states
    key_bias = (1.0 - mask_ref[0]) * MASK_NEG   # (1, S)

    # --- causal self-attention (fused QKV) ---
    qkv = jnp.dot(h, sqkv_w_ref[...], preferred_element_type=F32) + sqkv_b_ref[...]
    a = _attention(qkv[:, :d], qkv[:, d:2 * d], qkv[:, 2 * d:],
                   None, heads, causal=True)
    a = jnp.dot(a, sow_ref[...], preferred_element_type=F32) + sob_ref[...]
    h = _layer_norm(h + a, sag_ref[...], sab_ref[...])

    # --- cross-attention (Q from decoder stream, fused K/V from encoder) ---
    q = jnp.dot(h, cqw_ref[...], preferred_element_type=F32) + cqb_ref[...]
    kv = jnp.dot(enc, ckvw_ref[...], preferred_element_type=F32) + ckvb_ref[...]
    a = _attention(q, kv[:, :d], kv[:, d:], key_bias, heads, causal=False)
    a = jnp.dot(a, cow_ref[...], preferred_element_type=F32) + cob_ref[...]
    h = _layer_norm(h + a, cag_ref[...], cab_ref[...])

    # --- FFN ---
    ff = _gelu(jnp.dot(h, f1w_ref[...], preferred_element_type=F32) + f1b_ref[...])
    ff = jnp.dot(ff, f2w_ref[...], preferred_element_type=F32) + f2b_ref[...]
    h = _layer_norm(h + ff, fng_ref[...], fnb_ref[...])

    h_scr[...] = h

    @pl.when(layer == n_layers - 1)
    def _():
        # per-pixel heads + sigmoid fused into the last decoder step
        logits = jnp.sum(h * pw_ref[...], axis=-1, keepdims=True) + pb_ref[...]  # (P,1)
        out_ref[0] = 1.0 / (1.0 + jnp.exp(-logits))


# ---------------------------------------------------------------------------
# BlockSpec helpers
# ---------------------------------------------------------------------------
def _batch_spec(tail):      # (B, *tail) array, one batch block per grid step
    return pl.BlockSpec((1,) + tuple(tail), lambda b, l: (b,) + (0,) * len(tail))


def _shared_spec(shape):    # same block every grid step (stays resident in VMEM)
    return pl.BlockSpec(tuple(shape), lambda b, l: (0,) * len(shape))


def _stacked_spec(tail):    # (L, *tail) per-layer stacked params, layer-indexed
    return pl.BlockSpec((None,) + tuple(tail), lambda b, l: (l,) + (0,) * len(tail))


_SEMANTICS = pltpu.CompilerParams(dimension_semantics=("parallel", "arbitrary"))


# ---------------------------------------------------------------------------
# pallas_call wrappers
# ---------------------------------------------------------------------------
def encoder_forward(params, x_emb, mask_f, cfg):
    B, S, D = x_emb.shape
    F, Le = cfg["ffn"], cfg["enc_layers"]
    in_specs = [
        _batch_spec((S, D)),                                   # x_emb
        _batch_spec((1, S)),                                   # padding mask
        _shared_spec((1, D)), _shared_spec((1, D)),            # emb LN
        _stacked_spec((D, 3 * D)), _stacked_spec((1, 3 * D)),  # fused QKV
        _stacked_spec((D, D)), _stacked_spec((1, D)),          # out proj
        _stacked_spec((1, D)), _stacked_spec((1, D)),          # self-attn LN
        _stacked_spec((D, F)), _stacked_spec((1, F)),          # fc1
        _stacked_spec((F, D)), _stacked_spec((1, D)),          # fc2
        _stacked_spec((1, D)), _stacked_spec((1, D)),          # final LN
    ]
    return pl.pallas_call(
        functools.partial(_encoder_stack_kernel, heads=cfg["heads"]),
        out_shape=jax.ShapeDtypeStruct((B, S, D), F32),
        grid_spec=pltpu.PrefetchScalarGridSpec(
            num_scalar_prefetch=0, grid=(B, Le),
            in_specs=in_specs, out_specs=_batch_spec((S, D))),
        compiler_params=_SEMANTICS,
    )(x_emb, mask_f,
      params["enc_emb_ln_g"], params["enc_emb_ln_b"],
      params["enc_qkv_w"], params["enc_qkv_b"],
      params["enc_o_w"], params["enc_o_b"],
      params["enc_sa_ln_g"], params["enc_sa_ln_b"],
      params["enc_fc1_w"], params["enc_fc1_b"],
      params["enc_fc2_w"], params["enc_fc2_b"],
      params["enc_fin_ln_g"], params["enc_fin_ln_b"])


def decoder_forward(params, dec_init, enc_out, mask_f, cfg):
    B, S, D = enc_out.shape
    P, F, Ld = cfg["n_pixels"], cfg["ffn"], cfg["dec_layers"]
    # TODO(synk): at full BART size (d_model=1024, ffn=4816) the per-layer FFN
    # weights (~40 MB f32) should be K/N-tiled with a reduction grid axis
    # instead of whole-matrix blocks (required to fit v7x's 64 MiB VMEM).
    in_specs = [
        _shared_spec((P, D)),                                  # dec_init (LN(pos))
        _batch_spec((S, D)),                                   # encoder hidden
        _batch_spec((1, S)),                                   # padding mask
        _stacked_spec((D, 3 * D)), _stacked_spec((1, 3 * D)),  # self-attn fused QKV
        _stacked_spec((D, D)), _stacked_spec((1, D)),          # self-attn out proj
        _stacked_spec((1, D)), _stacked_spec((1, D)),          # self-attn LN
        _stacked_spec((D, D)), _stacked_spec((1, D)),          # cross-attn Q
        _stacked_spec((D, 2 * D)), _stacked_spec((1, 2 * D)),  # cross-attn fused KV
        _stacked_spec((D, D)), _stacked_spec((1, D)),          # cross-attn out proj
        _stacked_spec((1, D)), _stacked_spec((1, D)),          # cross-attn LN
        _stacked_spec((D, F)), _stacked_spec((1, F)),          # fc1
        _stacked_spec((F, D)), _stacked_spec((1, D)),          # fc2
        _stacked_spec((1, D)), _stacked_spec((1, D)),          # final LN
        _shared_spec((P, D)),                                  # pixel head weights
        _shared_spec((P, 1)),                                  # pixel head bias
    ]
    out = pl.pallas_call(
        functools.partial(_decoder_stack_kernel, heads=cfg["heads"]),
        out_shape=jax.ShapeDtypeStruct((B, P, 1), F32),
        grid_spec=pltpu.PrefetchScalarGridSpec(
            num_scalar_prefetch=0, grid=(B, Ld),
            in_specs=in_specs, out_specs=_batch_spec((P, 1)),
            scratch_shapes=[pltpu.VMEM((P, D), F32)]),
        compiler_params=_SEMANTICS,
    )(dec_init, enc_out, mask_f,
      params["dec_sa_qkv_w"], params["dec_sa_qkv_b"],
      params["dec_sa_o_w"], params["dec_sa_o_b"],
      params["dec_sa_ln_g"], params["dec_sa_ln_b"],
      params["dec_ca_q_w"], params["dec_ca_q_b"],
      params["dec_ca_kv_w"], params["dec_ca_kv_b"],
      params["dec_ca_o_w"], params["dec_ca_o_b"],
      params["dec_ca_ln_g"], params["dec_ca_ln_b"],
      params["dec_fc1_w"], params["dec_fc1_b"],
      params["dec_fc2_w"], params["dec_fc2_b"],
      params["dec_fin_ln_g"], params["dec_fin_ln_b"],
      params["pixel_w"], params["pixel_b"])
    return out.reshape(B, P)


# ---------------------------------------------------------------------------
# full model forward
# ---------------------------------------------------------------------------
def forward(params, tokens, attention_mask, cfg):
    B, S = tokens.shape
    D, P = cfg["d_model"], cfg["n_pixels"]

    # token + learned positional embeddings (offset 2); gather stays in XLA.
    emb = jnp.take(params["tok_emb"], tokens, axis=0)               # (B, S, D)
    x_emb = emb + params["enc_pos"][2:2 + S][None, :, :]
    mask_f = attention_mask.astype(F32).reshape(B, 1, S)

    enc_out = encoder_forward(params, x_emb, mask_f, cfg)

    # decoder input = LN(zeros + positional emb): batch-independent constant,
    # precomputed once instead of a (B, P, D) zeros tensor + per-batch LN.
    dp = params["dec_pos"][2:2 + P]
    mu = jnp.mean(dp, axis=-1, keepdims=True)
    var = jnp.mean(jnp.square(dp - mu), axis=-1, keepdims=True)
    dec_init = (dp - mu) * jax.lax.rsqrt(var + LN_EPS) * params["dec_emb_ln_g"] \
               + params["dec_emb_ln_b"]

    return decoder_forward(params, dec_init, enc_out, mask_f, cfg)


# ---------------------------------------------------------------------------
# deterministic parameter init (BART-style: N(0, 0.02), zero biases, unit LN)
# ---------------------------------------------------------------------------
def init_params(key, cfg):
    D, F, P = cfg["d_model"], cfg["ffn"], cfg["n_pixels"]
    Le, Ld = cfg["enc_layers"], cfg["dec_layers"]
    keys = iter(jax.random.split(key, 32))

    def w(shape):
        return (0.02 * jax.random.normal(next(keys), shape)).astype(F32)

    ones = lambda s: jnp.ones(s, F32)
    zeros = lambda s: jnp.zeros(s, F32)

    p = {}
    tok = w((cfg["vocab"] + 1, D))
    p["tok_emb"] = tok.at[cfg["vocab"]].set(0.0)        # padding_idx row zeroed
    p["enc_pos"] = w((cfg["max_pos"] + 2, D))           # learned pos emb, offset 2
    p["dec_pos"] = w((cfg["max_pos"] + 2, D))
    p["enc_emb_ln_g"], p["enc_emb_ln_b"] = ones((1, D)), zeros((1, D))
    p["dec_emb_ln_g"], p["dec_emb_ln_b"] = ones((1, D)), zeros((1, D))

    # encoder layers (stacked on a leading layer axis)
    p["enc_qkv_w"], p["enc_qkv_b"] = w((Le, D, 3 * D)), zeros((Le, 1, 3 * D))
    p["enc_o_w"], p["enc_o_b"] = w((Le, D, D)), zeros((Le, 1, D))
    p["enc_sa_ln_g"], p["enc_sa_ln_b"] = ones((Le, 1, D)), zeros((Le, 1, D))
    p["enc_fc1_w"], p["enc_fc1_b"] = w((Le, D, F)), zeros((Le, 1, F))
    p["enc_fc2_w"], p["enc_fc2_b"] = w((Le, F, D)), zeros((Le, 1, D))
    p["enc_fin_ln_g"], p["enc_fin_ln_b"] = ones((Le, 1, D)), zeros((Le, 1, D))

    # decoder layers
    p["dec_sa_qkv_w"], p["dec_sa_qkv_b"] = w((Ld, D, 3 * D)), zeros((Ld, 1, 3 * D))
    p["dec_sa_o_w"], p["dec_sa_o_b"] = w((Ld, D, D)), zeros((Ld, 1, D))
    p["dec_sa_ln_g"], p["dec_sa_ln_b"] = ones((Ld, 1, D)), zeros((Ld, 1, D))
    p["dec_ca_q_w"], p["dec_ca_q_b"] = w((Ld, D, D)), zeros((Ld, 1, D))
    p["dec_ca_kv_w"], p["dec_ca_kv_b"] = w((Ld, D, 2 * D)), zeros((Ld, 1, 2 * D))
    p["dec_ca_o_w"], p["dec_ca_o_b"] = w((Ld, D, D)), zeros((Ld, 1, D))
    p["dec_ca_ln_g"], p["dec_ca_ln_b"] = ones((Ld, 1, D)), zeros((Ld, 1, D))
    p["dec_fc1_w"], p["dec_fc1_b"] = w((Ld, D, F)), zeros((Ld, 1, F))
    p["dec_fc2_w"], p["dec_fc2_b"] = w((Ld, F, D)), zeros((Ld, 1, D))
    p["dec_fin_ln_g"], p["dec_fin_ln_b"] = ones((Ld, 1, D)), zeros((Ld, 1, D))

    p["pixel_w"], p["pixel_b"] = w((P, D)), zeros((P, 1))
    return p


# ---------------------------------------------------------------------------
if __name__ == "__main__":
    # Small config consistent with the module's forward (scaled-down BART):
    # d_model=128 (lane-dense), ffn=256, 4 heads, 2 encoder + 2 decoder layers,
    # seq=8 tokens, 16 "pixels", vocab=16 (pad token id = 16).
    cfg = dict(vocab=16, d_model=128, ffn=256, heads=4,
               enc_layers=2, dec_layers=2, n_pixels=16, seq_len=8, max_pos=16)

    params = init_params(jax.random.PRNGKey(0), cfg)

    B, S = 2, cfg["seq_len"]
    tokens = jax.random.randint(jax.random.PRNGKey(0), (B, S), 0, cfg["vocab"],
                                dtype=jnp.int32)
    attention_mask = jnp.ones((B, S), jnp.int32).at[1, -2:].set(0)
    tokens = tokens.at[1, -2:].set(cfg["vocab"])        # padded positions -> pad token

    fwd = jax.jit(functools.partial(forward, cfg=cfg))
    out = fwd(params, tokens, attention_mask)
    jax.block_until_ready(out)

    assert out.shape == (B, cfg["n_pixels"]) and out.dtype == jnp.float32
    assert bool(jnp.all(jnp.isfinite(out)))
    assert bool(jnp.all((out >= 0.0) & (out <= 1.0)))
    print("KERNEL_OK")
</pallas_src>

<mosaic_0001>
module attributes {stable_mosaic.version = 11 : i64} {
  func.func @_encoder_stack_kernel(%arg0: i32, %arg1: i32, %arg2: memref<1x8x128xf32, #tpu.memory_space<vmem>>, %arg3: memref<1x1x8xf32, #tpu.memory_space<vmem>>, %arg4: memref<1x128xf32, #tpu.memory_space<vmem>>, %arg5: memref<1x128xf32, #tpu.memory_space<vmem>>, %arg6: memref<1x128x384xf32, #tpu.memory_space<vmem>>, %arg7: memref<1x1x384xf32, #tpu.memory_space<vmem>>, %arg8: memref<1x128x128xf32, #tpu.memory_space<vmem>>, %arg9: memref<1x1x128xf32, #tpu.memory_space<vmem>>, %arg10: memref<1x1x128xf32, #tpu.memory_space<vmem>>, %arg11: memref<1x1x128xf32, #tpu.memory_space<vmem>>, %arg12: memref<1x128x256xf32, #tpu.memory_space<vmem>>, %arg13: memref<1x1x256xf32, #tpu.memory_space<vmem>>, %arg14: memref<1x256x128xf32, #tpu.memory_space<vmem>>, %arg15: memref<1x1x128xf32, #tpu.memory_space<vmem>>, %arg16: memref<1x1x128xf32, #tpu.memory_space<vmem>>, %arg17: memref<1x1x128xf32, #tpu.memory_space<vmem>>, %arg18: memref<1x8x128xf32, #tpu.memory_space<vmem>>) attributes {dimension_semantics = [#tpu.dimension_semantics<parallel>, #tpu.dimension_semantics<arbitrary>], iteration_bounds = array<i64: 2, 2>, scalar_prefetch = 0 : i64, scratch_operands = 0 : i64, tpu.core_type = #tpu.core_type<tc>, window_params = [{transform_indices = @transform_0, window_bounds = array<i64: 1, 8, 128>}, {transform_indices = @transform_1, window_bounds = array<i64: 1, 1, 8>}, {pipeline_mode = #tpu.pipeline_mode<synchronous>, transform_indices = @transform_2, window_bounds = array<i64: 1, 128>}, {pipeline_mode = #tpu.pipeline_mode<synchronous>, transform_indices = @transform_3, window_bounds = array<i64: 1, 128>}, {transform_indices = @transform_4, window_bounds = array<i64: 1, 128, 384>}, {transform_indices = @transform_5, window_bounds = array<i64: 1, 1, 384>}, {transform_indices = @transform_6, window_bounds = array<i64: 1, 128, 128>}, {transform_indices = @transform_7, window_bounds = array<i64: 1, 1, 128>}, {transform_indices = @transform_8, window_bounds = array<i64: 1, 1, 128>}, {transform_indices = @transform_9, window_bounds = array<i64: 1, 1, 128>}, {transform_indices = @transform_10, window_bounds = array<i64: 1, 128, 256>}, {transform_indices = @transform_11, window_bounds = array<i64: 1, 1, 256>}, {transform_indices = @transform_12, window_bounds = array<i64: 1, 256, 128>}, {transform_indices = @transform_13, window_bounds = array<i64: 1, 1, 128>}, {transform_indices = @transform_14, window_bounds = array<i64: 1, 1, 128>}, {transform_indices = @transform_15, window_bounds = array<i64: 1, 1, 128>}, {transform_indices = @transform_16, window_bounds = array<i64: 1, 8, 128>}]} {
    %c0_i32 = arith.constant 0 : i32
    %0 = arith.cmpi eq, %arg1, %c0_i32 : i32
    %1 = arith.extui %0 : i1 to i32
    %c0_i32_0 = arith.constant 0 : i32
    %2 = arith.cmpi ne, %1, %c0_i32_0 : i32
    scf.if %2 {
      %c0_84 = arith.constant 0 : index
      %c0_85 = arith.constant 0 : index
      %c0_86 = arith.constant 0 : index
      %185 = vector.load %arg2[%c0_84, %c0_85, %c0_86] : memref<1x8x128xf32, #tpu.memory_space<vmem>>, vector<1x8x128xf32>
      %186 = vector.shape_cast %185 : vector<1x8x128xf32> to vector<8x128xf32>
      %c0_87 = arith.constant 0 : index
      %c0_88 = arith.constant 0 : index
      %187 = vector.load %arg4[%c0_87, %c0_88] : memref<1x128xf32, #tpu.memory_space<vmem>>, vector<1x128xf32>
      %c0_89 = arith.constant 0 : index
      %c0_90 = arith.constant 0 : index
      %188 = vector.load %arg5[%c0_89, %c0_90] : memref<1x128xf32, #tpu.memory_space<vmem>>, vector<1x128xf32>
      %cst_91 = arith.constant dense<0.000000e+00> : vector<8xf32>
      %189 = vector.multi_reduction <add>, %186, %cst_91 [1] : vector<8x128xf32> to vector<8xf32>
      %190 = vector.shape_cast %189 : vector<8xf32> to vector<8x1xf32>
      %cst_92 = arith.constant 1.280000e+02 : f32
      %191 = vector.broadcast %cst_92 : f32 to vector<8x1xf32>
      %192 = arith.divf %190, %191 : vector<8x1xf32>
      %193 = vector.broadcast %192 : vector<8x1xf32> to vector<8x128xf32>
      %194 = arith.subf %186, %193 : vector<8x128xf32>
      %195 = arith.mulf %194, %194 : vector<8x128xf32>
      %cst_93 = arith.constant dense<0.000000e+00> : vector<8xf32>
      %196 = vector.multi_reduction <add>, %195, %cst_93 [1] : vector<8x128xf32> to vector<8xf32>
      %197 = vector.shape_cast %196 : vector<8xf32> to vector<8x1xf32>
      %cst_94 = arith.constant 1.280000e+02 : f32
      %198 = vector.broadcast %cst_94 : f32 to vector<8x1xf32>
      %199 = arith.divf %197, %198 : vector<8x1xf32>
      %cst_95 = arith.constant 9.99999974E-6 : f32
      %200 = vector.broadcast %cst_95 : f32 to vector<8x1xf32>
      %201 = arith.addf %199, %200 : vector<8x1xf32>
      %202 = math.rsqrt %201 : vector<8x1xf32>
      %203 = vector.broadcast %202 : vector<8x1xf32> to vector<8x128xf32>
      %204 = arith.mulf %194, %203 : vector<8x128xf32>
      %205 = vector.broadcast %187 : vector<1x128xf32> to vector<8x128xf32>
      %206 = arith.mulf %204, %205 : vector<8x128xf32>
      %207 = vector.broadcast %188 : vector<1x128xf32> to vector<8x128xf32>
      %208 = arith.addf %206, %207 : vector<8x128xf32>
      %c0_96 = arith.constant 0 : index
      %c0_97 = arith.constant 0 : index
      %c0_98 = arith.constant 0 : index
      %209 = vector.load %arg18[%c0_96, %c0_97, %c0_98] : memref<1x8x128xf32, #tpu.memory_space<vmem>>, vector<1x8x128xf32>
      %210 = vector.shape_cast %209 : vector<1x8x128xf32> to vector<8x128xf32>
      %211 = vector.shape_cast %208 : vector<8x128xf32> to vector<1x8x128xf32>
      tpu.vector_store %arg18[%c0_96, %c0_97, %c0_98], %211 {strides = array<i32>} : memref<1x8x128xf32, #tpu.memory_space<vmem>>, vector<1x8x128xf32>,
    } else {
    }
    %c0 = arith.constant 0 : index
    %c0_1 = arith.constant 0 : index
    %c0_2 = arith.constant 0 : index
    %3 = vector.load %arg18[%c0, %c0_1, %c0_2] : memref<1x8x128xf32, #tpu.memory_space<vmem>>, vector<1x8x128xf32>
    %4 = vector.shape_cast %3 : vector<1x8x128xf32> to vector<8x128xf32>
    %c0_3 = arith.constant 0 : index
    %c0_4 = arith.constant 0 : index
    %c0_5 = arith.constant 0 : index
    %5 = vector.load %arg3[%c0_3, %c0_4, %c0_5] : memref<1x1x8xf32, #tpu.memory_space<vmem>>, vector<1x1x8xf32>
    %6 = vector.shape_cast %5 : vector<1x1x8xf32> to vector<1x8xf32>
    %cst = arith.constant 1.000000e+00 : f32
    %7 = vector.broadcast %cst : f32 to vector<1x8xf32>
    %8 = arith.subf %7, %6 : vector<1x8xf32>
    %cst_6 = arith.constant -1.000000e+30 : f32
    %9 = vector.broadcast %cst_6 : f32 to vector<1x8xf32>
    %10 = arith.mulf %8, %9 : vector<1x8xf32>
    %c0_7 = arith.constant 0 : index
    %c0_8 = arith.constant 0 : index
    %c0_9 = arith.constant 0 : index
    %11 = vector.load %arg6[%c0_7, %c0_8, %c0_9] : memref<1x128x384xf32, #tpu.memory_space<vmem>>, vector<1x128x384xf32>
    %12 = vector.shape_cast %11 : vector<1x128x384xf32> to vector<128x384xf32>
    %cst_10 = arith.constant dense<0.000000e+00> : vector<8x384xf32>
    %13 = tpu.matmul %4, %12, %cst_10 {dimension_numbers = #tpu.dot_dimension_numbers<[1], [0], [0], [1], [0, 0, 1, 1], [], []>} : vector<8x128xf32>, vector<128x384xf32>, vector<8x384xf32> -> vector<8x384xf32>
    %c0_11 = arith.constant 0 : index
    %c0_12 = arith.constant 0 : index
    %c0_13 = arith.constant 0 : index
    %14 = vector.load %arg7[%c0_11, %c0_12, %c0_13] : memref<1x1x384xf32, #tpu.memory_space<vmem>>, vector<1x1x384xf32>
    %15 = vector.shape_cast %14 : vector<1x1x384xf32> to vector<1x384xf32>
    %16 = vector.broadcast %15 : vector<1x384xf32> to vector<8x384xf32>
    %17 = arith.addf %13, %16 : vector<8x384xf32>
    %18 = vector.extract_strided_slice %17 {offsets = [0, 0], sizes = [8, 128], strides = [1, 1]} : vector<8x384xf32> to vector<8x128xf32>
    %19 = vector.extract_strided_slice %17 {offsets = [0, 128], sizes = [8, 128], strides = [1, 1]} : vector<8x384xf32> to vector<8x128xf32>
    %20 = vector.extract_strided_slice %17 {offsets = [0, 256], sizes = [8, 128], strides = [1, 1]} : vector<8x384xf32> to vector<8x128xf32>
    %21 = vector.extract_strided_slice %18 {offsets = [0, 0], sizes = [8, 32], strides = [1, 1]} : vector<8x128xf32> to vector<8x32xf32>
    %cst_14 = arith.constant 0.176776692 : f32
    %22 = vector.broadcast %cst_14 : f32 to vector<8x32xf32>
    %23 = arith.mulf %21, %22 : vector<8x32xf32>
    %24 = vector.extract_strided_slice %19 {offsets = [0, 0], sizes = [8, 32], strides = [1, 1]} : vector<8x128xf32> to vector<8x32xf32>
    %cst_15 = arith.constant dense<0.000000e+00> : vector<8x8xf32>
    %25 = tpu.matmul %23, %24, %cst_15 {dimension_numbers = #tpu.dot_dimension_numbers<[1], [1], [0], [0], [0, 0, 1, 0], [], []>} : vector<8x32xf32>, vector<8x32xf32>, vector<8x8xf32> -> vector<8x8xf32>
    %26 = vector.broadcast %10 : vector<1x8xf32> to vector<8x8xf32>
    %27 = arith.addf %25, %26 : vector<8x8xf32>
    %cst_16 = arith.constant dense<0xFF800000> : vector<8xf32>
    %28 = vector.multi_reduction <maximumf>, %27, %cst_16 [1] : vector<8x8xf32> to vector<8xf32>
    %29 = vector.shape_cast %28 : vector<8xf32> to vector<8x1xf32>
    %30 = vector.broadcast %29 : vector<8x1xf32> to vector<8x8xf32>
    %31 = arith.subf %27, %30 : vector<8x8xf32>
    %32 = math.exp %31 : vector<8x8xf32>
    %cst_17 = arith.constant dense<0.000000e+00> : vector<8xf32>
    %33 = vector.multi_reduction <add>, %32, %cst_17 [1] : vector<8x8xf32> to vector<8xf32>
    %34 = vector.shape_cast %33 : vector<8xf32> to vector<8x1xf32>
    %35 = tpu.reciprocal %34 {approx = true} : vector<8x1xf32> -> vector<8x1xf32>
    %36 = vector.broadcast %35 : vector<8x1xf32> to vector<8x8xf32>
    %37 = arith.mulf %32, %36 : vector<8x8xf32>
    %38 = vector.extract_strided_slice %20 {offsets = [0, 0], sizes = [8, 32], strides = [1, 1]} : vector<8x128xf32> to vector<8x32xf32>
    %cst_18 = arith.constant dense<0.000000e+00> : vector<8x32xf32>
    %39 = tpu.matmul %37, %38, %cst_18 {dimension_numbers = #tpu.dot_dimension_numbers<[1], [0], [0], [1], [0, 0, 1, 1], [], []>} : vector<8x8xf32>, vector<8x32xf32>, vector<8x32xf32> -> vector<8x32xf32>
    %40 = vector.extract_strided_slice %18 {offsets = [0, 32], sizes = [8, 32], strides = [1, 1]} : vector<8x128xf32> to vector<8x32xf32>
    %cst_19 = arith.constant 0.176776692 : f32
    %41 = vector.broadcast %cst_19 : f32 to vector<8x32xf32>
    %42 = arith.mulf %40, %41 : vector<8x32xf32>
    %43 = vector.extract_strided_slice %19 {offsets = [0, 32], sizes = [8, 32], strides = [1, 1]} : vector<8x128xf32> to vector<8x32xf32>
    %cst_20 = arith.constant dense<0.000000e+00> : vector<8x8xf32>
    %44 = tpu.matmul %42, %43, %cst_20 {dimension_numbers = #tpu.dot_dimension_numbers<[1], [1], [0], [0], [0, 0, 1, 0], [], []>} : vector<8x32xf32>, vector<8x32xf32>, vector<8x8xf32> -> vector<8x8xf32>
    %45 = vector.broadcast %10 : vector<1x8xf32> to vector<8x8xf32>
    %46 = arith.addf %44, %45 : vector<8x8xf32>
    %cst_21 = arith.constant dense<0xFF800000> : vector<8xf32>
    %47 = vector.multi_reduction <maximumf>, %46, %cst_21 [1] : vector<8x8xf32> to vector<8xf32>
    %48 = vector.shape_cast %47 : vector<8xf32> to vector<8x1xf32>
    %49 = vector.broadcast %48 : vector<8x1xf32> to vector<8x8xf32>
    %50 = arith.subf %46, %49 : vector<8x8xf32>
    %51 = math.exp %50 : vector<8x8xf32>
    %cst_22 = arith.constant dense<0.000000e+00> : vector<8xf32>
    %52 = vector.multi_reduction <add>, %51, %cst_22 [1] : vector<8x8xf32> to vector<8xf32>
    %53 = vector.shape_cast %52 : vector<8xf32> to vector<8x1xf32>
    %54 = tpu.reciprocal %53 {approx = true} : vector<8x1xf32> -> vector<8x1xf32>
    %55 = vector.broadcast %54 : vector<8x1xf32> to vector<8x8xf32>
    %56 = arith.mulf %51, %55 : vector<8x8xf32>
    %57 = vector.extract_strided_slice %20 {offsets = [0, 32], sizes = [8, 32], strides = [1, 1]} : vector<8x128xf32> to vector<8x32xf32>
    %cst_23 = arith.constant dense<0.000000e+00> : vector<8x32xf32>
    %58 = tpu.matmul %56, %57, %cst_23 {dimension_numbers = #tpu.dot_dimension_numbers<[1], [0], [0], [1], [0, 0, 1, 1], [], []>} : vector<8x8xf32>, vector<8x32xf32>, vector<8x32xf32> -> vector<8x32xf32>
    %59 = vector.extract_strided_slice %18 {offsets = [0, 64], sizes = [8, 32], strides = [1, 1]} : vector<8x128xf32> to vector<8x32xf32>
    %cst_24 = arith.constant 0.176776692 : f32
    %60 = vector.broadcast %cst_24 : f32 to vector<8x32xf32>
    %61 = arith.mulf %59, %60 : vector<8x32xf32>
    %62 = vector.extract_strided_slice %19 {offsets = [0, 64], sizes = [8, 32], strides = [1, 1]} : vector<8x128xf32> to vector<8x32xf32>
    %cst_25 = arith.constant dense<0.000000e+00> : vector<8x8xf32>
    %63 = tpu.matmul %61, %62, %cst_25 {dimension_numbers = #tpu.dot_dimension_numbers<[1], [1], [0], [0], [0, 0, 1, 0], [], []>} : vector<8x32xf32>, vector<8x32xf32>, vector<8x8xf32> -> vector<8x8xf32>
    %64 = vector.broadcast %10 : vector<1x8xf32> to vector<8x8xf32>
    %65 = arith.addf %63, %64 : vector<8x8xf32>
    %cst_26 = arith.constant dense<0xFF800000> : vector<8xf32>
    %66 = vector.multi_reduction <maximumf>, %65, %cst_26 [1] : vector<8x8xf32> to vector<8xf32>
    %67 = vector.shape_cast %66 : vector<8xf32> to vector<8x1xf32>
    %68 = vector.broadcast %67 : vector<8x1xf32> to vector<8x8xf32>
    %69 = arith.subf %65, %68 : vector<8x8xf32>
    %70 = math.exp %69 : vector<8x8xf32>
    %cst_27 = arith.constant dense<0.000000e+00> : vector<8xf32>
    %71 = vector.multi_reduction <add>, %70, %cst_27 [1] : vector<8x8xf32> to vector<8xf32>
    %72 = vector.shape_cast %71 : vector<8xf32> to vector<8x1xf32>
    %73 = tpu.reciprocal %72 {approx = true} : vector<8x1xf32> -> vector<8x1xf32>
    %74 = vector.broadcast %73 : vector<8x1xf32> to vector<8x8xf32>
    %75 = arith.mulf %70, %74 : vector<8x8xf32>
    %76 = vector.extract_strided_slice %20 {offsets = [0, 64], sizes = [8, 32], strides = [1, 1]} : vector<8x128xf32> to vector<8x32xf32>
    %cst_28 = arith.constant dense<0.000000e+00> : vector<8x32xf32>
    %77 = tpu.matmul %75, %76, %cst_28 {dimension_numbers = #tpu.dot_dimension_numbers<[1], [0], [0], [1], [0, 0, 1, 1], [], []>} : vector<8x8xf32>, vector<8x32xf32>, vector<8x32xf32> -> vector<8x32xf32>
    %78 = vector.extract_strided_slice %18 {offsets = [0, 96], sizes = [8, 32], strides = [1, 1]} : vector<8x128xf32> to vector<8x32xf32>
    %cst_29 = arith.constant 0.176776692 : f32
    %79 = vector.broadcast %cst_29 : f32 to vector<8x32xf32>
    %80 = arith.mulf %78, %79 : vector<8x32xf32>
    %81 = vector.extract_strided_slice %19 {offsets = [0, 96], sizes = [8, 32], strides = [1, 1]} : vector<8x128xf32> to vector<8x32xf32>
    %cst_30 = arith.constant dense<0.000000e+00> : vector<8x8xf32>
    %82 = tpu.matmul %80, %81, %cst_30 {dimension_numbers = #tpu.dot_dimension_numbers<[1], [1], [0], [0], [0, 0, 1, 0], [], []>} : vector<8x32xf32>, vector<8x32xf32>, vector<8x8xf32> -> vector<8x8xf32>
    %83 = vector.broadcast %10 : vector<1x8xf32> to vector<8x8xf32>
    %84 = arith.addf %82, %83 : vector<8x8xf32>
    %cst_31 = arith.constant dense<0xFF800000> : vector<8xf32>
    %85 = vector.multi_reduction <maximumf>, %84, %cst_31 [1] : vector<8x8xf32> to vector<8xf32>
    %86 = vector.shape_cast %85 : vector<8xf32> to vector<8x1xf32>
    %87 = vector.broadcast %86 : vector<8x1xf32> to vector<8x8xf32>
    %88 = arith.subf %84, %87 : vector<8x8xf32>
    %89 = math.exp %88 : vector<8x8xf32>
    %cst_32 = arith.constant dense<0.000000e+00> : vector<8xf32>
    %90 = vector.multi_reduction <add>, %89, %cst_32 [1] : vector<8x8xf32> to vector<8xf32>
    %91 = vector.shape_cast %90 : vector<8xf32> to vector<8x1xf32>
    %92 = tpu.reciprocal %91 {approx = true} : vector<8x1xf32> -> vector<8x1xf32>
    %93 = vector.broadcast %92 : vector<8x1xf32> to vector<8x8xf32>
    %94 = arith.mulf %89, %93 : vector<8x8xf32>
    %95 = vector.extract_strided_slice %20 {offsets = [0, 96], sizes = [8, 32], strides = [1, 1]} : vector<8x128xf32> to vector<8x32xf32>
    %cst_33 = arith.constant dense<0.000000e+00> : vector<8x32xf32>
    %96 = tpu.matmul %94, %95, %cst_33 {dimension_numbers = #tpu.dot_dimension_numbers<[1], [0], [0], [1], [0, 0, 1, 1], [], []>} : vector<8x8xf32>, vector<8x32xf32>, vector<8x32xf32> -> vector<8x32xf32>
    %97 = tpu.concatenate %39, %58, %77, %96 in 1 : vector<8x32xf32>, vector<8x32xf32>, vector<8x32xf32>, vector<8x32xf32> -> vector<8x128xf32>
    %c0_34 = arith.constant 0 : index
    %c0_35 = arith.constant 0 : index
    %c0_36 = arith.constant 0 : index
    %98 = vector.load %arg8[%c0_34, %c0_35, %c0_36] : memref<1x128x128xf32, #tpu.memory_space<vmem>>, vector<1x128x128xf32>
    %99 = vector.shape_cast %98 : vector<1x128x128xf32> to vector<128x128xf32>
    %cst_37 = arith.constant dense<0.000000e+00> : vector<8x128xf32>
    %100 = tpu.matmul %97, %99, %cst_37 {dimension_numbers = #tpu.dot_dimension_numbers<[1], [0], [0], [1], [0, 0, 1, 1], [], []>} : vector<8x128xf32>, vector<128x128xf32>, vector<8x128xf32> -> vector<8x128xf32>
    %c0_38 = arith.constant 0 : index
    %c0_39 = arith.constant 0 : index
    %c0_40 = arith.constant 0 : index
    %101 = vector.load %arg9[%c0_38, %c0_39, %c0_40] : memref<1x1x128xf32, #tpu.memory_space<vmem>>, vector<1x1x128xf32>
    %102 = vector.shape_cast %101 : vector<1x1x128xf32> to vector<1x128xf32>
    %103 = vector.broadcast %102 : vector<1x128xf32> to vector<8x128xf32>
    %104 = arith.addf %100, %103 : vector<8x128xf32>
    %105 = arith.addf %4, %104 : vector<8x128xf32>
    %c0_41 = arith.constant 0 : index
    %c0_42 = arith.constant 0 : index
    %c0_43 = arith.constant 0 : index
    %106 = vector.load %arg10[%c0_41, %c0_42, %c0_43] : memref<1x1x128xf32, #tpu.memory_space<vmem>>, vector<1x1x128xf32>
    %107 = vector.shape_cast %106 : vector<1x1x128xf32> to vector<1x128xf32>
    %c0_44 = arith.constant 0 : index
    %c0_45 = arith.constant 0 : index
    %c0_46 = arith.constant 0 : index
    %108 = vector.load %arg11[%c0_44, %c0_45, %c0_46] : memref<1x1x128xf32, #tpu.memory_space<vmem>>, vector<1x1x128xf32>
    %109 = vector.shape_cast %108 : vector<1x1x128xf32> to vector<1x128xf32>
    %cst_47 = arith.constant dense<0.000000e+00> : vector<8xf32>
    %110 = vector.multi_reduction <add>, %105, %cst_47 [1] : vector<8x128xf32> to vector<8xf32>
    %111 = vector.shape_cast %110 : vector<8xf32> to vector<8x1xf32>
    %cst_48 = arith.constant 1.280000e+02 : f32
    %112 = vector.broadcast %cst_48 : f32 to vector<8x1xf32>
    %113 = arith.divf %111, %112 : vector<8x1xf32>
    %114 = vector.broadcast %113 : vector<8x1xf32> to vector<8x128xf32>
    %115 = arith.subf %105, %114 : vector<8x128xf32>
    %116 = arith.mulf %115, %115 : vector<8x128xf32>
    %cst_49 = arith.constant dense<0.000000e+00> : vector<8xf32>
    %117 = vector.multi_reduction <add>, %116, %cst_49 [1] : vector<8x128xf32> to vector<8xf32>
    %118 = vector.shape_cast %117 : vector<8xf32> to vector<8x1xf32>
    %cst_50 = arith.constant 1.280000e+02 : f32
    %119 = vector.broadcast %cst_50 : f32 to vector<8x1xf32>
    %120 = arith.divf %118, %119 : vector<8x1xf32>
    %cst_51 = arith.constant 9.99999974E-6 : f32
    %121 = vector.broadcast %cst_51 : f32 to vector<8x1xf32>
    %122 = arith.addf %120, %121 : vector<8x1xf32>
    %123 = math.rsqrt %122 : vector<8x1xf32>
    %124 = vector.broadcast %123 : vector<8x1xf32> to vector<8x128xf32>
    %125 = arith.mulf %115, %124 : vector<8x128xf32>
    %126 = vector.broadcast %107 : vector<1x128xf32> to vector<8x128xf32>
    %127 = arith.mulf %125, %126 : vector<8x128xf32>
    %128 = vector.broadcast %109 : vector<1x128xf32> to vector<8x128xf32>
    %129 = arith.addf %127, %128 : vector<8x128xf32>
    %c0_52 = arith.constant 0 : index
    %c0_53 = arith.constant 0 : index
    %c0_54 = arith.constant 0 : index
    %130 = vector.load %arg12[%c0_52, %c0_53, %c0_54] : memref<1x128x256xf32, #tpu.memory_space<vmem>>, vector<1x128x256xf32>
    %131 = vector.shape_cast %130 : vector<1x128x256xf32> to vector<128x256xf32>
    %cst_55 = arith.constant dense<0.000000e+00> : vector<8x256xf32>
    %132 = tpu.matmul %129, %131, %cst_55 {dimension_numbers = #tpu.dot_dimension_numbers<[1], [0], [0], [1], [0, 0, 1, 1], [], []>} : vector<8x128xf32>, vector<128x256xf32>, vector<8x256xf32> -> vector<8x256xf32>
    %c0_56 = arith.constant 0 : index
    %c0_57 = arith.constant 0 : index
    %c0_58 = arith.constant 0 : index
    %133 = vector.load %arg13[%c0_56, %c0_57, %c0_58] : memref<1x1x256xf32, #tpu.memory_space<vmem>>, vector<1x1x256xf32>
    %134 = vector.shape_cast %133 : vector<1x1x256xf32> to vector<1x256xf32>
    %135 = vector.broadcast %134 : vector<1x256xf32> to vector<8x256xf32>
    %136 = arith.addf %132, %135 : vector<8x256xf32>
    %cst_59 = arith.constant 5.000000e-01 : f32
    %137 = vector.broadcast %cst_59 : f32 to vector<8x256xf32>
    %138 = arith.mulf %137, %136 : vector<8x256xf32>
    %cst_60 = arith.constant 4.471500e-02 : f32
    %139 = vector.broadcast %cst_60 : f32 to vector<8x256xf32>
    %140 = arith.mulf %139, %136 : vector<8x256xf32>
    %141 = arith.mulf %140, %136 : vector<8x256xf32>
    %142 = arith.mulf %141, %136 : vector<8x256xf32>
    %143 = arith.addf %136, %142 : vector<8x256xf32>
    %cst_61 = arith.constant 0.797884583 : f32
    %144 = vector.broadcast %cst_61 : f32 to vector<8x256xf32>
    %145 = arith.mulf %144, %143 : vector<8x256xf32>
    %146 = math.tanh %145 : vector<8x256xf32>
    %cst_62 = arith.constant 1.000000e+00 : f32
    %147 = vector.broadcast %cst_62 : f32 to vector<8x256xf32>
    %148 = arith.addf %147, %146 : vector<8x256xf32>
    %149 = arith.mulf %138, %148 : vector<8x256xf32>
    %c0_63 = arith.constant 0 : index
    %c0_64 = arith.constant 0 : index
    %c0_65 = arith.constant 0 : index
    %150 = vector.load %arg14[%c0_63, %c0_64, %c0_65] : memref<1x256x128xf32, #tpu.memory_space<vmem>>, vector<1x256x128xf32>
    %151 = vector.shape_cast %150 : vector<1x256x128xf32> to vector<256x128xf32>
    %cst_66 = arith.constant dense<0.000000e+00> : vector<8x128xf32>
    %152 = tpu.matmul %149, %151, %cst_66 {dimension_numbers = #tpu.dot_dimension_numbers<[1], [0], [0], [1], [0, 0, 1, 1], [], []>} : vector<8x256xf32>, vector<256x128xf32>, vector<8x128xf32> -> vector<8x128xf32>
    %c0_67 = arith.constant 0 : index
    %c0_68 = arith.constant 0 : index
    %c0_69 = arith.constant 0 : index
    %153 = vector.load %arg15[%c0_67, %c0_68, %c0_69] : memref<1x1x128xf32, #tpu.memory_space<vmem>>, vector<1x1x128xf32>
    %154 = vector.shape_cast %153 : vector<1x1x128xf32> to vector<1x128xf32>
    %155 = vector.broadcast %154 : vector<1x128xf32> to vector<8x128xf32>
    %156 = arith.addf %152, %155 : vector<8x128xf32>
    %157 = arith.addf %129, %156 : vector<8x128xf32>
    %c0_70 = arith.constant 0 : index
    %c0_71 = arith.constant 0 : index
    %c0_72 = arith.constant 0 : index
    %158 = vector.load %arg16[%c0_70, %c0_71, %c0_72] : memref<1x1x128xf32, #tpu.memory_space<vmem>>, vector<1x1x128xf32>
    %159 = vector.shape_cast %158 : vector<1x1x128xf32> to vector<1x128xf32>
    %c0_73 = arith.constant 0 : index
    %c0_74 = arith.constant 0 : index
    %c0_75 = arith.constant 0 : index
    %160 = vector.load %arg17[%c0_73, %c0_74, %c0_75] : memref<1x1x128xf32, #tpu.memory_space<vmem>>, vector<1x1x128xf32>
    %161 = vector.shape_cast %160 : vector<1x1x128xf32> to vector<1x128xf32>
    %cst_76 = arith.constant dense<0.000000e+00> : vector<8xf32>
    %162 = vector.multi_reduction <add>, %157, %cst_76 [1] : vector<8x128xf32> to vector<8xf32>
    %163 = vector.shape_cast %162 : vector<8xf32> to vector<8x1xf32>
    %cst_77 = arith.constant 1.280000e+02 : f32
    %164 = vector.broadcast %cst_77 : f32 to vector<8x1xf32>
    %165 = arith.divf %163, %164 : vector<8x1xf32>
    %166 = vector.broadcast %165 : vector<8x1xf32> to vector<8x128xf32>
    %167 = arith.subf %157, %166 : vector<8x128xf32>
    %168 = arith.mulf %167, %167 : vector<8x128xf32>
    %cst_78 = arith.constant dense<0.000000e+00> : vector<8xf32>
    %169 = vector.multi_reduction <add>, %168, %cst_78 [1] : vector<8x128xf32> to vector<8xf32>
    %170 = vector.shape_cast %169 : vector<8xf32> to vector<8x1xf32>
    %cst_79 = arith.constant 1.280000e+02 : f32
    %171 = vector.broadcast %cst_79 : f32 to vector<8x1xf32>
    %172 = arith.divf %170, %171 : vector<8x1xf32>
    %cst_80 = arith.constant 9.99999974E-6 : f32
    %173 = vector.broadcast %cst_80 : f32 to vector<8x1xf32>
    %174 = arith.addf %172, %173 : vector<8x1xf32>
    %175 = math.rsqrt %174 : vector<8x1xf32>
    %176 = vector.broadcast %175 : vector<8x1xf32> to vector<8x128xf32>
    %177 = arith.mulf %167, %176 : vector<8x128xf32>
    %178 = vector.broadcast %159 : vector<1x128xf32> to vector<8x128xf32>
    %179 = arith.mulf %177, %178 : vector<8x128xf32>
    %180 = vector.broadcast %161 : vector<1x128xf32> to vector<8x128xf32>
    %181 = arith.addf %179, %180 : vector<8x128xf32>
    %c0_81 = arith.constant 0 : index
    %c0_82 = arith.constant 0 : index
    %c0_83 = arith.constant 0 : index
    %182 = vector.load %arg18[%c0_81, %c0_82, %c0_83] : memref<1x8x128xf32, #tpu.memory_space<vmem>>, vector<1x8x128xf32>
    %183 = vector.shape_cast %182 : vector<1x8x128xf32> to vector<8x128xf32>
    %184 = vector.shape_cast %181 : vector<8x128xf32> to vector<1x8x128xf32>
    tpu.vector_store %arg18[%c0_81, %c0_82, %c0_83], %184 {strides = array<i32>} : memref<1x8x128xf32, #tpu.memory_space<vmem>>, vector<1x8x128xf32>,
    return
  }
  func.func @transform_0(%arg0: i32, %arg1: i32) -> (i32, i32, i32) {
    %c0_i32 = arith.constant 0 : i32
    %c0_i32_0 = arith.constant 0 : i32
    %c0_i32_1 = arith.constant 0 : i32
    return %arg0, %c0_i32, %c0_i32_0 : i32, i32, i32
  }
  func.func @transform_1(%arg0: i32, %arg1: i32) -> (i32, i32, i32) {
    %c0_i32 = arith.constant 0 : i32
    %c0_i32_0 = arith.constant 0 : i32
    %c0_i32_1 = arith.constant 0 : i32
    return %arg0, %c0_i32, %c0_i32_0 : i32, i32, i32
  }
  func.func @transform_2(%arg0: i32, %arg1: i32) -> (i32, i32) {
    %c0_i32 = arith.constant 0 : i32
    %c0_i32_0 = arith.constant 0 : i32
    %c0_i32_1 = arith.constant 0 : i32
    return %c0_i32, %c0_i32_0 : i32, i32
  }
  func.func @transform_3(%arg0: i32, %arg1: i32) -> (i32, i32) {
    %c0_i32 = arith.constant 0 : i32
    %c0_i32_0 = arith.constant 0 : i32
    %c0_i32_1 = arith.constant 0 : i32
    return %c0_i32, %c0_i32_0 : i32, i32
  }
  func.func @transform_4(%arg0: i32, %arg1: i32) -> (i32, i32, i32) {
    %c0_i32 = arith.constant 0 : i32
    %c0_i32_0 = arith.constant 0 : i32
    %c0_i32_1 = arith.constant 0 : i32
    return %arg1, %c0_i32, %c0_i32_0 : i32, i32, i32
  }
  func.func @transform_5(%arg0: i32, %arg1: i32) -> (i32, i32, i32) {
    %c0_i32 = arith.constant 0 : i32
    %c0_i32_0 = arith.constant 0 : i32
    %c0_i32_1 = arith.constant 0 : i32
    return %arg1, %c0_i32, %c0_i32_0 : i32, i32, i32
  }
  func.func @transform_6(%arg0: i32, %arg1: i32) -> (i32, i32, i32) {
    %c0_i32 = arith.constant 0 : i32
    %c0_i32_0 = arith.constant 0 : i32
    %c0_i32_1 = arith.constant 0 : i32
    return %arg1, %c0_i32, %c0_i32_0 : i32, i32, i32
  }
  func.func @transform_7(%arg0: i32, %arg1: i32) -> (i32, i32, i32) {
    %c0_i32 = arith.constant 0 : i32
    %c0_i32_0 = arith.constant 0 : i32
    %c0_i32_1 = arith.constant 0 : i32
    return %arg1, %c0_i32, %c0_i32_0 : i32, i32, i32
  }
  func.func @transform_8(%arg0: i32, %arg1: i32) -> (i32, i32, i32) {
    %c0_i32 = arith.constant 0 : i32
    %c0_i32_0 = arith.constant 0 : i32
    %c0_i32_1 = arith.constant 0 : i32
    return %arg1, %c0_i32, %c0_i32_0 : i32, i32, i32
  }
  func.func @transform_9(%arg0: i32, %arg1: i32) -> (i32, i32, i32) {
    %c0_i32 = arith.constant 0 : i32
    %c0_i32_0 = arith.constant 0 : i32
    %c0_i32_1 = arith.constant 0 : i32
    return %arg1, %c0_i32, %c0_i32_0 : i32, i32, i32
  }
  func.func @transform_10(%arg0: i32, %arg1: i32) -> (i32, i32, i32) {
    %c0_i32 = arith.constant 0 : i32
    %c0_i32_0 = arith.constant 0 : i32
    %c0_i32_1 = arith.constant 0 : i32
    return %arg1, %c0_i32, %c0_i32_0 : i32, i32, i32
  }
  func.func @transform_11(%arg0: i32, %arg1: i32) -> (i32, i32, i32) {
    %c0_i32 = arith.constant 0 : i32
    %c0_i32_0 = arith.constant 0 : i32
    %c0_i32_1 = arith.constant 0 : i32
    return %arg1, %c0_i32, %c0_i32_0 : i32, i32, i32
  }
  func.func @transform_12(%arg0: i32, %arg1: i32) -> (i32, i32, i32) {
    %c0_i32 = arith.constant 0 : i32
    %c0_i32_0 = arith.constant 0 : i32
    %c0_i32_1 = arith.constant 0 : i32
    return %arg1, %c0_i32, %c0_i32_0 : i32, i32, i32
  }
  func.func @transform_13(%arg0: i32, %arg1: i32) -> (i32, i32, i32) {
    %c0_i32 = arith.constant 0 : i32
    %c0_i32_0 = arith.constant 0 : i32
    %c0_i32_1 = arith.constant 0 : i32
    return %arg1, %c0_i32, %c0_i32_0 : i32, i32, i32
  }
  func.func @transform_14(%arg0: i32, %arg1: i32) -> (i32, i32, i32) {
    %c0_i32 = arith.constant 0 : i32
    %c0_i32_0 = arith.constant 0 : i32
    %c0_i32_1 = arith.constant 0 : i32
    return %arg1, %c0_i32, %c0_i32_0 : i32, i32, i32
  }
  func.func @transform_15(%arg0: i32, %arg1: i32) -> (i32, i32, i32) {
    %c0_i32 = arith.constant 0 : i32
    %c0_i32_0 = arith.constant 0 : i32
    %c0_i32_1 = arith.constant 0 : i32
    return %arg1, %c0_i32, %c0_i32_0 : i32, i32, i32
  }
  func.func @transform_16(%arg0: i32, %arg1: i32) -> (i32, i32, i32) {
    %c0_i32 = arith.constant 0 : i32
    %c0_i32_0 = arith.constant 0 : i32
    %c0_i32_1 = arith.constant 0 : i32
    return %arg0, %c0_i32, %c0_i32_0 : i32, i32, i32
  }
}

module attributes {stable_mosaic.version = 11 : i64} {
  func.func @_decoder_stack_kernel(%arg0: i32, %arg1: i32, %arg2: memref<16x128xf32, #tpu.memory_space<vmem>>, %arg3: memref<1x8x128xf32, #tpu.memory_space<vmem>>, %arg4: memref<1x1x8xf32, #tpu.memory_space<vmem>>, %arg5: memref<1x128x384xf32, #tpu.memory_space<vmem>>, %arg6: memref<1x1x384xf32, #tpu.memory_space<vmem>>, %arg7: memref<1x128x128xf32, #tpu.memory_space<vmem>>, %arg8: memref<1x1x128xf32, #tpu.memory_space<vmem>>, %arg9: memref<1x1x128xf32, #tpu.memory_space<vmem>>, %arg10: memref<1x1x128xf32, #tpu.memory_space<vmem>>, %arg11: memref<1x128x128xf32, #tpu.memory_space<vmem>>, %arg12: memref<1x1x128xf32, #tpu.memory_space<vmem>>, %arg13: memref<1x128x256xf32, #tpu.memory_space<vmem>>, %arg14: memref<1x1x256xf32, #tpu.memory_space<vmem>>, %arg15: memref<1x128x128xf32, #tpu.memory_space<vmem>>, %arg16: memref<1x1x128xf32, #tpu.memory_space<vmem>>, %arg17: memref<1x1x128xf32, #tpu.memory_space<vmem>>, %arg18: memref<1x1x128xf32, #tpu.memory_space<vmem>>, %arg19: memref<1x128x256xf32, #tpu.memory_space<vmem>>, %arg20: memref<1x1x256xf32, #tpu.memory_space<vmem>>, %arg21: memref<1x256x128xf32, #tpu.memory_space<vmem>>, %arg22: memref<1x1x128xf32, #tpu.memory_space<vmem>>, %arg23: memref<1x1x128xf32, #tpu.memory_space<vmem>>, %arg24: memref<1x1x128xf32, #tpu.memory_space<vmem>>, %arg25: memref<16x128xf32, #tpu.memory_space<vmem>>, %arg26: memref<16x1xf32, #tpu.memory_space<vmem>>, %arg27: memref<1x16x1xf32, #tpu.memory_space<vmem>>, %arg28: memref<16x128xf32, #tpu.memory_space<vmem>>) attributes {dimension_semantics = [#tpu.dimension_semantics<parallel>, #tpu.dimension_semantics<arbitrary>], iteration_bounds = array<i64: 2, 2>, scalar_prefetch = 0 : i64, scratch_operands = 1 : i64, tpu.core_type = #tpu.core_type<tc>, window_params = [{pipeline_mode = #tpu.pipeline_mode<synchronous>, transform_indices = @transform_0, window_bounds = array<i64: 16, 128>}, {transform_indices = @transform_1, window_bounds = array<i64: 1, 8, 128>}, {transform_indices = @transform_2, window_bounds = array<i64: 1, 1, 8>}, {transform_indices = @transform_3, window_bounds = array<i64: 1, 128, 384>}, {transform_indices = @transform_4, window_bounds = array<i64: 1, 1, 384>}, {transform_indices = @transform_5, window_bounds = array<i64: 1, 128, 128>}, {transform_indices = @transform_6, window_bounds = array<i64: 1, 1, 128>}, {transform_indices = @transform_7, window_bounds = array<i64: 1, 1, 128>}, {transform_indices = @transform_8, window_bounds = array<i64: 1, 1, 128>}, {transform_indices = @transform_9, window_bounds = array<i64: 1, 128, 128>}, {transform_indices = @transform_10, window_bounds = array<i64: 1, 1, 128>}, {transform_indices = @transform_11, window_bounds = array<i64: 1, 128, 256>}, {transform_indices = @transform_12, window_bounds = array<i64: 1, 1, 256>}, {transform_indices = @transform_13, window_bounds = array<i64: 1, 128, 128>}, {transform_indices = @transform_14, window_bounds = array<i64: 1, 1, 128>}, {transform_indices = @transform_15, window_bounds = array<i64: 1, 1, 128>}, {transform_indices = @transform_16, window_bounds = array<i64: 1, 1, 128>}, {transform_indices = @transform_17, window_bounds = array<i64: 1, 128, 256>}, {transform_indices = @transform_18, window_bounds = array<i64: 1, 1, 256>}, {transform_indices = @transform_19, window_bounds = array<i64: 1, 256, 128>}, {transform_indices = @transform_20, window_bounds = array<i64: 1, 1, 128>}, {transform_indices = @transform_21, window_bounds = array<i64: 1, 1, 128>}, {transform_indices = @transform_22, window_bounds = array<i64: 1, 1, 128>}, {pipeline_mode = #tpu.pipeline_mode<synchronous>, transform_indices = @transform_23, window_bounds = array<i64: 16, 128>}, {pipeline_mode = #tpu.pipeline_mode<synchronous>, transform_indices = @transform_24, window_bounds = array<i64: 16, 1>}, {transform_indices = @transform_25, window_bounds = array<i64: 1, 16, 1>}]} {
    %c0_i32 = arith.constant 0 : i32
    %0 = arith.cmpi eq, %arg1, %c0_i32 : i32
    %1 = arith.extui %0 : i1 to i32
    %c0_i32_0 = arith.constant 0 : i32
    %2 = arith.cmpi ne, %1, %c0_i32_0 : i32
    scf.if %2 {
      %c0_140 = arith.constant 0 : index
      %c0_141 = arith.constant 0 : index
      %314 = vector.load %arg2[%c0_140, %c0_141] : memref<16x128xf32, #tpu.memory_space<vmem>>, vector<16x128xf32>
      %c0_142 = arith.constant 0 : index
      %c0_143 = arith.constant 0 : index
      %315 = vector.load %arg28[%c0_142, %c0_143] : memref<16x128xf32, #tpu.memory_space<vmem>>, vector<16x128xf32>
      tpu.vector_store %arg28[%c0_142, %c0_143], %314 {strides = array<i32>} : memref<16x128xf32, #tpu.memory_space<vmem>>, vector<16x128xf32>,
    } else {
    }
    %c0 = arith.constant 0 : index
    %c0_1 = arith.constant 0 : index
    %3 = vector.load %arg28[%c0, %c0_1] : memref<16x128xf32, #tpu.memory_space<vmem>>, vector<16x128xf32>
    %c0_2 = arith.constant 0 : index
    %c0_3 = arith.constant 0 : index
    %c0_4 = arith.constant 0 : index
    %4 = vector.load %arg3[%c0_2, %c0_3, %c0_4] : memref<1x8x128xf32, #tpu.memory_space<vmem>>, vector<1x8x128xf32>
    %5 = vector.shape_cast %4 : vector<1x8x128xf32> to vector<8x128xf32>
    %c0_5 = arith.constant 0 : index
    %c0_6 = arith.constant 0 : index
    %c0_7 = arith.constant 0 : index
    %6 = vector.load %arg4[%c0_5, %c0_6, %c0_7] : memref<1x1x8xf32, #tpu.memory_space<vmem>>, vector<1x1x8xf32>
    %7 = vector.shape_cast %6 : vector<1x1x8xf32> to vector<1x8xf32>
    %cst = arith.constant 1.000000e+00 : f32
    %8 = vector.broadcast %cst : f32 to vector<1x8xf32>
    %9 = arith.subf %8, %7 : vector<1x8xf32>
    %cst_8 = arith.constant -1.000000e+30 : f32
    %10 = vector.broadcast %cst_8 : f32 to vector<1x8xf32>
    %11 = arith.mulf %9, %10 : vector<1x8xf32>
    %c0_9 = arith.constant 0 : index
    %c0_10 = arith.constant 0 : index
    %c0_11 = arith.constant 0 : index
    %12 = vector.load %arg5[%c0_9, %c0_10, %c0_11] : memref<1x128x384xf32, #tpu.memory_space<vmem>>, vector<1x128x384xf32>
    %13 = vector.shape_cast %12 : vector<1x128x384xf32> to vector<128x384xf32>
    %cst_12 = arith.constant dense<0.000000e+00> : vector<16x384xf32>
    %14 = tpu.matmul %3, %13, %cst_12 {dimension_numbers = #tpu.dot_dimension_numbers<[1], [0], [0], [1], [0, 0, 1, 1], [], []>} : vector<16x128xf32>, vector<128x384xf32>, vector<16x384xf32> -> vector<16x384xf32>
    %c0_13 = arith.constant 0 : index
    %c0_14 = arith.constant 0 : index
    %c0_15 = arith.constant 0 : index
    %15 = vector.load %arg6[%c0_13, %c0_14, %c0_15] : memref<1x1x384xf32, #tpu.memory_space<vmem>>, vector<1x1x384xf32>
    %16 = vector.shape_cast %15 : vector<1x1x384xf32> to vector<1x384xf32>
    %17 = vector.broadcast %16 : vector<1x384xf32> to vector<16x384xf32>
    %18 = arith.addf %14, %17 : vector<16x384xf32>
    %19 = vector.extract_strided_slice %18 {offsets = [0, 0], sizes = [16, 128], strides = [1, 1]} : vector<16x384xf32> to vector<16x128xf32>
    %20 = vector.extract_strided_slice %18 {offsets = [0, 128], sizes = [16, 128], strides = [1, 1]} : vector<16x384xf32> to vector<16x128xf32>
    %21 = vector.extract_strided_slice %18 {offsets = [0, 256], sizes = [16, 128], strides = [1, 1]} : vector<16x384xf32> to vector<16x128xf32>
    %22 = tpu.iota {dimensions = array<i32: 0>} : vector<16x16xi32>
    %23 = tpu.iota {dimensions = array<i32: 1>} : vector<16x16xi32>
    %24 = arith.cmpi sge, %22, %23 : vector<16x16xi32>
    %cst_16 = arith.constant 0.000000e+00 : f32
    %cst_17 = arith.constant -1.000000e+30 : f32
    %25 = vector.broadcast %cst_16 : f32 to vector<16x16xf32>
    %26 = vector.broadcast %cst_17 : f32 to vector<16x16xf32>
    %27 = arith.select %24, %25, %26 : vector<16x16xi1>, vector<16x16xf32>
    %28 = vector.extract_strided_slice %19 {offsets = [0, 0], sizes = [16, 32], strides = [1, 1]} : vector<16x128xf32> to vector<16x32xf32>
    %cst_18 = arith.constant 0.176776692 : f32
    %29 = vector.broadcast %cst_18 : f32 to vector<16x32xf32>
    %30 = arith.mulf %28, %29 : vector<16x32xf32>
    %31 = vector.extract_strided_slice %20 {offsets = [0, 0], sizes = [16, 32], strides = [1, 1]} : vector<16x128xf32> to vector<16x32xf32>
    %cst_19 = arith.constant dense<0.000000e+00> : vector<16x16xf32>
    %32 = tpu.matmul %30, %31, %cst_19 {dimension_numbers = #tpu.dot_dimension_numbers<[1], [1], [0], [0], [0, 0, 1, 0], [], []>} : vector<16x32xf32>, vector<16x32xf32>, vector<16x16xf32> -> vector<16x16xf32>
    %33 = arith.addf %32, %27 : vector<16x16xf32>
    %cst_20 = arith.constant dense<0xFF800000> : vector<16xf32>
    %34 = vector.multi_reduction <maximumf>, %33, %cst_20 [1] : vector<16x16xf32> to vector<16xf32>
    %35 = vector.shape_cast %34 : vector<16xf32> to vector<16x1xf32>
    %36 = vector.broadcast %35 : vector<16x1xf32> to vector<16x16xf32>
    %37 = arith.subf %33, %36 : vector<16x16xf32>
    %38 = math.exp %37 : vector<16x16xf32>
    %cst_21 = arith.constant dense<0.000000e+00> : vector<16xf32>
    %39 = vector.multi_reduction <add>, %38, %cst_21 [1] : vector<16x16xf32> to vector<16xf32>
    %40 = vector.shape_cast %39 : vector<16xf32> to vector<16x1xf32>
    %41 = tpu.reciprocal %40 {approx = true} : vector<16x1xf32> -> vector<16x1xf32>
    %42 = vector.broadcast %41 : vector<16x1xf32> to vector<16x16xf32>
    %43 = arith.mulf %38, %42 : vector<16x16xf32>
    %44 = vector.extract_strided_slice %21 {offsets = [0, 0], sizes = [16, 32], strides = [1, 1]} : vector<16x128xf32> to vector<16x32xf32>
    %cst_22 = arith.constant dense<0.000000e+00> : vector<16x32xf32>
    %45 = tpu.matmul %43, %44, %cst_22 {dimension_numbers = #tpu.dot_dimension_numbers<[1], [0], [0], [1], [0, 0, 1, 1], [], []>} : vector<16x16xf32>, vector<16x32xf32>, vector<16x32xf32> -> vector<16x32xf32>
    %46 = vector.extract_strided_slice %19 {offsets = [0, 32], sizes = [16, 32], strides = [1, 1]} : vector<16x128xf32> to vector<16x32xf32>
    %cst_23 = arith.constant 0.176776692 : f32
    %47 = vector.broadcast %cst_23 : f32 to vector<16x32xf32>
    %48 = arith.mulf %46, %47 : vector<16x32xf32>
    %49 = vector.extract_strided_slice %20 {offsets = [0, 32], sizes = [16, 32], strides = [1, 1]} : vector<16x128xf32> to vector<16x32xf32>
    %cst_24 = arith.constant dense<0.000000e+00> : vector<16x16xf32>
    %50 = tpu.matmul %48, %49, %cst_24 {dimension_numbers = #tpu.dot_dimension_numbers<[1], [1], [0], [0], [0, 0, 1, 0], [], []>} : vector<16x32xf32>, vector<16x32xf32>, vector<16x16xf32> -> vector<16x16xf32>
    %51 = arith.addf %50, %27 : vector<16x16xf32>
    %cst_25 = arith.constant dense<0xFF800000> : vector<16xf32>
    %52 = vector.multi_reduction <maximumf>, %51, %cst_25 [1] : vector<16x16xf32> to vector<16xf32>
    %53 = vector.shape_cast %52 : vector<16xf32> to vector<16x1xf32>
    %54 = vector.broadcast %53 : vector<16x1xf32> to vector<16x16xf32>
    %55 = arith.subf %51, %54 : vector<16x16xf32>
    %56 = math.exp %55 : vector<16x16xf32>
    %cst_26 = arith.constant dense<0.000000e+00> : vector<16xf32>
    %57 = vector.multi_reduction <add>, %56, %cst_26 [1] : vector<16x16xf32> to vector<16xf32>
    %58 = vector.shape_cast %57 : vector<16xf32> to vector<16x1xf32>
    %59 = tpu.reciprocal %58 {approx = true} : vector<16x1xf32> -> vector<16x1xf32>
    %60 = vector.broadcast %59 : vector<16x1xf32> to vector<16x16xf32>
    %61 = arith.mulf %56, %60 : vector<16x16xf32>
    %62 = vector.extract_strided_slice %21 {offsets = [0, 32], sizes = [16, 32], strides = [1, 1]} : vector<16x128xf32> to vector<16x32xf32>
    %cst_27 = arith.constant dense<0.000000e+00> : vector<16x32xf32>
    %63 = tpu.matmul %61, %62, %cst_27 {dimension_numbers = #tpu.dot_dimension_numbers<[1], [0], [0], [1], [0, 0, 1, 1], [], []>} : vector<16x16xf32>, vector<16x32xf32>, vector<16x32xf32> -> vector<16x32xf32>
    %64 = vector.extract_strided_slice %19 {offsets = [0, 64], sizes = [16, 32], strides = [1, 1]} : vector<16x128xf32> to vector<16x32xf32>
    %cst_28 = arith.constant 0.176776692 : f32
    %65 = vector.broadcast %cst_28 : f32 to vector<16x32xf32>
    %66 = arith.mulf %64, %65 : vector<16x32xf32>
    %67 = vector.extract_strided_slice %20 {offsets = [0, 64], sizes = [16, 32], strides = [1, 1]} : vector<16x128xf32> to vector<16x32xf32>
    %cst_29 = arith.constant dense<0.000000e+00> : vector<16x16xf32>
    %68 = tpu.matmul %66, %67, %cst_29 {dimension_numbers = #tpu.dot_dimension_numbers<[1], [1], [0], [0], [0, 0, 1, 0], [], []>} : vector<16x32xf32>, vector<16x32xf32>, vector<16x16xf32> -> vector<16x16xf32>
    %69 = arith.addf %68, %27 : vector<16x16xf32>
    %cst_30 = arith.constant dense<0xFF800000> : vector<16xf32>
    %70 = vector.multi_reduction <maximumf>, %69, %cst_30 [1] : vector<16x16xf32> to vector<16xf32>
    %71 = vector.shape_cast %70 : vector<16xf32> to vector<16x1xf32>
    %72 = vector.broadcast %71 : vector<16x1xf32> to vector<16x16xf32>
    %73 = arith.subf %69, %72 : vector<16x16xf32>
    %74 = math.exp %73 : vector<16x16xf32>
    %cst_31 = arith.constant dense<0.000000e+00> : vector<16xf32>
    %75 = vector.multi_reduction <add>, %74, %cst_31 [1] : vector<16x16xf32> to vector<16xf32>
    %76 = vector.shape_cast %75 : vector<16xf32> to vector<16x1xf32>
    %77 = tpu.reciprocal %76 {approx = true} : vector<16x1xf32> -> vector<16x1xf32>
    %78 = vector.broadcast %77 : vector<16x1xf32> to vector<16x16xf32>
    %79 = arith.mulf %74, %78 : vector<16x16xf32>
    %80 = vector.extract_strided_slice %21 {offsets = [0, 64], sizes = [16, 32], strides = [1, 1]} : vector<16x128xf32> to vector<16x32xf32>
    %cst_32 = arith.constant dense<0.000000e+00> : vector<16x32xf32>
    %81 = tpu.matmul %79, %80, %cst_32 {dimension_numbers = #tpu.dot_dimension_numbers<[1], [0], [0], [1], [0, 0, 1, 1], [], []>} : vector<16x16xf32>, vector<16x32xf32>, vector<16x32xf32> -> vector<16x32xf32>
    %82 = vector.extract_strided_slice %19 {offsets = [0, 96], sizes = [16, 32], strides = [1, 1]} : vector<16x128xf32> to vector<16x32xf32>
    %cst_33 = arith.constant 0.176776692 : f32
    %83 = vector.broadcast %cst_33 : f32 to vector<16x32xf32>
    %84 = arith.mulf %82, %83 : vector<16x32xf32>
    %85 = vector.extract_strided_slice %20 {offsets = [0, 96], sizes = [16, 32], strides = [1, 1]} : vector<16x128xf32> to vector<16x32xf32>
    %cst_34 = arith.constant dense<0.000000e+00> : vector<16x16xf32>
    %86 = tpu.matmul %84, %85, %cst_34 {dimension_numbers = #tpu.dot_dimension_numbers<[1], [1], [0], [0], [0, 0, 1, 0], [], []>} : vector<16x32xf32>, vector<16x32xf32>, vector<16x16xf32> -> vector<16x16xf32>
    %87 = arith.addf %86, %27 : vector<16x16xf32>
    %cst_35 = arith.constant dense<0xFF800000> : vector<16xf32>
    %88 = vector.multi_reduction <maximumf>, %87, %cst_35 [1] : vector<16x16xf32> to vector<16xf32>
    %89 = vector.shape_cast %88 : vector<16xf32> to vector<16x1xf32>
    %90 = vector.broadcast %89 : vector<16x1xf32> to vector<16x16xf32>
    %91 = arith.subf %87, %90 : vector<16x16xf32>
    %92 = math.exp %91 : vector<16x16xf32>
    %cst_36 = arith.constant dense<0.000000e+00> : vector<16xf32>
    %93 = vector.multi_reduction <add>, %92, %cst_36 [1] : vector<16x16xf32> to vector<16xf32>
    %94 = vector.shape_cast %93 : vector<16xf32> to vector<16x1xf32>
    %95 = tpu.reciprocal %94 {approx = true} : vector<16x1xf32> -> vector<16x1xf32>
    %96 = vector.broadcast %95 : vector<16x1xf32> to vector<16x16xf32>
    %97 = arith.mulf %92, %96 : vector<16x16xf32>
    %98 = vector.extract_strided_slice %21 {offsets = [0, 96], sizes = [16, 32], strides = [1, 1]} : vector<16x128xf32> to vector<16x32xf32>
    %cst_37 = arith.constant dense<0.000000e+00> : vector<16x32xf32>
    %99 = tpu.matmul %97, %98, %cst_37 {dimension_numbers = #tpu.dot_dimension_numbers<[1], [0], [0], [1], [0, 0, 1, 1], [], []>} : vector<16x16xf32>, vector<16x32xf32>, vector<16x32xf32> -> vector<16x32xf32>
    %100 = tpu.concatenate %45, %63, %81, %99 in 1 : vector<16x32xf32>, vector<16x32xf32>, vector<16x32xf32>, vector<16x32xf32> -> vector<16x128xf32>
    %c0_38 = arith.constant 0 : index
    %c0_39 = arith.constant 0 : index
    %c0_40 = arith.constant 0 : index
    %101 = vector.load %arg7[%c0_38, %c0_39, %c0_40] : memref<1x128x128xf32, #tpu.memory_space<vmem>>, vector<1x128x128xf32>
    %102 = vector.shape_cast %101 : vector<1x128x128xf32> to vector<128x128xf32>
    %cst_41 = arith.constant dense<0.000000e+00> : vector<16x128xf32>
    %103 = tpu.matmul %100, %102, %cst_41 {dimension_numbers = #tpu.dot_dimension_numbers<[1], [0], [0], [1], [0, 0, 1, 1], [], []>} : vector<16x128xf32>, vector<128x128xf32>, vector<16x128xf32> -> vector<16x128xf32>
    %c0_42 = arith.constant 0 : index
    %c0_43 = arith.constant 0 : index
    %c0_44 = arith.constant 0 : index
    %104 = vector.load %arg8[%c0_42, %c0_43, %c0_44] : memref<1x1x128xf32, #tpu.memory_space<vmem>>, vector<1x1x128xf32>
    %105 = vector.shape_cast %104 : vector<1x1x128xf32> to vector<1x128xf32>
    %106 = vector.broadcast %105 : vector<1x128xf32> to vector<16x128xf32>
    %107 = arith.addf %103, %106 : vector<16x128xf32>
    %108 = arith.addf %3, %107 : vector<16x128xf32>
    %c0_45 = arith.constant 0 : index
    %c0_46 = arith.constant 0 : index
    %c0_47 = arith.constant 0 : index
    %109 = vector.load %arg9[%c0_45, %c0_46, %c0_47] : memref<1x1x128xf32, #tpu.memory_space<vmem>>, vector<1x1x128xf32>
    %110 = vector.shape_cast %109 : vector<1x1x128xf32> to vector<1x128xf32>
    %c0_48 = arith.constant 0 : index
    %c0_49 = arith.constant 0 : index
    %c0_50 = arith.constant 0 : index
    %111 = vector.load %arg10[%c0_48, %c0_49, %c0_50] : memref<1x1x128xf32, #tpu.memory_space<vmem>>, vector<1x1x128xf32>
    %112 = vector.shape_cast %111 : vector<1x1x128xf32> to vector<1x128xf32>
    %cst_51 = arith.constant dense<0.000000e+00> : vector<16xf32>
    %113 = vector.multi_reduction <add>, %108, %cst_51 [1] : vector<16x128xf32> to vector<16xf32>
    %114 = vector.shape_cast %113 : vector<16xf32> to vector<16x1xf32>
    %cst_52 = arith.constant 1.280000e+02 : f32
    %115 = vector.broadcast %cst_52 : f32 to vector<16x1xf32>
    %116 = arith.divf %114, %115 : vector<16x1xf32>
    %117 = vector.broadcast %116 : vector<16x1xf32> to vector<16x128xf32>
    %118 = arith.subf %108, %117 : vector<16x128xf32>
    %119 = arith.mulf %118, %118 : vector<16x128xf32>
    %cst_53 = arith.constant dense<0.000000e+00> : vector<16xf32>
    %120 = vector.multi_reduction <add>, %119, %cst_53 [1] : vector<16x128xf32> to vector<16xf32>
    %121 = vector.shape_cast %120 : vector<16xf32> to vector<16x1xf32>
    %cst_54 = arith.constant 1.280000e+02 : f32
    %122 = vector.broadcast %cst_54 : f32 to vector<16x1xf32>
    %123 = arith.divf %121, %122 : vector<16x1xf32>
    %cst_55 = arith.constant 9.99999974E-6 : f32
    %124 = vector.broadcast %cst_55 : f32 to vector<16x1xf32>
    %125 = arith.addf %123, %124 : vector<16x1xf32>
    %126 = math.rsqrt %125 : vector<16x1xf32>
    %127 = vector.broadcast %126 : vector<16x1xf32> to vector<16x128xf32>
    %128 = arith.mulf %118, %127 : vector<16x128xf32>
    %129 = vector.broadcast %110 : vector<1x128xf32> to vector<16x128xf32>
    %130 = arith.mulf %128, %129 : vector<16x128xf32>
    %131 = vector.broadcast %112 : vector<1x128xf32> to vector<16x128xf32>
    %132 = arith.addf %130, %131 : vector<16x128xf32>
    %c0_56 = arith.constant 0 : index
    %c0_57 = arith.constant 0 : index
    %c0_58 = arith.constant 0 : index
    %133 = vector.load %arg11[%c0_56, %c0_57, %c0_58] : memref<1x128x128xf32, #tpu.memory_space<vmem>>, vector<1x128x128xf32>
    %134 = vector.shape_cast %133 : vector<1x128x128xf32> to vector<128x128xf32>
    %cst_59 = arith.constant dense<0.000000e+00> : vector<16x128xf32>
    %135 = tpu.matmul %132, %134, %cst_59 {dimension_numbers = #tpu.dot_dimension_numbers<[1], [0], [0], [1], [0, 0, 1, 1], [], []>} : vector<16x128xf32>, vector<128x128xf32>, vector<16x128xf32> -> vector<16x128xf32>
    %c0_60 = arith.constant 0 : index
    %c0_61 = arith.constant 0 : index
    %c0_62 = arith.constant 0 : index
    %136 = vector.load %arg12[%c0_60, %c0_61, %c0_62] : memref<1x1x128xf32, #tpu.memory_space<vmem>>, vector<1x1x128xf32>
    %137 = vector.shape_cast %136 : vector<1x1x128xf32> to vector<1x128xf32>
    %138 = vector.broadcast %137 : vector<1x128xf32> to vector<16x128xf32>
    %139 = arith.addf %135, %138 : vector<16x128xf32>
    %c0_63 = arith.constant 0 : index
    %c0_64 = arith.constant 0 : index
    %c0_65 = arith.constant 0 : index
    %140 = vector.load %arg13[%c0_63, %c0_64, %c0_65] : memref<1x128x256xf32, #tpu.memory_space<vmem>>, vector<1x128x256xf32>
    %141 = vector.shape_cast %140 : vector<1x128x256xf32> to vector<128x256xf32>
    %cst_66 = arith.constant dense<0.000000e+00> : vector<8x256xf32>
    %142 = tpu.matmul %5, %141, %cst_66 {dimension_numbers = #tpu.dot_dimension_numbers<[1], [0], [0], [1], [0, 0, 1, 1], [], []>} : vector<8x128xf32>, vector<128x256xf32>, vector<8x256xf32> -> vector<8x256xf32>
    %c0_67 = arith.constant 0 : index
    %c0_68 = arith.constant 0 : index
    %c0_69 = arith.constant 0 : index
    %143 = vector.load %arg14[%c0_67, %c0_68, %c0_69] : memref<1x1x256xf32, #tpu.memory_space<vmem>>, vector<1x1x256xf32>
    %144 = vector.shape_cast %143 : vector<1x1x256xf32> to vector<1x256xf32>
    %145 = vector.broadcast %144 : vector<1x256xf32> to vector<8x256xf32>
    %146 = arith.addf %142, %145 : vector<8x256xf32>
    %147 = vector.extract_strided_slice %146 {offsets = [0, 0], sizes = [8, 128], strides = [1, 1]} : vector<8x256xf32> to vector<8x128xf32>
    %148 = vector.extract_strided_slice %146 {offsets = [0, 128], sizes = [8, 128], strides = [1, 1]} : vector<8x256xf32> to vector<8x128xf32>
    %149 = vector.extract_strided_slice %139 {offsets = [0, 0], sizes = [16, 32], strides = [1, 1]} : vector<16x128xf32> to vector<16x32xf32>
    %cst_70 = arith.constant 0.176776692 : f32
    %150 = vector.broadcast %cst_70 : f32 to vector<16x32xf32>
    %151 = arith.mulf %149, %150 : vector<16x32xf32>
    %152 = vector.extract_strided_slice %147 {offsets = [0, 0], sizes = [8, 32], strides = [1, 1]} : vector<8x128xf32> to vector<8x32xf32>
    %cst_71 = arith.constant dense<0.000000e+00> : vector<16x8xf32>
    %153 = tpu.matmul %151, %152, %cst_71 {dimension_numbers = #tpu.dot_dimension_numbers<[1], [1], [0], [0], [0, 0, 1, 0], [], []>} : vector<16x32xf32>, vector<8x32xf32>, vector<16x8xf32> -> vector<16x8xf32>
    %154 = vector.broadcast %11 : vector<1x8xf32> to vector<16x8xf32>
    %155 = arith.addf %153, %154 : vector<16x8xf32>
    %cst_72 = arith.constant dense<0xFF800000> : vector<16xf32>
    %156 = vector.multi_reduction <maximumf>, %155, %cst_72 [1] : vector<16x8xf32> to vector<16xf32>
    %157 = vector.shape_cast %156 : vector<16xf32> to vector<16x1xf32>
    %158 = vector.broadcast %157 : vector<16x1xf32> to vector<16x8xf32>
    %159 = arith.subf %155, %158 : vector<16x8xf32>
    %160 = math.exp %159 : vector<16x8xf32>
    %cst_73 = arith.constant dense<0.000000e+00> : vector<16xf32>
    %161 = vector.multi_reduction <add>, %160, %cst_73 [1] : vector<16x8xf32> to vector<16xf32>
    %162 = vector.shape_cast %161 : vector<16xf32> to vector<16x1xf32>
    %163 = tpu.reciprocal %162 {approx = true} : vector<16x1xf32> -> vector<16x1xf32>
    %164 = vector.broadcast %163 : vector<16x1xf32> to vector<16x8xf32>
    %165 = arith.mulf %160, %164 : vector<16x8xf32>
    %166 = vector.extract_strided_slice %148 {offsets = [0, 0], sizes = [8, 32], strides = [1, 1]} : vector<8x128xf32> to vector<8x32xf32>
    %cst_74 = arith.constant dense<0.000000e+00> : vector<16x32xf32>
    %167 = tpu.matmul %165, %166, %cst_74 {dimension_numbers = #tpu.dot_dimension_numbers<[1], [0], [0], [1], [0, 0, 1, 1], [], []>} : vector<16x8xf32>, vector<8x32xf32>, vector<16x32xf32> -> vector<16x32xf32>
    %168 = vector.extract_strided_slice %139 {offsets = [0, 32], sizes = [16, 32], strides = [1, 1]} : vector<16x128xf32> to vector<16x32xf32>
    %cst_75 = arith.constant 0.176776692 : f32
    %169 = vector.broadcast %cst_75 : f32 to vector<16x32xf32>
    %170 = arith.mulf %168, %169 : vector<16x32xf32>
    %171 = vector.extract_strided_slice %147 {offsets = [0, 32], sizes = [8, 32], strides = [1, 1]} : vector<8x128xf32> to vector<8x32xf32>
    %cst_76 = arith.constant dense<0.000000e+00> : vector<16x8xf32>
    %172 = tpu.matmul %170, %171, %cst_76 {dimension_numbers = #tpu.dot_dimension_numbers<[1], [1], [0], [0], [0, 0, 1, 0], [], []>} : vector<16x32xf32>, vector<8x32xf32>, vector<16x8xf32> -> vector<16x8xf32>
    %173 = vector.broadcast %11 : vector<1x8xf32> to vector<16x8xf32>
    %174 = arith.addf %172, %173 : vector<16x8xf32>
    %cst_77 = arith.constant dense<0xFF800000> : vector<16xf32>
    %175 = vector.multi_reduction <maximumf>, %174, %cst_77 [1] : vector<16x8xf32> to vector<16xf32>
    %176 = vector.shape_cast %175 : vector<16xf32> to vector<16x1xf32>
    %177 = vector.broadcast %176 : vector<16x1xf32> to vector<16x8xf32>
    %178 = arith.subf %174, %177 : vector<16x8xf32>
    %179 = math.exp %178 : vector<16x8xf32>
    %cst_78 = arith.constant dense<0.000000e+00> : vector<16xf32>
    %180 = vector.multi_reduction <add>, %179, %cst_78 [1] : vector<16x8xf32> to vector<16xf32>
    %181 = vector.shape_cast %180 : vector<16xf32> to vector<16x1xf32>
    %182 = tpu.reciprocal %181 {approx = true} : vector<16x1xf32> -> vector<16x1xf32>
    %183 = vector.broadcast %182 : vector<16x1xf32> to vector<16x8xf32>
    %184 = arith.mulf %179, %183 : vector<16x8xf32>
    %185 = vector.extract_strided_slice %148 {offsets = [0, 32], sizes = [8, 32], strides = [1, 1]} : vector<8x128xf32> to vector<8x32xf32>
    %cst_79 = arith.constant dense<0.000000e+00> : vector<16x32xf32>
    %186 = tpu.matmul %184, %185, %cst_79 {dimension_numbers = #tpu.dot_dimension_numbers<[1], [0], [0], [1], [0, 0, 1, 1], [], []>} : vector<16x8xf32>, vector<8x32xf32>, vector<16x32xf32> -> vector<16x32xf32>
    %187 = vector.extract_strided_slice %139 {offsets = [0, 64], sizes = [16, 32], strides = [1, 1]} : vector<16x128xf32> to vector<16x32xf32>
    %cst_80 = arith.constant 0.176776692 : f32
    %188 = vector.broadcast %cst_80 : f32 to vector<16x32xf32>
    %189 = arith.mulf %187, %188 : vector<16x32xf32>
    %190 = vector.extract_strided_slice %147 {offsets = [0, 64], sizes = [8, 32], strides = [1, 1]} : vector<8x128xf32> to vector<8x32xf32>
    %cst_81 = arith.constant dense<0.000000e+00> : vector<16x8xf32>
    %191 = tpu.matmul %189, %190, %cst_81 {dimension_numbers = #tpu.dot_dimension_numbers<[1], [1], [0], [0], [0, 0, 1, 0], [], []>} : vector<16x32xf32>, vector<8x32xf32>, vector<16x8xf32> -> vector<16x8xf32>
    %192 = vector.broadcast %11 : vector<1x8xf32> to vector<16x8xf32>
    %193 = arith.addf %191, %192 : vector<16x8xf32>
    %cst_82 = arith.constant dense<0xFF800000> : vector<16xf32>
    %194 = vector.multi_reduction <maximumf>, %193, %cst_82 [1] : vector<16x8xf32> to vector<16xf32>
    %195 = vector.shape_cast %194 : vector<16xf32> to vector<16x1xf32>
    %196 = vector.broadcast %195 : vector<16x1xf32> to vector<16x8xf32>
    %197 = arith.subf %193, %196 : vector<16x8xf32>
    %198 = math.exp %197 : vector<16x8xf32>
    %cst_83 = arith.constant dense<0.000000e+00> : vector<16xf32>
    %199 = vector.multi_reduction <add>, %198, %cst_83 [1] : vector<16x8xf32> to vector<16xf32>
    %200 = vector.shape_cast %199 : vector<16xf32> to vector<16x1xf32>
    %201 = tpu.reciprocal %200 {approx = true} : vector<16x1xf32> -> vector<16x1xf32>
    %202 = vector.broadcast %201 : vector<16x1xf32> to vector<16x8xf32>
    %203 = arith.mulf %198, %202 : vector<16x8xf32>
    %204 = vector.extract_strided_slice %148 {offsets = [0, 64], sizes = [8, 32], strides = [1, 1]} : vector<8x128xf32> to vector<8x32xf32>
    %cst_84 = arith.constant dense<0.000000e+00> : vector<16x32xf32>
    %205 = tpu.matmul %203, %204, %cst_84 {dimension_numbers = #tpu.dot_dimension_numbers<[1], [0], [0], [1], [0, 0, 1, 1], [], []>} : vector<16x8xf32>, vector<8x32xf32>, vector<16x32xf32> -> vector<16x32xf32>
    %206 = vector.extract_strided_slice %139 {offsets = [0, 96], sizes = [16, 32], strides = [1, 1]} : vector<16x128xf32> to vector<16x32xf32>
    %cst_85 = arith.constant 0.176776692 : f32
    %207 = vector.broadcast %cst_85 : f32 to vector<16x32xf32>
    %208 = arith.mulf %206, %207 : vector<16x32xf32>
    %209 = vector.extract_strided_slice %147 {offsets = [0, 96], sizes = [8, 32], strides = [1, 1]} : vector<8x128xf32> to vector<8x32xf32>
    %cst_86 = arith.constant dense<0.000000e+00> : vector<16x8xf32>
    %210 = tpu.matmul %208, %209, %cst_86 {dimension_numbers = #tpu.dot_dimension_numbers<[1], [1], [0], [0], [0, 0, 1, 0], [], []>} : vector<16x32xf32>, vector<8x32xf32>, vector<16x8xf32> -> vector<16x8xf32>
    %211 = vector.broadcast %11 : vector<1x8xf32> to vector<16x8xf32>
    %212 = arith.addf %210, %211 : vector<16x8xf32>
    %cst_87 = arith.constant dense<0xFF800000> : vector<16xf32>
    %213 = vector.multi_reduction <maximumf>, %212, %cst_87 [1] : vector<16x8xf32> to vector<16xf32>
    %214 = vector.shape_cast %213 : vector<16xf32> to vector<16x1xf32>
    %215 = vector.broadcast %214 : vector<16x1xf32> to vector<16x8xf32>
    %216 = arith.subf %212, %215 : vector<16x8xf32>
    %217 = math.exp %216 : vector<16x8xf32>
    %cst_88 = arith.constant dense<0.000000e+00> : vector<16xf32>
    %218 = vector.multi_reduction <add>, %217, %cst_88 [1] : vector<16x8xf32> to vector<16xf32>
    %219 = vector.shape_cast %218 : vector<16xf32> to vector<16x1xf32>
    %220 = tpu.reciprocal %219 {approx = true} : vector<16x1xf32> -> vector<16x1xf32>
    %221 = vector.broadcast %220 : vector<16x1xf32> to vector<16x8xf32>
    %222 = arith.mulf %217, %221 : vector<16x8xf32>
    %223 = vector.extract_strided_slice %148 {offsets = [0, 96], sizes = [8, 32], strides = [1, 1]} : vector<8x128xf32> to vector<8x32xf32>
    %cst_89 = arith.constant dense<0.000000e+00> : vector<16x32xf32>
    %224 = tpu.matmul %222, %223, %cst_89 {dimension_numbers = #tpu.dot_dimension_numbers<[1], [0], [0], [1], [0, 0, 1, 1], [], []>} : vector<16x8xf32>, vector<8x32xf32>, vector<16x32xf32> -> vector<16x32xf32>
    %225 = tpu.concatenate %167, %186, %205, %224 in 1 : vector<16x32xf32>, vector<16x32xf32>, vector<16x32xf32>, vector<16x32xf32> -> vector<16x128xf32>
    %c0_90 = arith.constant 0 : index
    %c0_91 = arith.constant 0 : index
    %c0_92 = arith.constant 0 : index
    %226 = vector.load %arg15[%c0_90, %c0_91, %c0_92] : memref<1x128x128xf32, #tpu.memory_space<vmem>>, vector<1x128x128xf32>
    %227 = vector.shape_cast %226 : vector<1x128x128xf32> to vector<128x128xf32>
    %cst_93 = arith.constant dense<0.000000e+00> : vector<16x128xf32>
    %228 = tpu.matmul %225, %227, %cst_93 {dimension_numbers = #tpu.dot_dimension_numbers<[1], [0], [0], [1], [0, 0, 1, 1], [], []>} : vector<16x128xf32>, vector<128x128xf32>, vector<16x128xf32> -> vector<16x128xf32>
    %c0_94 = arith.constant 0 : index
    %c0_95 = arith.constant 0 : index
    %c0_96 = arith.constant 0 : index
    %229 = vector.load %arg16[%c0_94, %c0_95, %c0_96] : memref<1x1x128xf32, #tpu.memory_space<vmem>>, vector<1x1x128xf32>
    %230 = vector.shape_cast %229 : vector<1x1x128xf32> to vector<1x128xf32>
    %231 = vector.broadcast %230 : vector<1x128xf32> to vector<16x128xf32>
    %232 = arith.addf %228, %231 : vector<16x128xf32>
    %233 = arith.addf %132, %232 : vector<16x128xf32>
    %c0_97 = arith.constant 0 : index
    %c0_98 = arith.constant 0 : index
    %c0_99 = arith.constant 0 : index
    %234 = vector.load %arg17[%c0_97, %c0_98, %c0_99] : memref<1x1x128xf32, #tpu.memory_space<vmem>>, vector<1x1x128xf32>
    %235 = vector.shape_cast %234 : vector<1x1x128xf32> to vector<1x128xf32>
    %c0_100 = arith.constant 0 : index
    %c0_101 = arith.constant 0 : index
    %c0_102 = arith.constant 0 : index
    %236 = vector.load %arg18[%c0_100, %c0_101, %c0_102] : memref<1x1x128xf32, #tpu.memory_space<vmem>>, vector<1x1x128xf32>
    %237 = vector.shape_cast %236 : vector<1x1x128xf32> to vector<1x128xf32>
    %cst_103 = arith.constant dense<0.000000e+00> : vector<16xf32>
    %238 = vector.multi_reduction <add>, %233, %cst_103 [1] : vector<16x128xf32> to vector<16xf32>
    %239 = vector.shape_cast %238 : vector<16xf32> to vector<16x1xf32>
    %cst_104 = arith.constant 1.280000e+02 : f32
    %240 = vector.broadcast %cst_104 : f32 to vector<16x1xf32>
    %241 = arith.divf %239, %240 : vector<16x1xf32>
    %242 = vector.broadcast %241 : vector<16x1xf32> to vector<16x128xf32>
    %243 = arith.subf %233, %242 : vector<16x128xf32>
    %244 = arith.mulf %243, %243 : vector<16x128xf32>
    %cst_105 = arith.constant dense<0.000000e+00> : vector<16xf32>
    %245 = vector.multi_reduction <add>, %244, %cst_105 [1] : vector<16x128xf32> to vector<16xf32>
    %246 = vector.shape_cast %245 : vector<16xf32> to vector<16x1xf32>
    %cst_106 = arith.constant 1.280000e+02 : f32
    %247 = vector.broadcast %cst_106 : f32 to vector<16x1xf32>
    %248 = arith.divf %246, %247 : vector<16x1xf32>
    %cst_107 = arith.constant 9.99999974E-6 : f32
    %249 = vector.broadcast %cst_107 : f32 to vector<16x1xf32>
    %250 = arith.addf %248, %249 : vector<16x1xf32>
    %251 = math.rsqrt %250 : vector<16x1xf32>
    %252 = vector.broadcast %251 : vector<16x1xf32> to vector<16x128xf32>
    %253 = arith.mulf %243, %252 : vector<16x128xf32>
    %254 = vector.broadcast %235 : vector<1x128xf32> to vector<16x128xf32>
    %255 = arith.mulf %253, %254 : vector<16x128xf32>
    %256 = vector.broadcast %237 : vector<1x128xf32> to vector<16x128xf32>
    %257 = arith.addf %255, %256 : vector<16x128xf32>
    %c0_108 = arith.constant 0 : index
    %c0_109 = arith.constant 0 : index
    %c0_110 = arith.constant 0 : index
    %258 = vector.load %arg19[%c0_108, %c0_109, %c0_110] : memref<1x128x256xf32, #tpu.memory_space<vmem>>, vector<1x128x256xf32>
    %259 = vector.shape_cast %258 : vector<1x128x256xf32> to vector<128x256xf32>
    %cst_111 = arith.constant dense<0.000000e+00> : vector<16x256xf32>
    %260 = tpu.matmul %257, %259, %cst_111 {dimension_numbers = #tpu.dot_dimension_numbers<[1], [0], [0], [1], [0, 0, 1, 1], [], []>} : vector<16x128xf32>, vector<128x256xf32>, vector<16x256xf32> -> vector<16x256xf32>
    %c0_112 = arith.constant 0 : index
    %c0_113 = arith.constant 0 : index
    %c0_114 = arith.constant 0 : index
    %261 = vector.load %arg20[%c0_112, %c0_113, %c0_114] : memref<1x1x256xf32, #tpu.memory_space<vmem>>, vector<1x1x256xf32>
    %262 = vector.shape_cast %261 : vector<1x1x256xf32> to vector<1x256xf32>
    %263 = vector.broadcast %262 : vector<1x256xf32> to vector<16x256xf32>
    %264 = arith.addf %260, %263 : vector<16x256xf32>
    %cst_115 = arith.constant 5.000000e-01 : f32
    %265 = vector.broadcast %cst_115 : f32 to vector<16x256xf32>
    %266 = arith.mulf %265, %264 : vector<16x256xf32>
    %cst_116 = arith.constant 4.471500e-02 : f32
    %267 = vector.broadcast %cst_116 : f32 to vector<16x256xf32>
    %268 = arith.mulf %267, %264 : vector<16x256xf32>
    %269 = arith.mulf %268, %264 : vector<16x256xf32>
    %270 = arith.mulf %269, %264 : vector<16x256xf32>
    %271 = arith.addf %264, %270 : vector<16x256xf32>
    %cst_117 = arith.constant 0.797884583 : f32
    %272 = vector.broadcast %cst_117 : f32 to vector<16x256xf32>
    %273 = arith.mulf %272, %271 : vector<16x256xf32>
    %274 = math.tanh %273 : vector<16x256xf32>
    %cst_118 = arith.constant 1.000000e+00 : f32
    %275 = vector.broadcast %cst_118 : f32 to vector<16x256xf32>
    %276 = arith.addf %275, %274 : vector<16x256xf32>
    %277 = arith.mulf %266, %276 : vector<16x256xf32>
    %c0_119 = arith.constant 0 : index
    %c0_120 = arith.constant 0 : index
    %c0_121 = arith.constant 0 : index
    %278 = vector.load %arg21[%c0_119, %c0_120, %c0_121] : memref<1x256x128xf32, #tpu.memory_space<vmem>>, vector<1x256x128xf32>
    %279 = vector.shape_cast %278 : vector<1x256x128xf32> to vector<256x128xf32>
    %cst_122 = arith.constant dense<0.000000e+00> : vector<16x128xf32>
    %280 = tpu.matmul %277, %279, %cst_122 {dimension_numbers = #tpu.dot_dimension_numbers<[1], [0], [0], [1], [0, 0, 1, 1], [], []>} : vector<16x256xf32>, vector<256x128xf32>, vector<16x128xf32> -> vector<16x128xf32>
    %c0_123 = arith.constant 0 : index
    %c0_124 = arith.constant 0 : index
    %c0_125 = arith.constant 0 : index
    %281 = vector.load %arg22[%c0_123, %c0_124, %c0_125] : memref<1x1x128xf32, #tpu.memory_space<vmem>>, vector<1x1x128xf32>
    %282 = vector.shape_cast %281 : vector<1x1x128xf32> to vector<1x128xf32>
    %283 = vector.broadcast %282 : vector<1x128xf32> to vector<16x128xf32>
    %284 = arith.addf %280, %283 : vector<16x128xf32>
    %285 = arith.addf %257, %284 : vector<16x128xf32>
    %c0_126 = arith.constant 0 : index
    %c0_127 = arith.constant 0 : index
    %c0_128 = arith.constant 0 : index
    %286 = vector.load %arg23[%c0_126, %c0_127, %c0_128] : memref<1x1x128xf32, #tpu.memory_space<vmem>>, vector<1x1x128xf32>
    %287 = vector.shape_cast %286 : vector<1x1x128xf32> to vector<1x128xf32>
    %c0_129 = arith.constant 0 : index
    %c0_130 = arith.constant 0 : index
    %c0_131 = arith.constant 0 : index
    %288 = vector.load %arg24[%c0_129, %c0_130, %c0_131] : memref<1x1x128xf32, #tpu.memory_space<vmem>>, vector<1x1x128xf32>
    %289 = vector.shape_cast %288 : vector<1x1x128xf32> to vector<1x128xf32>
    %cst_132 = arith.constant dense<0.000000e+00> : vector<16xf32>
    %290 = vector.multi_reduction <add>, %285, %cst_132 [1] : vector<16x128xf32> to vector<16xf32>
    %291 = vector.shape_cast %290 : vector<16xf32> to vector<16x1xf32>
    %cst_133 = arith.constant 1.280000e+02 : f32
    %292 = vector.broadcast %cst_133 : f32 to vector<16x1xf32>
    %293 = arith.divf %291, %292 : vector<16x1xf32>
    %294 = vector.broadcast %293 : vector<16x1xf32> to vector<16x128xf32>
    %295 = arith.subf %285, %294 : vector<16x128xf32>
    %296 = arith.mulf %295, %295 : vector<16x128xf32>
    %cst_134 = arith.constant dense<0.000000e+00> : vector<16xf32>
    %297 = vector.multi_reduction <add>, %296, %cst_134 [1] : vector<16x128xf32> to vector<16xf32>
    %298 = vector.shape_cast %297 : vector<16xf32> to vector<16x1xf32>
    %cst_135 = arith.constant 1.280000e+02 : f32
    %299 = vector.broadcast %cst_135 : f32 to vector<16x1xf32>
    %300 = arith.divf %298, %299 : vector<16x1xf32>
    %cst_136 = arith.constant 9.99999974E-6 : f32
    %301 = vector.broadcast %cst_136 : f32 to vector<16x1xf32>
    %302 = arith.addf %300, %301 : vector<16x1xf32>
    %303 = math.rsqrt %302 : vector<16x1xf32>
    %304 = vector.broadcast %303 : vector<16x1xf32> to vector<16x128xf32>
    %305 = arith.mulf %295, %304 : vector<16x128xf32>
    %306 = vector.broadcast %287 : vector<1x128xf32> to vector<16x128xf32>
    %307 = arith.mulf %305, %306 : vector<16x128xf32>
    %308 = vector.broadcast %289 : vector<1x128xf32> to vector<16x128xf32>
    %309 = arith.addf %307, %308 : vector<16x128xf32>
    %c0_137 = arith.constant 0 : index
    %c0_138 = arith.constant 0 : index
    %310 = vector.load %arg28[%c0_137, %c0_138] : memref<16x128xf32, #tpu.memory_space<vmem>>, vector<16x128xf32>
    tpu.vector_store %arg28[%c0_137, %c0_138], %309 {strides = array<i32>} : memref<16x128xf32, #tpu.memory_space<vmem>>, vector<16x128xf32>,
    %c1_i32 = arith.constant 1 : i32
    %311 = arith.cmpi eq, %arg1, %c1_i32 : i32
    %312 = arith.extui %311 : i1 to i32
    %c0_i32_139 = arith.constant 0 : i32
    %313 = arith.cmpi ne, %312, %c0_i32_139 : i32
    scf.if %313 {
      %c0_140 = arith.constant 0 : index
      %c0_141 = arith.constant 0 : index
      %314 = vector.load %arg25[%c0_140, %c0_141] : memref<16x128xf32, #tpu.memory_space<vmem>>, vector<16x128xf32>
      %315 = arith.mulf %309, %314 : vector<16x128xf32>
      %cst_142 = arith.constant dense<0.000000e+00> : vector<16xf32>
      %316 = vector.multi_reduction <add>, %315, %cst_142 [1] : vector<16x128xf32> to vector<16xf32>
      %317 = vector.shape_cast %316 : vector<16xf32> to vector<16x1xf32>
      %c0_143 = arith.constant 0 : index
      %c0_144 = arith.constant 0 : index
      %318 = vector.load %arg26[%c0_143, %c0_144] : memref<16x1xf32, #tpu.memory_space<vmem>>, vector<16x1xf32>
      %319 = arith.addf %317, %318 : vector<16x1xf32>
      %cst_145 = arith.constant 0.000000e+00 : f32
      %320 = vector.broadcast %cst_145 : f32 to vector<16x1xf32>
      %321 = arith.subf %320, %319 : vector<16x1xf32>
      %322 = math.exp %321 : vector<16x1xf32>
      %cst_146 = arith.constant 1.000000e+00 : f32
      %323 = vector.broadcast %cst_146 : f32 to vector<16x1xf32>
      %324 = arith.addf %323, %322 : vector<16x1xf32>
      %cst_147 = arith.constant 1.000000e+00 : f32
      %325 = vector.broadcast %cst_147 : f32 to vector<16x1xf32>
      %326 = arith.divf %325, %324 : vector<16x1xf32>
      %c0_148 = arith.constant 0 : index
      %c0_149 = arith.constant 0 : index
      %c0_150 = arith.constant 0 : index
      %327 = vector.load %arg27[%c0_148, %c0_149, %c0_150] : memref<1x16x1xf32, #tpu.memory_space<vmem>>, vector<1x16x1xf32>
      %328 = vector.shape_cast %327 : vector<1x16x1xf32> to vector<16x1xf32>
      %329 = vector.shape_cast %326 : vector<16x1xf32> to vector<1x16x1xf32>
      tpu.vector_store %arg27[%c0_148, %c0_149, %c0_150], %329 {strides = array<i32>} : memref<1x16x1xf32, #tpu.memory_space<vmem>>, vector<1x16x1xf32>,
    } else {
    }
    return
  }
  func.func @transform_0(%arg0: i32, %arg1: i32) -> (i32, i32) {
    %c0_i32 = arith.constant 0 : i32
    %c0_i32_0 = arith.constant 0 : i32
    %c0_i32_1 = arith.constant 0 : i32
    return %c0_i32, %c0_i32_0 : i32, i32
  }
  func.func @transform_1(%arg0: i32, %arg1: i32) -> (i32, i32, i32) {
    %c0_i32 = arith.constant 0 : i32
    %c0_i32_0 = arith.constant 0 : i32
    %c0_i32_1 = arith.constant 0 : i32
    return %arg0, %c0_i32, %c0_i32_0 : i32, i32, i32
  }
  func.func @transform_2(%arg0: i32, %arg1: i32) -> (i32, i32, i32) {
    %c0_i32 = arith.constant 0 : i32
    %c0_i32_0 = arith.constant 0 : i32
    %c0_i32_1 = arith.constant 0 : i32
    return %arg0, %c0_i32, %c0_i32_0 : i32, i32, i32
  }
  func.func @transform_3(%arg0: i32, %arg1: i32) -> (i32, i32, i32) {
    %c0_i32 = arith.constant 0 : i32
    %c0_i32_0 = arith.constant 0 : i32
    %c0_i32_1 = arith.constant 0 : i32
    return %arg1, %c0_i32, %c0_i32_0 : i32, i32, i32
  }
  func.func @transform_4(%arg0: i32, %arg1: i32) -> (i32, i32, i32) {
    %c0_i32 = arith.constant 0 : i32
    %c0_i32_0 = arith.constant 0 : i32
    %c0_i32_1 = arith.constant 0 : i32
    return %arg1, %c0_i32, %c0_i32_0 : i32, i32, i32
  }
  func.func @transform_5(%arg0: i32, %arg1: i32) -> (i32, i32, i32) {
    %c0_i32 = arith.constant 0 : i32
    %c0_i32_0 = arith.constant 0 : i32
    %c0_i32_1 = arith.constant 0 : i32
    return %arg1, %c0_i32, %c0_i32_0 : i32, i32, i32
  }
  func.func @transform_6(%arg0: i32, %arg1: i32) -> (i32, i32, i32) {
    %c0_i32 = arith.constant 0 : i32
    %c0_i32_0 = arith.constant 0 : i32
    %c0_i32_1 = arith.constant 0 : i32
    return %arg1, %c0_i32, %c0_i32_0 : i32, i32, i32
  }
  func.func @transform_7(%arg0: i32, %arg1: i32) -> (i32, i32, i32) {
    %c0_i32 = arith.constant 0 : i32
    %c0_i32_0 = arith.constant 0 : i32
    %c0_i32_1 = arith.constant 0 : i32
    return %arg1, %c0_i32, %c0_i32_0 : i32, i32, i32
  }
  func.func @transform_8(%arg0: i32, %arg1: i32) -> (i32, i32, i32) {
    %c0_i32 = arith.constant 0 : i32
    %c0_i32_0 = arith.constant 0 : i32
    %c0_i32_1 = arith.constant 0 : i32
    return %arg1, %c0_i32, %c0_i32_0 : i32, i32, i32
  }
  func.func @transform_9(%arg0: i32, %arg1: i32) -> (i32, i32, i32) {
    %c0_i32 = arith.constant 0 : i32
    %c0_i32_0 = arith.constant 0 : i32
    %c0_i32_1 = arith.constant 0 : i32
    return %arg1, %c0_i32, %c0_i32_0 : i32, i32, i32
  }
  func.func @transform_10(%arg0: i32, %arg1: i32) -> (i32, i32, i32) {
    %c0_i32 = arith.constant 0 : i32
    %c0_i32_0 = arith.constant 0 : i32
    %c0_i32_1 = arith.constant 0 : i32
    return %arg1, %c0_i32, %c0_i32_0 : i32, i32, i32
  }
  func.func @transform_11(%arg0: i32, %arg1: i32) -> (i32, i32, i32) {
    %c0_i32 = arith.constant 0 : i32
    %c0_i32_0 = arith.constant 0 : i32
    %c0_i32_1 = arith.constant 0 : i32
    return %arg1, %c0_i32, %c0_i32_0 : i32, i32, i32
  }
  func.func @transform_12(%arg0: i32, %arg1: i32) -> (i32, i32, i32) {
    %c0_i32 = arith.constant 0 : i32
    %c0_i32_0 = arith.constant 0 : i32
    %c0_i32_1 = arith.constant 0 : i32
    return %arg1, %c0_i32, %c0_i32_0 : i32, i32, i32
  }
  func.func @transform_13(%arg0: i32, %arg1: i32) -> (i32, i32, i32) {
    %c0_i32 = arith.constant 0 : i32
    %c0_i32_0 = arith.constant 0 : i32
    %c0_i32_1 = arith.constant 0 : i32
    return %arg1, %c0_i32, %c0_i32_0 : i32, i32, i32
  }
  func.func @transform_14(%arg0: i32, %arg1: i32) -> (i32, i32, i32) {
    %c0_i32 = arith.constant 0 : i32
    %c0_i32_0 = arith.constant 0 : i32
    %c0_i32_1 = arith.constant 0 : i32
    return %arg1, %c0_i32, %c0_i32_0 : i32, i32, i32
  }
  func.func @transform_15(%arg0: i32, %arg1: i32) -> (i32, i32, i32) {
    %c0_i32 = arith.constant 0 : i32
    %c0_i32_0 = arith.constant 0 : i32
    %c0_i32_1 = arith.constant 0 : i32
    return %arg1, %c0_i32, %c0_i32_0 : i32, i32, i32
  }
  func.func @transform_16(%arg0: i32, %arg1: i32) -> (i32, i32, i32) {
    %c0_i32 = arith.constant 0 : i32
    %c0_i32_0 = arith.constant 0 : i32
    %c0_i32_1 = arith.constant 0 : i32
    return %arg1, %c0_i32, %c0_i32_0 : i32, i32, i32
  }
  func.func @transform_17(%arg0: i32, %arg1: i32) -> (i32, i32, i32) {
    %c0_i32 = arith.constant 0 : i32
    %c0_i32_0 = arith.constant 0 : i32
    %c0_i32_1 = arith.constant 0 : i32
    return %arg1, %c0_i32, %c0_i32_0 : i32, i32, i32
  }
  func.func @transform_18(%arg0: i32, %arg1: i32) -> (i32, i32, i32) {
    %c0_i32 = arith.constant 0 : i32
    %c0_i32_0 = arith.constant 0 : i32
    %c0_i32_1 = arith.constant 0 : i32
    return %arg1, %c0_i32, %c0_i32_0 : i32, i32, i32
  }
  func.func @transform_19(%arg0: i32, %arg1: i32) -> (i32, i32, i32) {
    %c0_i32 = arith.constant 0 : i32
    %c0_i32_0 = arith.constant 0 : i32
    %c0_i32_1 = arith.constant 0 : i32
    return %arg1, %c0_i32, %c0_i32_0 : i32, i32, i32
  }
  func.func @transform_20(%arg0: i32, %arg1: i32) -> (i32, i32, i32) {
    %c0_i32 = arith.constant 0 : i32
    %c0_i32_0 = arith.constant 0 : i32
    %c0_i32_1 = arith.constant 0 : i32
    return %arg1, %c0_i32, %c0_i32_0 : i32, i32, i32
  }
  func.func @transform_21(%arg0: i32, %arg1: i32) -> (i32, i32, i32) {
    %c0_i32 = arith.constant 0 : i32
    %c0_i32_0 = arith.constant 0 : i32
    %c0_i32_1 = arith.constant 0 : i32
    return %arg1, %c0_i32, %c0_i32_0 : i32, i32, i32
  }
  func.func @transform_22(%arg0: i32, %arg1: i32) -> (i32, i32, i32) {
    %c0_i32 = arith.constant 0 : i32
    %c0_i32_0 = arith.constant 0 : i32
    %c0_i32_1 = arith.constant 0 : i32
    return %arg1, %c0_i32, %c0_i32_0 : i32, i32, i32
  }
  func.func @transform_23(%arg0: i32, %arg1: i32) -> (i32, i32) {
    %c0_i32 = arith.constant 0 : i32
    %c0_i32_0 = arith.constant 0 : i32
    %c0_i32_1 = arith.constant 0 : i32
    return %c0_i32, %c0_i32_0 : i32, i32
  }
  func.func @transform_24(%arg0: i32, %arg1: i32) -> (i32, i32) {
    %c0_i32 = arith.constant 0 : i32
    %c0_i32_0 = arith.constant 0 : i32
    %c0_i32_1 = arith.constant 0 : i32
    return %c0_i32, %c0_i32_0 : i32, i32
  }
  func.func @transform_25(%arg0: i32, %arg1: i32) -> (i32, i32, i32) {
    %c0_i32 = arith.constant 0 : i32
    %c0_i32_0 = arith.constant 0 : i32
    %c0_i32_1 = arith.constant 0 : i32
    return %arg0, %c0_i32, %c0_i32_0 : i32, i32, i32
  }
}

</mosaic_0001>

<bundles_post_ra>
// kernel: forward.2
= control target key start
LH: loop header
LB: loop body
LE: loop exit
PB: predicated region body
PF: predicated region fallthrough
CT: control target
= control target key end

     0   :  { %s2724_s0 = inlined_call_operand.vmem [shape: f32[2,8,128], index: 0, kind: input, shape index: {}]   ;;  %s2725_s1 = inlined_call_operand.vmem [shape: f32[2,1,8], index: 1, kind: input, shape index: {}]   ;;  %s2726_s2 = inlined_call_operand.vmem [shape: f32[1,128], index: 2, kind: input, shape index: {}]   ;;  %s2727_s3 = inlined_call_operand.vmem [shape: f32[1,128], index: 3, kind: input, shape index: {}]   ;;  %s2728_s4 = inlined_call_operand.hbm [shape: f32[2,128,384], index: 4, kind: input, shape index: {}]   ;;  %s2729_s5 = inlined_call_operand.vmem [shape: f32[2,1,384], index: 5, kind: input, shape index: {}]   ;;  %s2730_s6 = inlined_call_operand.hbm [shape: f32[2,128,128], index: 6, kind: input, shape index: {}]   ;;  %s2731_s7 = inlined_call_operand.vmem [shape: f32[2,1,128], index: 7, kind: input, shape index: {}]   ;;  %s2732_s8 = inlined_call_operand.vmem [shape: f32[2,1,128], index: 8, kind: input, shape index: {}]   ;;  %s2733_s9 = inlined_call_operand.vmem [shape: f32[2,1,128], index: 9, kind: input, shape index: {}]   ;;  %s2734_s10 = inlined_call_operand.hbm [shape: f32[2,128,256], index: 10, kind: input, shape index: {}]   ;;  %s2735_s11 = inlined_call_operand.vmem [shape: f32[2,1,256], index: 11, kind: input, shape index: {}]   ;;  %s2736_s12 = inlined_call_operand.hbm [shape: f32[2,256,128], index: 12, kind: input, shape index: {}]   ;;  %s2737_s13 = inlined_call_operand.vmem [shape: f32[2,1,128], index: 13, kind: input, shape index: {}]   ;;  %s2738_s14 = inlined_call_operand.vmem [shape: f32[2,1,128], index: 14, kind: input, shape index: {}]   ;;  %s2739_s15 = inlined_call_operand.vmem [shape: f32[2,1,128], index: 15, kind: input, shape index: {}]   ;;  %s2740_s16 = inlined_call_operand.vmem [shape: f32[2,8,128], index: 16, kind: output, shape index: {}]  }
   0x1   :  { %2751 = sst [smem:[#allocation21_spill]] %s2724_s0 }
   0x2   :  { %2752 = sst [smem:[#allocation22_spill]] %s2726_s2 }
   0x3   :  { %2753 = sst [smem:[#allocation23_spill]] %s2727_s3 }
   0x4   :  { %2754 = sst [smem:[#allocation24_spill]] %s2728_s4 }
   0x5   :  { %2755 = sst [smem:[#allocation25_spill]] %s2729_s5 }
   0x6   :  { %2756 = sst [smem:[#allocation26_spill]] %s2730_s6 }
   0x7   :  { %2757 = sst [smem:[#allocation27_spill]] %s2731_s7 }
   0x8   :  { %2758 = sst [smem:[#allocation28_spill]] %s2732_s8 }
   0x9   :  { %2759 = sst [smem:[#allocation29_spill]] %s2733_s9 }
   0xa   :  { %2760 = sst [smem:[#allocation30_spill]] %s2734_s10 }
   0xb   :  { %2761 = sst [smem:[#allocation31_spill]] %s2735_s11 }
   0xc   :  { %2762 = sst [smem:[#allocation32_spill]] %s2736_s12 }
   0xd   :  { %2763 = sst [smem:[#allocation33_spill]] %s2737_s13 }
   0xe   :  { %2764 = sst [smem:[#allocation34_spill]] %s2738_s14 }
   0xf   :  { %2765 = sst [smem:[#allocation35_spill]] %s2739_s15 }
  0x10   :  { %2766 = sst [smem:[#allocation36_spill]] %s2740_s16 }
  0x11   :  { %21 = vsyncpa [#allocation3], 0 }
  0x12   :  { %23 = vsyncpa [#allocation3 + $0x1], 0 }
  0x13   :  { %24 = vsyncpa [#allocation5], 0 }
  0x14   :  { %26 = vsyncpa [#allocation5 + $0x1], 0 }
  0x15   :  { %27 = vsyncpa [#allocation8], 0 }
  0x16   :  { %29 = vsyncpa [#allocation8 + $0x1], 0  ;;  %s2261_s21 = smov 0   ;;  %s2263_s22 = smov 0  }
  0x17   :  { %s2265_s23 = smov 0   ;;  %s2267_s24 = smov 0  }
  0x18   :  { %s2269_s25 = smov 0   ;;  %s2271_s26 = smov 0  }
  0x19   :  { %s2273_s27 = smov 0   ;;  %s2275_s28 = smov 0  }
  0x1a LB: > { %2767 = sst [smem:[#allocation12_spill]] %s2139_s22  ;;  %s2743_s29 = sadd.s32 4294967295, %s2163_s28   ;;  %s2163_s28 = sphi %s2275_s28, %s35_s28   ;;  %s2159_s27 = sphi %s2273_s27, %s2816_s27   ;;  %s2155_s26 = sphi %s2271_s26, %s2815_s26   ;;  %s2151_s25 = sphi %s2269_s25, %s2814_s25   ;;  %s2147_s24 = sphi %s2267_s24, %s2813_s24   ;;  %s2143_s23 = sphi %s2265_s23, %s2812_s23   ;;  %s2139_s22 = sphi %s2263_s22, %s2811_s22   ;;  %s2135_s21 = sphi %s2261_s21, %s2810_s21  }
  0x1b   : > { %2768 = sst [smem:[#allocation13_spill]] %s2143_s23  ;;  %s44_s30 = sadd.s32 1, %s2155_s26 }
  0x1c   : > { %2769 = sst [smem:[#allocation14_spill]] %s2155_s26  ;;  %p45_p0 = scmp.ge.s32.totalorder %s44_s30, 2 }
  0x1d   : > { %2770 = sst [smem:[#allocation15_spill]] %s2159_s27  ;;  %s47_s0 = sadd.s32 1, %s2159_s27 }
  0x1e   : > { %2771 = sst [smem:[#allocation16_spill]] %s2163_s28  ;;  %s148_s17 = sadd.s32 1, %s2143_s23 }
  0x1f   : > { %p155_p1 = scmp.ne.s32.totalorder %s2143_s23, %s2139_s22  ;;  %s2818_s30 = smov (%p45_p0, %s44_s30), 0 }
  0x20   : > { %2772 = sst [smem:[#allocation17_spill]] %s2818_s30  ;;  %s2820_s0 = smov (!%p45_p0, %s47_s0), %s2159_s27 }
  0x21   : > { %s145_s18 = ssub.s32 %s2155_s26, %s2818_s30  ;;  %p156_p2 = scmp.eq.s32.totalorder %s2163_s28, 0 }
  0x22   : > { %p49_p3 = scmp.ge.s32.totalorder %s2820_s0, 2  ;;  %p146_p4 = scmp.eq.s32.totalorder %s145_s18, 0 }
  0x23   : > { %p157_p5 = por %p156_p2, %p155_p1  ;;  %p161_p6 = scmp.ne.s32.totalorder %s2139_s22, %s2135_s21 }
  0x24   : > { %s2822_s0 = smov (%p49_p3, %s2820_s0), 0  ;;  %p162_p7 = scmp.eq.s32.totalorder %s2743_s29, 0 }
  0x25   : > { %2773 = sst [smem:[#allocation18_spill]] %s2822_s0  ;;  %p1855_p8 = scmp.lt.s32.totalorder %s2163_s28, 4 }
  0x26   : > { %s2315_s19 = scalar_select %p146_p4, %s2143_s23, %s148_s17  }
  0x27   : > { %s2321_s20 = sand.u32 1, %s2143_s23   ;;  %p2323_p9 = por %p162_p7, %p161_p6 }
  0x28   : > { %2774 = sst [smem:[#allocation19_spill]] %s2315_s19  ;;  %s545_s30 = sand.u32 1, %s2163_s28  }
  0x29   : > { %p2328_p10 = pnand %p1855_p8, %p157_p5  ;;  %s1796_s21 = sshll.u32 %s2321_s20, 7 }
  0x2a   : > { %s1827_s17 = sshll.u32 %s2155_s26, 7  ;;  %s2777_s6 = sld [smem:[#allocation26_spill]] }
  0x2b   : > { %s549_s23 = scalar_lea.vmem [#allocation4], %s1796_s21  ;;  %p1805_p11 = scmp.ge.s32.totalorder %s2163_s28, 1 }
  0x2c   : > { %s557_s3 = sshll.u32 %s549_s23, 4  ;;  %s2338_s16 = scalar_lea.sflag [#allocation5], %s545_s30  ;;  %s558_s3 = int_to_ptr.vmem [resolvable:$true] %s557_s3 }
  0x2d   : > { %s2745_s15 = smov 128   ;;  %s2746_s14 = smov 8  }
  0x2e   : > { %p652_p12 = scmp.lt.s32.totalorder %s2163_s28, 5  ;;  %s1830_s29 = smul.u32 384, %s2321_s20 }
  0x2f   : > { %s1831_s0 = smul.u32 384, %s2155_s26  ;;  %s2779_s4 = sld [smem:[#allocation24_spill]] }
  0x30   : > { %s554_s19 = scalar_lea.hbm %s2777_s6, %s1827_s17  ;;  %p2347_p13 = pnand %p1805_p11, %p652_p12 }
  0x31   : > { %s555_s2 = sshll.u32 %s554_s19, 4  ;;  %s520_s17 = scalar_lea.vmem [#allocation2], %s1830_s29  ;;  %s556_s2 = int_to_ptr.hbm [resolvable:$true] %s555_s2 }
  0x32   : > { %1848 = dma.hbm_to_vmem [thread:$0]  (!%p2328_p10), %s556_s2, 2048, %s558_s3, %s2338_s16, %s2745_s15, %s2745_s15, %s2746_s14  }
  0x33   : > { %s528_s6 = sshll.u32 %s520_s17, 4  ;;  %s1799_s2 = sshll.u32 %s2321_s20, 8  ;;  %s529_s6 = int_to_ptr.vmem [resolvable:$true] %s528_s6 }
  0x34   : > { %s517_s3 = scalar_lea.sflag [#allocation3], %s2321_s20  ;;  %s2167_s15 = smov 384  }
  0x35   : > { %s525_s21 = scalar_lea.hbm %s2779_s4, %s1831_s0  ;;  %s2168_s14 = smov 24  }
  0x36   : > { %s526_s11 = sshll.u32 %s525_s21, 4  ;;  %s1828_s13 = sshll.u32 %s2155_s26, 8  ;;  %s527_s11 = int_to_ptr.hbm [resolvable:$true] %s526_s11 }
  0x37   : > { %1845 = dma.hbm_to_vmem [thread:$0]  (!%p2328_p10), %s527_s11, 6144, %s529_s6, %s517_s3, %s2167_s15, %s2167_s15, %s2168_s14  }
  0x38   : > { %s2780_s10 = sld [smem:[#allocation30_spill]]  ;;  %s589_s29 = scalar_lea.vmem [#allocation6], %s1799_s2 }
  0x39   : > { %s597_s0 = sshll.u32 %s589_s29, 4  ;;  %s2169_s21 = smov 256   ;;  %s598_s0 = int_to_ptr.vmem [resolvable:$true] %s597_s0 }
  0x3a   : > { %s2170_s17 = smov 16   ;;  %s2781_s12 = sld [smem:[#allocation32_spill]] }
  0x3b   : > { %s618_s14 = scalar_lea.vmem [#allocation7], %s1799_s2  ;;  %s615_s5 = scalar_lea.sflag [#allocation8], %s2321_s20 }
  0x3c   : > { %s626_s15 = sshll.u32 %s618_s14, 4  ;;  %s2782_s9 = smov 8   ;;  %s627_s15 = int_to_ptr.vmem [resolvable:$true] %s626_s15 }
  0x3d   : > { %s2783_s3 = smov 128  }
  0x3e   : > { %s594_s19 = scalar_lea.hbm %s2780_s10, %s1828_s13 }
  0x3f   : > { %s595_s30 = sshll.u32 %s594_s19, 4  ;;  %656 = sbr.rel (%p2347_p13) target bundleno = 2639 (0xa4f), region = 84  ;;  %s596_s30 = int_to_ptr.hbm [resolvable:$true] %s595_s30 }
  0x40   : > { %1851 = dma.hbm_to_vmem [thread:$0]  (!%p2328_p10), %s596_s30, 4096, %s598_s0, %s2338_s16, %s2169_s21, %s2169_s21, %s2170_s17  }
  0x41   : > { %s623_s6 = scalar_lea.hbm %s2781_s12, %s1828_s13 }
  0x42   : > { %s624_s11 = sshll.u32 %s623_s6, 4  ;;  %s625_s11 = int_to_ptr.hbm [resolvable:$true] %s624_s11 }
  0x43   : > { %1854 = dma.hbm_to_vmem [thread:$0]  (!%p2328_p10), %s625_s11, 4096, %s627_s15, %s615_s5, %s2783_s3, %s2783_s3, %s2782_s9  }
  0x44   : > { %s658_s16 = sand.u32 1, %s2139_s22  }
  0x45   : > { %s1832_s19 = smul.u32 384, %s658_s16  ;;  %s659_s4 = scalar_lea.sflag [#allocation3], %s658_s16 }
  0x47   : > { %s2379_s8 = scalar_lea.vmem [#allocation2], %s1832_s19 }
  0x48   : > { %2122 = dma.done.wait (%p2323_p9), %s659_s4, 6144  }
  0x49   : > { %2124 = vsyncadd (%p2323_p9), %s659_s4, 4294961152  ;;  %s2784_s13 = sadd.s32 4294967295, %s2163_s28   ;;  %s1806_s18 = sshll.u32 %s658_s16, 7 }
  0x4a   : > { %s668_s20 = sand.u32 1, %s2784_s13   ;;  %s2387_s23 = scalar_lea.vmem [#allocation4], %s1806_s18 }
  0x4b   : > { %s669_s2 = scalar_lea.sflag [#allocation5], %s668_s20 }
  0x4c   : > { %2126 = dma.done.wait (%p2323_p9), %s669_s2, 6144  }
  0x4d   : > { %2128 = vsyncadd (%p2323_p9), %s669_s2, 4294961152  ;;  %s1807_s29 = sshll.u32 %s658_s16, 8  ;;  %s689_s30 = scalar_lea.sflag [#allocation8], %s658_s16 }
  0x4e   : > { %s2393_s0 = scalar_lea.vmem [#allocation6], %s1807_s29  ;;  %s2395_s21 = scalar_lea.vmem [#allocation7], %s1807_s29 }
  0x4f   : > { %2785 = sst [smem:[#allocation20_spill]] %s2395_s21 }
  0x50   : > { %2130 = dma.done.wait (%p2323_p9), %s689_s30, 4096  }
  0x51   : > { %2132 = vsyncadd (%p2323_p9), %s689_s30, 4294963200  ;;  %p789_p0 = scmp.lt.s32.totalorder %s2151_s25, 1  ;;  %p796_p1 = scmp.lt.s32.totalorder %s2147_s24, 1 }
  0x52   : > { %s2786_s9 = sld [smem:[#allocation21_spill]]  ;;  %p1812_p2 = scmp.ne.s32.totalorder %s2147_s24, 0 }
  0x53   : > { %s2824_s25 = smov (!%p789_p0, %s2151_s25), 1  ;;  %s2789_s12 = sld [smem:[#allocation25_spill]] }
  0x54   : > { %s2407_s17 = scalar_select %p796_p1, %s2147_s24, 1 }
  0x55   : > { %s1809_s27 = sshll.u32 %s2824_s25, 3  ;;  %s2791_s28 = sld [smem:[#allocation33_spill]] }
  0x56   : > { %s1833_s16 = smul.u32 3, %s2407_s17  ;;  %s1810_s15 = sshll.u32 %s2407_s17, 1 }
  0x57   : > { %s2792_s13 = sld [smem:[#allocation31_spill]] }
  0x58   : > { %s792_s3 = scalar_lea.vmem %s2786_s9, %s1809_s27  ;;  %s2793_s2 = sld [smem:[#allocation34_spill]] }
  0x59   : > { %s2429_s26 = scalar_lea.vmem %s2789_s12, %s1833_s16  ;;  %s2794_s30 = sld [smem:[#allocation35_spill]] }
  0x5a   : > { %s2795_s11 = sld [smem:[#allocation36_spill]] }
  0x5b   : > { %s815_s21 = scalar_lea.vmem %s2791_s28, %s2407_s17 }
  0x5c   : > { %829 = sbr.rel (%p1812_p2) target bundleno = 365 (0x16d), region = 104 }
  0x5d   : > { %s2443_s7 = scalar_lea.vmem %s2792_s13, %s1810_s15  ;;  %s2797_s15 = sld [smem:[#allocation23_spill]] (!%p1812_p2) }
  0x5e   : > { %s818_s10 = scalar_lea.vmem %s2793_s2, %s2407_s17 }
  0x5f   : > { %s821_s29 = scalar_lea.vmem %s2794_s30, %s2407_s17 }
  0x60   : > { %s2456_s22 = scalar_lea.vmem %s2795_s11, %s1809_s27  ;;  %s2796_s27 = sld [smem:[#allocation22_spill]] (!%p1812_p2) }
  0x61   : > { %v830_v0 = vld [vmem:[%s792_s3] sm:$0xff]  ;;  %v2171_v1 = vmov 128.0  }
  0x62   : > { %833 = vadd.xlane.f32.xlu0 %v830_v0  ;;  %1933 = vrcp.f32 %v2171_v1 }
  0x63   : > { %v1932_v23 = vld [vmem:[%s2797_s15] ss:$0 sm:$0xff] }
  0x66   : > { %v1931_v21 = vld [vmem:[%s2796_s27] ss:$0 sm:$0xff] }
  0x68   : > { %v1934_v2 = vpop.eup %1933 }
  0x69   : > { %v836_v3 = vmul.f32 128.0, %v1934_v2  ;;  %vm840_vm0 = vweird.f32 %v1934_v2 }
  0x6b   : > { %v837_v4 = vsub.f32 1.0, %v836_v3 }
  0x6d   : > { %v838_v5 = vmul.f32 %v1934_v2, %v837_v4 }
  0x6f   : > { %v839_v6 = vadd.f32 %v1934_v2, %v838_v5 }
  0x71   : > { %v841_v7 = vsel %vm840_vm0, %v1934_v2, %v839_v6 }
  0xd5   : > { %v834_v8 = vpop.xlane.xlu0 %833 }
  0xd6   : > { %v842_v9 = vmul.f32 %v841_v7, %v834_v8 }
  0xd8   : > { %v843_v10 = vsub.f32 %v830_v0, %v842_v9 }
  0xda   : > { %v844_v11 = vmul.f32 %v843_v10, %v843_v10 }
  0xdc   : > { %845 = vadd.xlane.f32.xlu0 %v844_v11 }
 0x14f   : > { %v846_v12 = vpop.xlane.xlu0 %845 }
 0x150   : > { %v847_v13 = vmul.f32 %v846_v12, %v841_v7 }
 0x152   : > { %v848_v14 = vadd.f32 1e-05, %v847_v13 }
 0x154   : > { %1935 = vrsqrt.f32 %v848_v14  ;;  %vm855_vm2 = vweird.f32 %v848_v14 }
 0x15a   : > { %v1936_v15 = vpop.eup %1935 }
 0x15b   : > { %v850_v16 = vmul.f32 %v1936_v15, %v848_v14  ;;  %vm856_vm1 = vweird.f32 %v1936_v15 }
 0x15c   : > { %vm857_vm3 = vmor %vm855_vm2, %vm856_vm1 }
 0x15d   : > { %v851_v17 = vmul.f32 %v1936_v15, %v850_v16 }
 0x15f   : > { %v852_v18 = vmul.f32 0.5, %v851_v17 }
 0x161   : > { %v853_v19 = vsub.f32 1.5, %v852_v18 }
 0x163   : > { %v854_v20 = vmul.f32 %v1936_v15, %v853_v19 }
 0x165   : > { %v858_v22 = vsel %vm857_vm3, %v1936_v15, %v854_v20 }
 0x166   : > { %v859_v24 = vmul.f32 %v858_v22, %v843_v10 }
 0x168   : > { %v863_v25 = vmul.f32 %v1931_v21, %v859_v24 }
 0x16a   : > { %v867_v26 = vadd.f32 %v1932_v23, %v863_v25 }
 0x16c   : > { %868 = vst [vmem:[%s2456_s22] sm:$0xff] %v867_v26 }
 0x16d PF: > { %v919_v27 = vld [vmem:[%s2379_s8 + $0x170] sm:$0xff]  ;;  %v920_v28 = vld [vmem:[%s2379_s8 + $0x178] sm:$0xff]  ;;  %v918_v29 = vld [vmem:[%s2379_s8 + $0x168] sm:$0xff]  ;;  %vm993_vm4 = vcmask 261120   ;;  %s2174_s5 = smov 32   ;;  %s2798_s4 = scalar_lea.vmem %s2725_s1, %s2824_s25  ;;  %vm1020_vm5 = vcmask 64512  }
 0x16e   : > { %949 = vmatpush.msra.mxu1 %v919_v27  ;;  %969 = vmatpush.msra.mxu2 %v920_v28  ;;  %v916_v30 = vld [vmem:[%s2379_s8 + $0x158] sm:$0xff]  ;;  %v917_v31 = vld [vmem:[%s2379_s8 + $0x160] sm:$0xff]  ;;  %v915_v32 = vld [vmem:[%s2379_s8 + $0x150] sm:$0xff]  ;;  %vm1264_vm6 = vcmask 523264   ;;  %vm1266_vm7 = vcmask 785408   ;;  %s2799_s18 = sld [smem:[#allocation27_spill]] }
 0x16f   : > { %929 = vmatpush.msra.mxu0 %v918_v29  ;;  %v913_v33 = vld [vmem:[%s2379_s8 + $0x140] sm:$0xff]  ;;  %v914_v34 = vld [vmem:[%s2379_s8 + $0x148] sm:$0xff]  ;;  %v912_v35 = vld [vmem:[%s2379_s8 + $0x138] sm:$0xff]  ;;  %s2802_s16 = sld [smem:[#allocation28_spill]] }
 0x170   : > { %950 = vmatpush.msra.mxu1 %v916_v30  ;;  %970 = vmatpush.msra.mxu2 %v917_v31  ;;  %v910_v36 = vld [vmem:[%s2379_s8 + $0x128] sm:$0xff]  ;;  %v911_v37 = vld [vmem:[%s2379_s8 + $0x130] sm:$0xff]  ;;  %v909_v38 = vld [vmem:[%s2379_s8 + $0x120] sm:$0xff]  ;;  %s2804_s11 = sld [smem:[#allocation29_spill]] }
 0x171   : > { %930 = vmatpush.msra.mxu0 %v915_v32  ;;  %v907_v39 = vld [vmem:[%s2379_s8 + $0x110] sm:$0xff]  ;;  %v908_v40 = vld [vmem:[%s2379_s8 + $0x118] sm:$0xff]  ;;  %v906_v41 = vld [vmem:[%s2379_s8 + $0x108] sm:$0xff] }
 0x172   : > { %951 = vmatpush.msra.mxu1 %v913_v33  ;;  %971 = vmatpush.msra.mxu2 %v914_v34  ;;  %v904_v42 = vld [vmem:[%s2379_s8 + $0xf8] sm:$0xff]  ;;  %v905_v43 = vld [vmem:[%s2379_s8 + $0x100] sm:$0xff]  ;;  %v903_v44 = vld [vmem:[%s2379_s8 + $0xf0] sm:$0xff] }
 0x173   : > { %931 = vmatpush.msra.mxu0 %v912_v35  ;;  %v901_v45 = vld [vmem:[%s2379_s8 + $0xe0] sm:$0xff]  ;;  %v902_v46 = vld [vmem:[%s2379_s8 + $0xe8] sm:$0xff]  ;;  %v900_v47 = vld [vmem:[%s2379_s8 + $0xd8] sm:$0xff] }
 0x174   : > { %952 = vmatpush.msra.mxu1 %v910_v36  ;;  %972 = vmatpush.msra.mxu2 %v911_v37  ;;  %v898_v48 = vld [vmem:[%s2379_s8 + $0xc8] sm:$0xff]  ;;  %v899_v49 = vld [vmem:[%s2379_s8 + $0xd0] sm:$0xff]  ;;  %v897_v50 = vld [vmem:[%s2379_s8 + $0xc0] sm:$0xff]  ;;  %s2800_s2 = scalar_lea.vmem %s2799_s18, %s2407_s17 }
 0x175   : > { %932 = vmatpush.msra.mxu0 %v909_v38  ;;  %v895_v51 = vld [vmem:[%s2379_s8 + $0xb0] sm:$0xff]  ;;  %v896_v52 = vld [vmem:[%s2379_s8 + $0xb8] sm:$0xff]  ;;  %v894_v53 = vld [vmem:[%s2379_s8 + $0xa8] sm:$0xff]  ;;  %s2803_s30 = scalar_lea.vmem %s2802_s16, %s2407_s17 }
 0x176   : > { %953 = vmatpush.msra.mxu1 %v907_v39  ;;  %973 = vmatpush.msra.mxu2 %v908_v40  ;;  %v892_v54 = vld [vmem:[%s2379_s8 + $0x98] sm:$0xff]  ;;  %v893_v55 = vld [vmem:[%s2379_s8 + $0xa0] sm:$0xff]  ;;  %v891_v56 = vld [vmem:[%s2379_s8 + $0x90] sm:$0xff]  ;;  %s2805_s24 = scalar_lea.vmem %s2804_s11, %s2407_s17 }
 0x177   : > { %933 = vmatpush.msra.mxu0 %v906_v41  ;;  %v889_v57 = vld [vmem:[%s2379_s8 + $0x80] sm:$0xff]  ;;  %v890_v58 = vld [vmem:[%s2379_s8 + $0x88] sm:$0xff]  ;;  %v888_v59 = vld [vmem:[%s2379_s8 + $0x78] sm:$0xff] }
 0x178   : > { %954 = vmatpush.msra.mxu1 %v904_v42  ;;  %974 = vmatpush.msra.mxu2 %v905_v43  ;;  %v886_v60 = vld [vmem:[%s2379_s8 + $0x68] sm:$0xff]  ;;  %v887_v61 = vld [vmem:[%s2379_s8 + $0x70] sm:$0xff]  ;;  %v885_v62 = vld [vmem:[%s2379_s8 + $0x60] sm:$0xff] }
 0x179   : > { %934 = vmatpush.msra.mxu0 %v903_v44  ;;  %v883_v63 = vld [vmem:[%s2379_s8 + $0x50] sm:$0xff]  ;;  %v884_v0 = vld [vmem:[%s2379_s8 + $0x58] sm:$0xff]  ;;  %v882_v1 = vld [vmem:[%s2379_s8 + $0x48] sm:$0xff] }
 0x17a   : > { %955 = vmatpush.msra.mxu1 %v901_v45  ;;  %975 = vmatpush.msra.mxu2 %v902_v46  ;;  %v880_v2 = vld [vmem:[%s2379_s8 + $0x38] sm:$0xff]  ;;  %v881_v3 = vld [vmem:[%s2379_s8 + $0x40] sm:$0xff]  ;;  %v879_v4 = vld [vmem:[%s2379_s8 + $0x30] sm:$0xff] }
 0x17b   : > { %935 = vmatpush.msra.mxu0 %v900_v47  ;;  %v877_v5 = vld [vmem:[%s2379_s8 + $0x20] sm:$0xff]  ;;  %v878_v6 = vld [vmem:[%s2379_s8 + $0x28] sm:$0xff]  ;;  %v876_v7 = vld [vmem:[%s2379_s8 + $0x18] sm:$0xff] }
 0x17c   : > { %956 = vmatpush.msra.mxu1 %v898_v48  ;;  %976 = vmatpush.msra.mxu2 %v899_v49  ;;  %v874_v8 = vld [vmem:[%s2379_s8 + $0x8] sm:$0xff]  ;;  %v875_v9 = vld [vmem:[%s2379_s8 + $0x10] sm:$0xff]  ;;  %v873_v10 = vld [vmem:[%s2379_s8] sm:$0xff]  ;;  %s2172_s8 = smov 96  }
 0x17d   : > { %936 = vmatpush.msra.mxu0 %v897_v50  ;;  %v2515_v11 = vld [vmem:[%s2456_s22] sm:$0xff] }
 0x17e   : > { %957 = vmatpush.msra.mxu1 %v895_v51  ;;  %977 = vmatpush.msra.mxu2 %v896_v52  ;;  %v921_v12 = vld [vmem:[%s2429_s26] sm:$0x7]  ;;  %s2173_s26 = smov 64  }
 0x17f   : > { %937 = vmatpush.msra.mxu0 %v894_v53  ;;  %v924_v13 = vperm.slane %v921_v12, 1  ;;  %v923_v14 = vperm.slane %v921_v12, 0  ;;  %v925_v20 = vperm.slane %v921_v12, 2  ;;  %v870_v26 = vld [vmem:[%s2798_s4] sm:$0x1] }
 0x180   : > { %958 = vmatpush.msra.mxu1 %v892_v54  ;;  %978 = vmatpush.msra.mxu2 %v893_v55  ;;  %v871_v27 = vsub.f32 1.0, %v870_v26  ;;  %v1275_v26 = vld [vmem:[%s2387_s23 + $0x38] sm:$0xff] }
 0x181   : > { %938 = vmatpush.msra.mxu0 %v891_v56 }
 0x182   : > { %959 = vmatpush.msra.mxu1 %v889_v57  ;;  %979 = vmatpush.msra.mxu2 %v890_v58  ;;  %v872_v28 = vmul.f32 -1e+30, %v871_v27  ;;  %v1274_v27 = vld [vmem:[%s2387_s23 + $0x30] sm:$0xff] }
 0x183   : > { %939 = vmatpush.msra.mxu0 %v888_v59 }
 0x184   : > { %960 = vmatpush.msra.mxu1 %v886_v60  ;;  %980 = vmatpush.msra.mxu2 %v887_v61  ;;  %v991_v30 = vperm.slane %v872_v28, 0  ;;  %v1273_v28 = vld [vmem:[%s2387_s23 + $0x28] sm:$0xff] }
 0x185   : > { %940 = vmatpush.msra.mxu0 %v885_v62 }
 0x186   : > { %961 = vmatpush.msra.mxu1 %v883_v63  ;;  %981 = vmatpush.msra.mxu2 %v884_v0 }
 0x187   : > { %941 = vmatpush.msra.mxu0 %v882_v1 }
 0x188   : > { %962 = vmatpush.msra.mxu1 %v880_v2  ;;  %982 = vmatpush.msra.mxu2 %v881_v3 }
 0x189   : > { %942 = vmatpush.msra.mxu0 %v879_v4 }
 0x18a   : > { %963 = vmatpush.msra.mxu1 %v877_v5  ;;  %983 = vmatpush.msra.mxu2 %v878_v6 }
 0x18b   : > { %943 = vmatpush.msra.mxu0 %v876_v7 }
 0x18c   : > { %964 = vmatpush.msra.mxu1 %v874_v8  ;;  %984 = vmatpush.msra.mxu2 %v875_v9 }
 0x18d   : > { %944 = vmatpush.msra.mxu0 %v873_v10  ;;  %965 = vmatmul.f32.vlgmr.msra.gmra.mxu1 %v2515_v11 }
 0x18e   : > { %985 = vmatmul.f32.vlgmr.msra.gmra.mxu2 %v2515_v11  ;;  %945 = vmatmul.f32.vlgmr.msra.gmra.mxu0 %v2515_v11 }
 0x20a   : > { %v966_v15 = vpop.f32.mrf.mxu1 }
 0x20b   : > { %v967_v16 = vadd.f32 %v966_v15, %v924_v13  ;;  %v946_v17 = vpop.f32.mrf.mxu0 }
 0x20c   : > { %v947_v18 = vadd.f32 %v946_v17, %v923_v14 }
 0x20d   : > { %1057 = vrot.lane.b32.xlu0 %v967_v16, %s2172_s8  ;;  %1813 = vmatpush.xpose.msk.msrb.mxu0 %vm993_vm4, %v967_v16 }
 0x20e   : > { %v2523_v19 = vmul.f32 0.17677669, %v947_v18  ;;  %v1283_v18 = vld [vmem:[%s2387_s23 + $0x78] sm:$0xff] }
 0x210   : > { %1814 = vmatmul.msk.f32.vlgmr.msrb.gmra.mxu0 %vm993_vm4, %v2523_v19 }
 0x211   : > { %v986_v21 = vpop.f32.mrf.mxu2 }
 0x212   : > { %v2527_v22 = vadd.f32 %v986_v21, %v925_v20  ;;  %v1281_v20 = vld [vmem:[%s2387_s23 + $0x68] sm:$0xff]  ;;  %v1280_v21 = vld [vmem:[%s2387_s23 + $0x60] sm:$0xff] }
 0x214   : > { %1095 = vrot.lane.b32.xlu2 %v2527_v22, %s2172_s8  ;;  %1050 = vmatpush.msrb.mxu2 %v2527_v22 }
 0x215   : > { %1055 = vrot.lane.b32.xlu0 %v2523_v19, %s2172_s8 }
 0x21c   : > { %1123 = vrot.lane.b32.xlu2 %v967_v16, %s2173_s26 }
 0x21d   : > { %1188 = vrot.lane.b32.xlu0 %v967_v16, %s2174_s5 }
 0x224   : > { %1186 = vrot.lane.b32.xlu2 %v2523_v19, %s2174_s5 }
 0x26e   : > { %v1096_v23 = vpop.permute.xlu2 %1095 }
 0x26f   : > { %1116 = vmatpush.msra.mxu3 %v1096_v23  ;;  %v1278_v23 = vld [vmem:[%s2387_s23 + $0x50] sm:$0xff] }
 0x276   : > { %v1124_v24 = vpop.permute.xlu2 %1123 }
 0x277   : > { %1819 = vmatpush.xpose.msk.msrb.mxu3 %vm993_vm4, %v1124_v24  ;;  %v1277_v24 = vld [vmem:[%s2387_s23 + $0x48] sm:$0xff] }
 0x27e   : > { %v1187_v35 = vpop.permute.xlu2 %1186 }
 0x27f   : > { %v1058_v25 = vpop.permute.xlu0 %1057 }
 0x280   : > { %1816 = vmatpush.xpose.msk.msrb.mxu1 %vm993_vm4, %v1058_v25  ;;  %v1276_v25 = vld [vmem:[%s2387_s23 + $0x40] sm:$0xff] }
 0x287   : > { %v1056_v29 = vpop.permute.xlu0 %1055 }
 0x288   : > { %1817 = vmatmul.msk.f32.vlgmr.msrb.gmra.mxu1 %vm993_vm4, %v1056_v29 }
 0x28d   : > { %v1017_v31 = vpop.f32.mrf.mxu0 }
 0x28e   : > { %v1018_v32 = vadd.f32 %v1017_v31, %v991_v30 }
 0x28f   : > { %v1189_v33 = vpop.permute.xlu0 %1188 }
 0x290   : > { %1822 = vmatpush.xpose.msk.msra.mxu1 %vm993_vm4, %v1189_v33  ;;  %v1021_v34 = vsel %vm1020_vm5, %v1018_v32, -inf  ;;  %v1271_v33 = vld [vmem:[%s2387_s23 + $0x18] sm:$0xff] }
 0x291   : > { %1022 = vmax.xlane.f32.xlu0 %v1021_v34  ;;  %v1270_v34 = vld [vmem:[%s2387_s23 + $0x10] sm:$0xff] }
 0x293   : > { %1823 = vmatmul.msk.f32.vlgmr.msra.gmra.mxu1 %vm993_vm4, %v1187_v35  ;;  %v1269_v35 = vld [vmem:[%s2387_s23 + $0x8] sm:$0xff] }
 0x304   : > { %v1023_v38 = vpop.xlane.xlu0 %1022 }
 0x305   : > { %v1080_v36 = vpop.f32.mrf.mxu1  ;;  %v1024_v40 = vsub.f32 %v1018_v32, %v1023_v38  ;;  %v1272_v32 = vld [vmem:[%s2387_s23 + $0x20] sm:$0xff] }
 0x306   : > { %v1081_v37 = vadd.f32 %v1080_v36, %v991_v30  ;;  %v1268_v36 = vld [vmem:[%s2387_s23] sm:$0xff] }
 0x307   : > { %v1025_v41 = vmul.f32 1.442695, %v1024_v40 }
 0x308   : > { %v1083_v39 = vsel %vm1020_vm5, %v1081_v37, -inf }
 0x309   : > { %1084 = vmax.xlane.f32.xlu1 %v1083_v39  ;;  %1943 = vpow2.f32 %v1025_v41 }
 0x30f   : > { %v1944_v45 = vpop.eup %1943 }
 0x310   : > { %v1211_v42 = vpop.f32.mrf.mxu1  ;;  %v1027_v46 = vsel %vm1020_vm5, %v1944_v45, 0.0 }
 0x311   : > { %v1212_v43 = vadd.f32 %v1211_v42, %v991_v30 }
 0x313   : > { %v1214_v44 = vsel %vm1020_vm5, %v1212_v43, -inf }
 0x314   : > { %1215 = vmax.xlane.f32.xlu2 %v1214_v44 }
 0x31c   : > { %1028 = vadd.xlane.f32.xlu2 %v1027_v46 }
 0x37c   : > { %v1085_v47 = vpop.xlane.xlu1 %1084 }
 0x37d   : > { %v1086_v48 = vsub.f32 %v1081_v37, %v1085_v47  ;;  %v2175_v47 = vmov 128.0  }
 0x37f   : > { %v1087_v49 = vmul.f32 1.442695, %v1086_v48  ;;  %v1376_v48 = vld [vmem:[%s2393_s0 + $0xf0] sm:$0xff] }
 0x381   : > { %1945 = vpow2.f32 %v1087_v49  ;;  %v1377_v49 = vld [vmem:[%s2393_s0 + $0xf8] sm:$0xff] }
 0x382   : > { %1404 = vmatpush.msrb.mxu1 %v1377_v49 }
 0x387   : > { %v1946_v50 = vpop.eup %1945  ;;  %v1216_v51 = vpop.xlane.xlu2 %1215 }
 0x388   : > { %v1217_v52 = vsub.f32 %v1212_v43, %v1216_v51  ;;  %v1089_v53 = vsel %vm1020_vm5, %v1946_v50, 0.0  ;;  %v1937_v43 = vld [vmem:[%s2800_s2] ss:$0 sm:$0xff]  ;;  %v1375_v51 = vld [vmem:[%s2393_s0 + $0xe8] sm:$0xff] }
 0x389   : > { %1090 = vadd.xlane.f32.xlu1 %v1089_v53  ;;  %1405 = vmatpush.msrb.mxu1 %v1375_v51 }
 0x38a   : > { %v1218_v54 = vmul.f32 1.442695, %v1217_v52 }
 0x38c   : > { %1947 = vpow2.f32 %v1218_v54 }
 0x38f   : > { %v1029_v55 = vpop.xlane.xlu2 %1028 }
 0x390   : > { %1949 = vrcp.f32 %v1029_v55 }
 0x392   : > { %v1948_v56 = vpop.eup %1947 }
 0x393   : > { %v1220_v57 = vsel %vm1020_vm5, %v1948_v56, 0.0 }
 0x394   : > { %1221 = vadd.xlane.f32.xlu0 %v1220_v57 }
 0x396   : > { %v1950_v58 = vpop.eup %1949 }
 0x397   : > { %v1031_v59 = vmul.f32 %v1950_v58, %v1944_v45 }
 0x399   : > { %1815 = vmatmul.msk.f32.vlgmr.msrb.gmra.mxu2 %vm1020_vm5, %v1031_v59 }
 0x3a2   : > { %1121 = vrot.lane.b32.xlu1 %v2523_v19, %s2173_s26  ;;  %v1282_v19 = vld [vmem:[%s2387_s23 + $0x70] sm:$0xff] }
 0x3a8   : > { %1225 = vrot.lane.b32.xlu0 %v2527_v22, %s2174_s5 }
 0x3fc   : > { %v1091_v60 = vpop.xlane.xlu1 %1090 }
 0x3fd   : > { %1951 = vrcp.f32 %v1091_v60 }
 0x403   : > { %v1952_v61 = vpop.eup %1951 }
 0x404   : > { %v1093_v62 = vmul.f32 %v1952_v61, %v1946_v50  ;;  %v1374_v50 = vld [vmem:[%s2393_s0 + $0xe0] sm:$0xff]  ;;  %v1372_v61 = vld [vmem:[%s2393_s0 + $0xd0] sm:$0xff] }
 0x406   : > { %1818 = vmatmul.msk.f32.vlgmr.msra.gmra.mxu3 %vm1020_vm5, %v1093_v62  ;;  %v1373_v62 = vld [vmem:[%s2393_s0 + $0xd8] sm:$0xff] }
 0x407   : > { %v1222_v63 = vpop.xlane.xlu0 %1221  ;;  %1288 = vmatpush.msra.mxu3 %v1283_v18  ;;  %1406 = vmatpush.msrb.mxu1 %v1373_v62  ;;  %v1352_v18 = vld [vmem:[%s2393_s0 + $0x30] sm:$0xff] }
 0x408   : > { %1953 = vrcp.f32 %v1222_v63  ;;  %v1370_v63 = vld [vmem:[%s2393_s0 + $0xc0] sm:$0xff] }
 0x409   : > { %1289 = vmatpush.msra.mxu3 %v1282_v19  ;;  %v1353_v19 = vld [vmem:[%s2393_s0 + $0x38] sm:$0xff] }
 0x40b   : > { %1290 = vmatpush.msra.mxu3 %v1281_v20  ;;  %v1350_v20 = vld [vmem:[%s2393_s0 + $0x20] sm:$0xff] }
 0x40d   : > { %1291 = vmatpush.msra.mxu3 %v1280_v21  ;;  %v1351_v21 = vld [vmem:[%s2393_s0 + $0x28] sm:$0xff] }
 0x40e   : > { %v1954_v1 = vpop.eup %1953 }
 0x40f   : > { %v1224_v2 = vmul.f32 %v1954_v1, %v1948_v56  ;;  %v1368_v1 = vld [vmem:[%s2393_s0 + $0xb0] sm:$0xff] }
 0x414   : > { %v1122_v0 = vpop.permute.xlu1 %1121 }
 0x415   : > { %1820 = vmatmul.msk.f32.vlgmr.msrb.gmra.mxu3 %vm993_vm4, %v1122_v0  ;;  %v1371_v0 = vld [vmem:[%s2393_s0 + $0xc8] sm:$0xff] }
 0x416   : > { %1407 = vmatpush.msrb.mxu1 %v1371_v0 }
 0x41a   : > { %v1226_v3 = vpop.permute.xlu0 %1225 }
 0x41b   : > { %1246 = vmatpush.msra.mxu2 %v1226_v3  ;;  %v1366_v3 = vld [vmem:[%s2393_s0 + $0xa0] sm:$0xff] }
 0x41c   : > { %1824 = vmatmul.msk.f32.vlgmr.msra.gmra.mxu2 %vm1020_vm5, %v1224_v2  ;;  %v1052_v29 = vpop.f32.mrf.mxu2  ;;  %v1369_v2 = vld [vmem:[%s2393_s0 + $0xb8] sm:$0xff] }
 0x41d   : > { %1408 = vmatpush.msrb.mxu1 %v1369_v2 }
 0x489   : > { %v1118_v4 = vpop.f32.mrf.mxu3 }
 0x498   : > { %v1146_v5 = vpop.f32.mrf.mxu3 }
 0x499   : > { %v1147_v6 = vadd.f32 %v1146_v5, %v991_v30  ;;  %v1364_v5 = vld [vmem:[%s2393_s0 + $0x90] sm:$0xff] }
 0x49b   : > { %v1149_v7 = vsel %vm1020_vm5, %v1147_v6, -inf }
 0x49c   : > { %1150 = vmax.xlane.f32.xlu1 %v1149_v7  ;;  %v1362_v7 = vld [vmem:[%s2393_s0 + $0x80] sm:$0xff] }
 0x49f   : > { %v1248_v31 = vpop.f32.mrf.mxu2 }
 0x4b5   : > { %1252 = vrot.lane.b32.xlu1 %v1118_v4, %s2174_s5  ;;  %v1367_v4 = vld [vmem:[%s2393_s0 + $0xa8] sm:$0xff] }
 0x4b6   : > { %1409 = vmatpush.msrb.mxu1 %v1367_v4 }
 0x50f   : > { %v1151_v8 = vpop.xlane.xlu1 %1150 }
 0x510   : > { %v1152_v9 = vsub.f32 %v1147_v6, %v1151_v8  ;;  %v1365_v6 = vld [vmem:[%s2393_s0 + $0x98] sm:$0xff]  ;;  %v1363_v8 = vld [vmem:[%s2393_s0 + $0x88] sm:$0xff] }
 0x511   : > { %1410 = vmatpush.msrb.mxu1 %v1365_v6 }
 0x512   : > { %v1153_v10 = vmul.f32 1.442695, %v1152_v9  ;;  %v1360_v9 = vld [vmem:[%s2393_s0 + $0x70] sm:$0xff] }
 0x513   : > { %1411 = vmatpush.msrb.mxu1 %v1363_v8 }
 0x514   : > { %1955 = vpow2.f32 %v1153_v10  ;;  %v1361_v10 = vld [vmem:[%s2393_s0 + $0x78] sm:$0xff] }
 0x515   : > { %1412 = vmatpush.msrb.mxu1 %v1361_v10 }
 0x51a   : > { %v1956_v12 = vpop.eup %1955 }
 0x51b   : > { %v1155_v13 = vsel %vm1020_vm5, %v1956_v12, 0.0 }
 0x51c   : > { %1156 = vadd.xlane.f32.xlu2 %v1155_v13  ;;  %v1359_v13 = vld [vmem:[%s2393_s0 + $0x68] sm:$0xff] }
 0x51d   : > { %1413 = vmatpush.msrb.mxu1 %v1359_v13 }
 0x527   : > { %v1253_v38 = vpop.permute.xlu1 %1252 }
 0x528   : > { %v1263_v39 = vsel %vm993_vm4, %v1052_v29, %v1253_v38 }
 0x534   : > { %1160 = vrot.lane.b32.xlu2 %v2527_v22, %s2173_s26  ;;  %v1279_v22 = vld [vmem:[%s2387_s23 + $0x58] sm:$0xff]  ;;  %s2801_s23 = sld [smem:[#allocation20_spill]] }
 0x535   : > { %1292 = vmatpush.msra.mxu3 %v1279_v22  ;;  %v1348_v22 = vld [vmem:[%s2393_s0 + $0x10] sm:$0xff] }
 0x537   : > { %1293 = vmatpush.msra.mxu3 %v1278_v23  ;;  %v1349_v23 = vld [vmem:[%s2393_s0 + $0x18] sm:$0xff] }
 0x539   : > { %1294 = vmatpush.msra.mxu3 %v1277_v24  ;;  %v1346_v24 = vld [vmem:[%s2393_s0] sm:$0xff] }
 0x53a   : > { %v1472_v29 = vld [vmem:[%s2801_s23 + $0xf0] sm:$0xff]  ;;  %v1453_v49 = vld [vmem:[%s2801_s23 + $0x58] sm:$0xff]  ;;  %v1463_v62 = vld [vmem:[%s2801_s23 + $0xa8] sm:$0xff] }
 0x53b   : > { %1295 = vmatpush.msra.mxu3 %v1276_v25  ;;  %v1347_v25 = vld [vmem:[%s2393_s0 + $0x8] sm:$0xff]  ;;  %v1452_v51 = vld [vmem:[%s2801_s23 + $0x50] sm:$0xff]  ;;  %v1462_v0 = vld [vmem:[%s2801_s23 + $0xa0] sm:$0xff] }
 0x53c   : > { %v1461_v2 = vld [vmem:[%s2801_s23 + $0x98] sm:$0xff]  ;;  %v1460_v4 = vld [vmem:[%s2801_s23 + $0x90] sm:$0xff]  ;;  %v1459_v6 = vld [vmem:[%s2801_s23 + $0x88] sm:$0xff] }
 0x53d   : > { %1296 = vmatpush.msra.mxu3 %v1275_v26  ;;  %v1457_v26 = vld [vmem:[%s2801_s23 + $0x78] sm:$0xff]  ;;  %v1458_v8 = vld [vmem:[%s2801_s23 + $0x80] sm:$0xff] }
 0x53e   : > { %1478 = vmatpush.msrb.mxu2 %v1457_v26 }
 0x53f   : > { %1297 = vmatpush.msra.mxu3 %v1274_v27  ;;  %v1473_v27 = vld [vmem:[%s2801_s23 + $0xf8] sm:$0xff] }
 0x541   : > { %1298 = vmatpush.msra.mxu3 %v1273_v28  ;;  %v1456_v28 = vld [vmem:[%s2801_s23 + $0x70] sm:$0xff] }
 0x542   : > { %1479 = vmatpush.msrb.mxu2 %v1456_v28 }
 0x543   : > { %1299 = vmatpush.msra.mxu3 %v1272_v32 }
 0x545   : > { %1300 = vmatpush.msra.mxu3 %v1271_v33 }
 0x547   : > { %1301 = vmatpush.msra.mxu3 %v1270_v34  ;;  %v1454_v34 = vld [vmem:[%s2801_s23 + $0x60] sm:$0xff] }
 0x549   : > { %1302 = vmatpush.msra.mxu3 %v1269_v35  ;;  %v1470_v35 = vld [vmem:[%s2801_s23 + $0xe0] sm:$0xff] }
 0x54b   : > { %1303 = vmatpush.msra.mxu3 %v1268_v36 }
 0x54d   : > { %1498 = vmatpush.msrb.mxu3 %v1473_v27 }
 0x54f   : > { %1499 = vmatpush.msrb.mxu3 %v1472_v29 }
 0x58f   : > { %v1157_v14 = vpop.xlane.xlu2 %1156 }
 0x590   : > { %1957 = vrcp.f32 %v1157_v14  ;;  %v1356_v14 = vld [vmem:[%s2393_s0 + $0x50] sm:$0xff] }
 0x591   : > { %1959 = vrcp.f32 %v2175_v47 }
 0x596   : > { %v1958_v15 = vpop.eup %1957 }
 0x597   : > { %v1159_v16 = vmul.f32 %v1958_v15, %v1956_v12  ;;  %v1161_v17 = vpop.permute.xlu2 %1160  ;;  %v1960_v52 = vpop.eup %1959  ;;  %v1358_v12 = vld [vmem:[%s2393_s0 + $0x60] sm:$0xff]  ;;  %v1357_v15 = vld [vmem:[%s2393_s0 + $0x58] sm:$0xff] }
 0x598   : > { %1181 = vmatpush.msra.mxu0 %v1161_v17  ;;  %v1314_v53 = vmul.f32 128.0, %v1960_v52  ;;  %vm1318_vm8 = vweird.f32 %v1960_v52  ;;  %1414 = vmatpush.msrb.mxu1 %v1357_v15  ;;  %v1355_v17 = vld [vmem:[%s2393_s0 + $0x48] sm:$0xff] }
 0x599   : > { %1821 = vmatmul.msk.f32.vlgmr.msra.gmra.mxu0 %vm1020_vm5, %v1159_v16  ;;  %v1354_v16 = vld [vmem:[%s2393_s0 + $0x40] sm:$0xff] }
 0x59a   : > { %1384 = vmatpush.msrb.mxu0 %v1376_v48  ;;  %v1315_v54 = vsub.f32 1.0, %v1314_v53  ;;  %1415 = vmatpush.msrb.mxu1 %v1355_v17  ;;  %v1451_v53 = vld [vmem:[%s2801_s23 + $0x48] sm:$0xff] }
 0x59c   : > { %1385 = vmatpush.msrb.mxu0 %v1374_v50  ;;  %v1316_v55 = vmul.f32 %v1960_v52, %v1315_v54  ;;  %1416 = vmatpush.msrb.mxu1 %v1353_v19  ;;  %v1469_v50 = vld [vmem:[%s2801_s23 + $0xd8] sm:$0xff]  ;;  %v1467_v54 = vld [vmem:[%s2801_s23 + $0xc8] sm:$0xff] }
 0x59e   : > { %1386 = vmatpush.msrb.mxu0 %v1372_v61  ;;  %1417 = vmatpush.msrb.mxu1 %v1351_v21  ;;  %v1447_v61 = vld [vmem:[%s2801_s23 + $0x28] sm:$0xff] }
 0x5a0   : > { %1387 = vmatpush.msrb.mxu0 %v1370_v63  ;;  %1418 = vmatpush.msrb.mxu1 %v1349_v23  ;;  %v1446_v63 = vld [vmem:[%s2801_s23 + $0x20] sm:$0xff] }
 0x5a2   : > { %1388 = vmatpush.msrb.mxu0 %v1368_v1  ;;  %1419 = vmatpush.msrb.mxu1 %v1347_v25  ;;  %v1445_v1 = vld [vmem:[%s2801_s23 + $0x18] sm:$0xff] }
 0x5a4   : > { %1389 = vmatpush.msrb.mxu0 %v1366_v3  ;;  %v1444_v3 = vld [vmem:[%s2801_s23 + $0x10] sm:$0xff] }
 0x5a6   : > { %1390 = vmatpush.msrb.mxu0 %v1364_v5  ;;  %v1443_v5 = vld [vmem:[%s2801_s23 + $0x8] sm:$0xff] }
 0x5a8   : > { %1391 = vmatpush.msrb.mxu0 %v1362_v7  ;;  %v1442_v7 = vld [vmem:[%s2801_s23] sm:$0xff] }
 0x5aa   : > { %1392 = vmatpush.msrb.mxu0 %v1360_v9  ;;  %v1378_v9 = vld [vmem:[%s2443_s7] sm:$0x3] }
 0x5ab   : > { %v1380_v10 = vperm.slane %v1378_v9, 0 }
 0x5ac   : > { %1393 = vmatpush.msrb.mxu0 %v1358_v12  ;;  %v1381_v12 = vperm.slane %v1378_v9, 1 }
 0x5ae   : > { %1394 = vmatpush.msrb.mxu0 %v1356_v14 }
 0x5b0   : > { %1395 = vmatpush.msrb.mxu0 %v1354_v16 }
 0x5b2   : > { %1396 = vmatpush.msrb.mxu0 %v1352_v18 }
 0x5b4   : > { %1397 = vmatpush.msrb.mxu0 %v1350_v20 }
 0x5b6   : > { %1398 = vmatpush.msrb.mxu0 %v1348_v22 }
 0x5b8   : > { %1399 = vmatpush.msrb.mxu0 %v1346_v24 }
 0x616   : > { %v1183_v30 = vpop.f32.mrf.mxu0 }
 0x617   : > { %1256 = vrot.lane.b32.xlu0 %v1183_v30, %s2173_s26  ;;  %v1455_v30 = vld [vmem:[%s2801_s23 + $0x68] sm:$0xff] }
 0x618   : > { %1480 = vmatpush.msrb.mxu2 %v1455_v30 }
 0x61a   : > { %1481 = vmatpush.msrb.mxu2 %v1454_v34 }
 0x61c   : > { %1482 = vmatpush.msrb.mxu2 %v1453_v49 }
 0x61e   : > { %1483 = vmatpush.msrb.mxu2 %v1452_v51 }
 0x61f   : > { %1260 = vrot.lane.b32.xlu0 %v1248_v31, %s2172_s8  ;;  %v1471_v31 = vld [vmem:[%s2801_s23 + $0xe8] sm:$0xff] }
 0x620   : > { %1500 = vmatpush.msrb.mxu3 %v1471_v31  ;;  %1484 = vmatpush.msrb.mxu2 %v1451_v53 }
 0x622   : > { %1501 = vmatpush.msrb.mxu3 %v1470_v35  ;;  %v1940_v35 = vld [vmem:[%s815_s21] ss:$0 sm:$0xff] }
 0x624   : > { %1502 = vmatpush.msrb.mxu3 %v1469_v50 }
 0x689   : > { %v1257_v37 = vpop.permute.xlu0 %1256 }
 0x68a   : > { %v1265_v40 = vsel %vm1264_vm6, %v1263_v39, %v1257_v37 }
 0x691   : > { %v1261_v41 = vpop.permute.xlu0 %1260 }
 0x692   : > { %v1267_v42 = vsel %vm1266_vm7, %v1265_v40, %v1261_v41 }
 0x693   : > { %1304 = vmatmul.f32.vlgmr.msra.gmra.mxu3 %v1267_v42 }
 0x716   : > { %v1305_v44 = vpop.f32.mrf.mxu3 }
 0x717   : > { %v1306_v45 = vadd.f32 %v1937_v43, %v1305_v44  ;;  %v1938_v43 = vld [vmem:[%s2803_s30] ss:$0 sm:$0xff] }
 0x719   : > { %v1308_v46 = vadd.f32 %v1306_v45, %v2515_v11  ;;  %v1317_v11 = vadd.f32 %v1960_v52, %v1316_v55  ;;  %v1450_v55 = vld [vmem:[%s2801_s23 + $0x40] sm:$0xff] }
 0x71a   : > { %1485 = vmatpush.msrb.mxu2 %v1450_v55 }
 0x71b   : > { %1311 = vadd.xlane.f32.xlu2 %v1308_v46  ;;  %v2597_v56 = vsel %vm1318_vm8, %v1960_v52, %v1317_v11  ;;  %v1468_v52 = vld [vmem:[%s2801_s23 + $0xd0] sm:$0xff]  ;;  %v1466_v11 = vld [vmem:[%s2801_s23 + $0xc0] sm:$0xff] }
 0x71c   : > { %1503 = vmatpush.msrb.mxu3 %v1468_v52 }
 0x71e   : > { %1504 = vmatpush.msrb.mxu3 %v1467_v54  ;;  %v1941_v54 = vld [vmem:[%s818_s10] ss:$0 sm:$0xff] }
 0x720   : > { %1505 = vmatpush.msrb.mxu3 %v1466_v11 }
 0x78e   : > { %v1312_v57 = vpop.xlane.xlu2 %1311 }
 0x78f   : > { %v1320_v58 = vmul.f32 %v2597_v56, %v1312_v57  ;;  %v1449_v57 = vld [vmem:[%s2801_s23 + $0x38] sm:$0xff] }
 0x790   : > { %1486 = vmatpush.msrb.mxu2 %v1449_v57 }
 0x791   : > { %v2600_v59 = vsub.f32 %v1308_v46, %v1320_v58  ;;  %v1939_v46 = vld [vmem:[%s2805_s24] ss:$0 sm:$0xff]  ;;  %v1465_v58 = vld [vmem:[%s2801_s23 + $0xb8] sm:$0xff] }
 0x792   : > { %1506 = vmatpush.msrb.mxu3 %v1465_v58 }
 0x793   : > { %v1322_v60 = vmul.f32 %v2600_v59, %v2600_v59 }
 0x795   : > { %1323 = vadd.xlane.f32.xlu1 %v1322_v60  ;;  %v1464_v60 = vld [vmem:[%s2801_s23 + $0xb0] sm:$0xff] }
 0x796   : > { %1507 = vmatpush.msrb.mxu3 %v1464_v60 }
 0x798   : > { %1508 = vmatpush.msrb.mxu3 %v1463_v62 }
 0x79a   : > { %1509 = vmatpush.msrb.mxu3 %v1462_v0 }
 0x79c   : > { %1510 = vmatpush.msrb.mxu3 %v1461_v2 }
 0x79e   : > { %1511 = vmatpush.msrb.mxu3 %v1460_v4 }
 0x7a0   : > { %1512 = vmatpush.msrb.mxu3 %v1459_v6 }
 0x7a2   : > { %1513 = vmatpush.msrb.mxu3 %v1458_v8 }
 0x808   : > { %v1324_v32 = vpop.xlane.xlu1 %1323 }
 0x809   : > { %v1325_v33 = vmul.f32 %v1324_v32, %v2597_v56 }
 0x80b   : > { %v1326_v36 = vadd.f32 1e-05, %v1325_v33 }
 0x80d   : > { %1961 = vrsqrt.f32 %v1326_v36  ;;  %vm1333_vm10 = vweird.f32 %v1326_v36 }
 0x813   : > { %v1962_v37 = vpop.eup %1961 }
 0x814   : > { %v1328_v38 = vmul.f32 %v1962_v37, %v1326_v36  ;;  %vm1334_vm9 = vweird.f32 %v1962_v37 }
 0x815   : > { %vm1335_vm11 = vmor %vm1333_vm10, %vm1334_vm9 }
 0x816   : > { %v1329_v39 = vmul.f32 %v1962_v37, %v1328_v38 }
 0x818   : > { %v1330_v40 = vmul.f32 0.5, %v1329_v39 }
 0x81a   : > { %v1331_v41 = vsub.f32 1.5, %v1330_v40 }
 0x81c   : > { %v1332_v42 = vmul.f32 %v1962_v37, %v1331_v41 }
 0x81e   : > { %v1336_v44 = vsel %vm1335_vm11, %v1962_v37, %v1332_v42 }
 0x81f   : > { %v1337_v45 = vmul.f32 %v1336_v44, %v2600_v59  ;;  %v1448_v59 = vld [vmem:[%s2801_s23 + $0x30] sm:$0xff] }
 0x820   : > { %1487 = vmatpush.msrb.mxu2 %v1448_v59 }
 0x821   : > { %v1341_v47 = vmul.f32 %v1938_v43, %v1337_v45 }
 0x822   : > { %1488 = vmatpush.msrb.mxu2 %v1447_v61 }
 0x823   : > { %v2652_v48 = vadd.f32 %v1939_v46, %v1341_v47 }
 0x824   : > { %1489 = vmatpush.msrb.mxu2 %v1446_v63 }
 0x825   : > { %1400 = vmatmul.f32.vlgmr.msrb.gmra.mxu0 %v2652_v48  ;;  %1420 = vmatmul.f32.vlgmr.msrb.gmra.mxu1 %v2652_v48 }
 0x826   : > { %1490 = vmatpush.msrb.mxu2 %v1445_v1 }
 0x828   : > { %1491 = vmatpush.msrb.mxu2 %v1444_v3 }
 0x82a   : > { %1492 = vmatpush.msrb.mxu2 %v1443_v5 }
 0x82c   : > { %1493 = vmatpush.msrb.mxu2 %v1442_v7 }
 0x8a2   : > { %v1401_v13 = vpop.f32.mrf.mxu0  ;;  %v1421_v14 = vpop.f32.mrf.mxu1 }
 0x8a3   : > { %v1402_v15 = vadd.f32 %v1401_v13, %v1380_v10  ;;  %v1422_v16 = vadd.f32 %v1421_v14, %v1381_v12 }
 0x8a5   : > { %v1426_v17 = vmul.f32 0.044715, %v1402_v15  ;;  %v1427_v18 = vmul.f32 0.044715, %v1422_v16  ;;  %v1424_v29 = vmul.f32 0.5, %v1402_v15  ;;  %v1425_v31 = vmul.f32 0.5, %v1422_v16 }
 0x8a7   : > { %v1428_v19 = vmul.f32 %v1426_v17, %v1402_v15  ;;  %v1429_v20 = vmul.f32 %v1427_v18, %v1422_v16 }
 0x8a9   : > { %v1430_v21 = vmul.f32 %v1428_v19, %v1402_v15  ;;  %v1431_v22 = vmul.f32 %v1429_v20, %v1422_v16 }
 0x8ab   : > { %v1432_v23 = vadd.f32 %v1430_v21, %v1402_v15  ;;  %v1433_v24 = vadd.f32 %v1431_v22, %v1422_v16 }
 0x8ad   : > { %v1434_v25 = vmul.f32 0.7978846, %v1432_v23  ;;  %v1435_v26 = vmul.f32 0.7978846, %v1433_v24 }
 0x8af   : > { %1963 = vtanh.f32 %v1434_v25 }
 0x8b0   : > { %1965 = vtanh.f32 %v1435_v26 }
 0x8b5   : > { %v1964_v27 = vpop.eup %1963 }
 0x8b6   : > { %v1966_v28 = vpop.eup %1965  ;;  %v1438_v30 = vadd.f32 1.0, %v1964_v27 }
 0x8b7   : > { %v1439_v32 = vadd.f32 1.0, %v1966_v28 }
 0x8b8   : > { %v1440_v33 = vmul.f32 %v1438_v30, %v1424_v29 }
 0x8b9   : > { %v1441_v34 = vmul.f32 %v1439_v32, %v1425_v31 }
 0x8ba   : > { %1494 = vmatmul.f32.vlgmr.msrb.gmra.mxu2 %v1440_v33 }
 0x8bb   : > { %1514 = vmatmul.f32.vlgmr.msrb.gmra.mxu3 %v1441_v34 }
 0x93d   : > { %v1495_v36 = vpop.f32.mrf.mxu2 }
 0x93e   : > { %v1496_v37 = vadd.f32 %v1940_v35, %v1495_v36  ;;  %v1515_v38 = vpop.f32.mrf.mxu3 }
 0x940   : > { %v1516_v39 = vadd.f32 %v1515_v38, %v1496_v37 }
 0x942   : > { %v1518_v40 = vadd.f32 %v1516_v39, %v2652_v48 }
 0x944   : > { %1521 = vadd.xlane.f32.xlu0 %v1518_v40 }
 0x9b7   : > { %v1522_v41 = vpop.xlane.xlu0 %1521 }
 0x9b8   : > { %v1523_v42 = vmul.f32 %v1522_v41, %v2597_v56 }
 0x9ba   : > { %v1524_v43 = vsub.f32 %v1518_v40, %v1523_v42 }
 0x9bc   : > { %v1525_v44 = vmul.f32 %v1524_v43, %v1524_v43 }
 0x9be   : > { %1526 = vadd.xlane.f32.xlu2 %v1525_v44 }
 0xa31   : > { %v1527_v45 = vpop.xlane.xlu2 %1526 }
 0xa32   : > { %v1528_v46 = vmul.f32 %v1527_v45, %v2597_v56  ;;  %v1942_v56 = vld [vmem:[%s821_s29] ss:$0 sm:$0xff] }
 0xa34   : > { %v1529_v47 = vadd.f32 1e-05, %v1528_v46 }
 0xa36   : > { %1967 = vrsqrt.f32 %v1529_v47  ;;  %vm1536_vm13 = vweird.f32 %v1529_v47 }
 0xa3c   : > { %v1968_v49 = vpop.eup %1967 }
 0xa3d   : > { %v1531_v50 = vmul.f32 %v1968_v49, %v1529_v47  ;;  %vm1537_vm12 = vweird.f32 %v1968_v49 }
 0xa3e   : > { %vm1538_vm14 = vmor %vm1536_vm13, %vm1537_vm12 }
 0xa3f   : > { %v1532_v51 = vmul.f32 %v1968_v49, %v1531_v50 }
 0xa41   : > { %v1533_v52 = vmul.f32 0.5, %v1532_v51 }
 0xa43   : > { %v1534_v48 = vsub.f32 1.5, %v1533_v52 }
 0xa45   : > { %v1535_v53 = vmul.f32 %v1968_v49, %v1534_v48 }
 0xa47   : > { %v1539_v55 = vsel %vm1538_vm14, %v1968_v49, %v1535_v53 }
 0xa48   : > { %v1540_v11 = vmul.f32 %v1539_v55, %v1524_v43 }
 0xa4a   : > { %v1544_v57 = vmul.f32 %v1941_v54, %v1540_v11 }
 0xa4c   : > { %v1548_v58 = vadd.f32 %v1942_v56, %v1544_v57 }
 0xa4e   : > { %1549 = vst [vmem:[%s2456_s22] sm:$0xff] %v1548_v58 }
 0xa4f PF: > { %s2809_s5 = sld [smem:[#allocation16_spill]] }
 0xa50   : > { %s2810_s21 = sld [smem:[#allocation12_spill]] }
 0xa51   : > { %s2811_s22 = sld [smem:[#allocation13_spill]] }
 0xa52   : > { %s2812_s23 = sld [smem:[#allocation19_spill]] }
 0xa53   : > { %s2813_s24 = sld [smem:[#allocation14_spill]] }
 0xa54   : > { %s2814_s25 = sld [smem:[#allocation15_spill]] }
 0xa55   : > { %s35_s28 = sadd.s32 1, %s2809_s5   ;;  %s2815_s26 = sld [smem:[#allocation17_spill]] }
 0xa56   : > { %p32_p3 = scmp.ge.s32.totalorder %s35_s28, 6   ;;  %s2816_s27 = sld [smem:[#allocation18_spill]] }
 0xa58   :  { %34 = sbr.rel (!%p32_p3) target bundleno = 26 (0x1a), region = 195 }
 0xa5d   :  { %1569 = vsyncpa [#allocation3], 1 }
 0xa5e   :  { %1571 = vsyncpa [#allocation3 + $0x1], 1 }
 0xa5f   :  { %1572 = vsyncpa [#allocation5], 1 }
 0xa60   :  { %1574 = vsyncpa [#allocation5 + $0x1], 1 }
 0xa61   :  { %1575 = vsyncpa [#allocation8], 1 }
 0xa62   :  { %1577 = vsyncpa [#allocation8 + $0x1], 1 }

// kernel: forward.3
= control target key start
LH: loop header
LB: loop body
LE: loop exit
PB: predicated region body
PF: predicated region fallthrough
CT: control target
= control target key end

     0   :  { %s4796_s0 = inlined_call_operand.vmem [shape: f32[16,128], index: 0, kind: input, shape index: {}]   ;;  %s4797_s1 = inlined_call_operand.vmem [shape: f32[2,8,128], index: 1, kind: input, shape index: {}]   ;;  %s4798_s2 = inlined_call_operand.vmem [shape: f32[2,1,8], index: 2, kind: input, shape index: {}]   ;;  %s4799_s3 = inlined_call_operand.hbm [shape: f32[2,128,384], index: 3, kind: input, shape index: {}]   ;;  %s4800_s4 = inlined_call_operand.vmem [shape: f32[2,1,384], index: 4, kind: input, shape index: {}]   ;;  %s4801_s5 = inlined_call_operand.hbm [shape: f32[2,128,128], index: 5, kind: input, shape index: {}]   ;;  %s4802_s6 = inlined_call_operand.vmem [shape: f32[2,1,128], index: 6, kind: input, shape index: {}]   ;;  %s4803_s7 = inlined_call_operand.vmem [shape: f32[2,1,128], index: 7, kind: input, shape index: {}]   ;;  %s4804_s8 = inlined_call_operand.vmem [shape: f32[2,1,128], index: 8, kind: input, shape index: {}]   ;;  %s4805_s9 = inlined_call_operand.hbm [shape: f32[2,128,128], index: 9, kind: input, shape index: {}]   ;;  %s4806_s10 = inlined_call_operand.vmem [shape: f32[2,1,128], index: 10, kind: input, shape index: {}]   ;;  %s4807_s11 = inlined_call_operand.hbm [shape: f32[2,128,256], index: 11, kind: input, shape index: {}]   ;;  %s4808_s12 = inlined_call_operand.vmem [shape: f32[2,1,256], index: 12, kind: input, shape index: {}]   ;;  %s4809_s13 = inlined_call_operand.hbm [shape: f32[2,128,128], index: 13, kind: input, shape index: {}]   ;;  %s4810_s14 = inlined_call_operand.vmem [shape: f32[2,1,128], index: 14, kind: input, shape index: {}]   ;;  %s4811_s15 = inlined_call_operand.vmem [shape: f32[2,1,128], index: 15, kind: input, shape index: {}]   ;;  %s4812_s16 = inlined_call_operand.vmem [shape: f32[2,1,128], index: 16, kind: input, shape index: {}]   ;;  %s4813_s17 = inlined_call_operand.hbm [shape: f32[2,128,256], index: 17, kind: input, shape index: {}]   ;;  %s4814_s18 = inlined_call_operand.vmem [shape: f32[2,1,256], index: 18, kind: input, shape index: {}]   ;;  %s4815_s19 = inlined_call_operand.hbm [shape: f32[2,256,128], index: 19, kind: input, shape index: {}]   ;;  %s4816_s20 = inlined_call_operand.vmem [shape: f32[2,1,128], index: 20, kind: input, shape index: {}]   ;;  %s4817_s21 = inlined_call_operand.vmem [shape: f32[2,1,128], index: 21, kind: input, shape index: {}]   ;;  %s4818_s22 = inlined_call_operand.vmem [shape: f32[2,1,128], index: 22, kind: input, shape index: {}]   ;;  %s4819_s23 = inlined_call_operand.vmem [shape: f32[16,128], index: 23, kind: input, shape index: {}]   ;;  %s4820_s24 = inlined_call_operand.vmem [shape: f32[16,1], index: 24, kind: input, shape index: {}]   ;;  %s4821_s25 = inlined_call_operand.vmem [shape: f32[2,16,1], index: 25, kind: output, shape index: {}]  }
   0x1   :  { %4841 = sst [smem:[#allocation31_spill]] %s4796_s0 }
   0x2   :  { %4842 = sst [smem:[#allocation32_spill]] %s4797_s1 }
   0x3   :  { %4843 = sst [smem:[#allocation33_spill]] %s4798_s2 }
   0x4   :  { %4844 = sst [smem:[#allocation34_spill]] %s4799_s3 }
   0x5   :  { %4845 = sst [smem:[#allocation35_spill]] %s4800_s4 }
   0x6   :  { %4846 = sst [smem:[#allocation36_spill]] %s4801_s5 }
   0x7   :  { %4847 = sst [smem:[#allocation37_spill]] %s4802_s6 }
   0x8   :  { %4848 = sst [smem:[#allocation38_spill]] %s4803_s7 }
   0x9   :  { %4849 = sst [smem:[#allocation39_spill]] %s4804_s8 }
   0xa   :  { %4850 = sst [smem:[#allocation40_spill]] %s4805_s9 }
   0xb   :  { %4851 = sst [smem:[#allocation41_spill]] %s4806_s10 }
   0xc   :  { %4852 = sst [smem:[#allocation42_spill]] %s4807_s11 }
   0xd   :  { %4853 = sst [smem:[#allocation43_spill]] %s4808_s12 }
   0xe   :  { %4854 = sst [smem:[#allocation44_spill]] %s4809_s13 }
   0xf   :  { %4855 = sst [smem:[#allocation45_spill]] %s4810_s14 }
  0x10   :  { %4856 = sst [smem:[#allocation46_spill]] %s4811_s15 }
  0x11   :  { %4857 = sst [smem:[#allocation47_spill]] %s4812_s16 }
  0x12   :  { %4858 = sst [smem:[#allocation48_spill]] %s4813_s17 }
  0x13   :  { %4859 = sst [smem:[#allocation49_spill]] %s4814_s18 }
  0x14   :  { %4860 = sst [smem:[#allocation50_spill]] %s4815_s19 }
  0x15   :  { %4861 = sst [smem:[#allocation51_spill]] %s4816_s20 }
  0x16   :  { %4862 = sst [smem:[#allocation52_spill]] %s4817_s21 }
  0x17   :  { %4863 = sst [smem:[#allocation53_spill]] %s4818_s22 }
  0x18   :  { %4864 = sst [smem:[#allocation54_spill]] %s4819_s23 }
  0x19   :  { %4865 = sst [smem:[#allocation55_spill]] %s4820_s24 }
  0x1a   :  { %4866 = sst [smem:[#allocation56_spill]] %s4821_s25 }
  0x1b   :  { %30 = vsyncpa [#allocation4], 0 }
  0x1c   :  { %32 = vsyncpa [#allocation4 + $0x1], 0 }
  0x1d   :  { %33 = vsyncpa [#allocation6], 0 }
  0x1e   :  { %35 = vsyncpa [#allocation6 + $0x1], 0 }
  0x1f   :  { %36 = vsyncpa [#allocation9], 0 }
  0x20   :  { %38 = vsyncpa [#allocation9 + $0x1], 0 }
  0x21   :  { %39 = vsyncpa [#allocation12], 0 }
  0x22   :  { %41 = vsyncpa [#allocation12 + $0x1], 0  ;;  %s3959_s29 = smov 0   ;;  %s3961_s2 = smov 0  }
  0x23   :  { %s3963_s6 = smov 0   ;;  %s3965_s30 = smov 0  }
  0x24   :  { %s3967_s7 = smov 0   ;;  %s3969_s3 = smov 0  }
  0x25   :  { %s3971_s26 = smov 0   ;;  %s3973_s1 = smov 0  }
  0x26 LB: > { %4867 = sst [smem:[#allocation18_spill]] %s3792_s2  ;;  %s4825_s8 = sadd.s32 4294967295, %s3816_s1   ;;  %s3816_s1 = sphi %s3973_s1, %s47_s1   ;;  %s3812_s26 = sphi %s3971_s26, %s4947_s26   ;;  %s3808_s3 = sphi %s3969_s3, %s4946_s3   ;;  %s3804_s7 = sphi %s3967_s7, %s4945_s7   ;;  %s3800_s30 = sphi %s3965_s30, %s4944_s30   ;;  %s3796_s6 = sphi %s3963_s6, %s4943_s6   ;;  %s3792_s2 = sphi %s3961_s2, %s4942_s2   ;;  %s3788_s29 = sphi %s3959_s29, %s4941_s29  }
  0x27   : > { %4868 = sst [smem:[#allocation19_spill]] %s3796_s6  ;;  %s56_s27 = sadd.s32 1, %s3808_s3 }
  0x28   : > { %4869 = sst [smem:[#allocation20_spill]] %s3800_s30  ;;  %p57_p0 = scmp.ge.s32.totalorder %s56_s27, 2 }
  0x29   : > { %4870 = sst [smem:[#allocation21_spill]] %s3808_s3  ;;  %s59_s4 = sadd.s32 1, %s3812_s26 }
  0x2a   : > { %4871 = sst [smem:[#allocation22_spill]] %s3812_s26  ;;  %s139_s28 = sadd.s32 1, %s3796_s6 }
  0x2b   : > { %4872 = sst [smem:[#allocation23_spill]] %s3816_s1  ;;  %p146_p1 = scmp.ne.s32.totalorder %s3796_s6, %s3792_s2 }
  0x2c   : > { %s4949_s27 = smov (%p57_p0, %s56_s27), 0  ;;  %s4951_s4 = smov (!%p57_p0, %s59_s4), %s3812_s26 }
  0x2d   : > { %4873 = sst [smem:[#allocation24_spill]] %s4949_s27  ;;  %s136_s9 = ssub.s32 %s3808_s3, %s4949_s27 }
  0x2e   : > { %p147_p2 = scmp.eq.s32.totalorder %s3816_s1, 0  ;;  %p61_p3 = scmp.ge.s32.totalorder %s4951_s4, 2 }
  0x2f   : > { %p137_p4 = scmp.eq.s32.totalorder %s136_s9, 0  ;;  %p152_p6 = scmp.ne.s32.totalorder %s3792_s2, %s3788_s29 }
  0x30   : > { %p148_p5 = por %p147_p2, %p146_p1  ;;  %s4953_s4 = smov (%p61_p3, %s4951_s4), 0 }
  0x31   : > { %4874 = sst [smem:[#allocation25_spill]] %s4953_s4  ;;  %p153_p7 = scmp.eq.s32.totalorder %s4825_s8, 0 }
  0x32   : > { %s4013_s5 = scalar_select %p137_p4, %s3796_s6, %s139_s28  }
  0x33   : > { %p3333_p8 = scmp.lt.s32.totalorder %s3816_s1, 4  ;;  %s4019_s0 = sand.u32 1, %s3796_s6  }
  0x34   : > { %4875 = sst [smem:[#allocation26_spill]] %s4013_s5  ;;  %p4021_p9 = por %p153_p7, %p152_p6 }
  0x35   : > { %s4026_s27 = sand.u32 1, %s3816_s1   ;;  %p4028_p10 = pnand %p3333_p8, %p148_p5 }
  0x36   : > { %s4033_s28 = sshll.u32 %s4019_s0, 7  ;;  %s4036_s9 = sshll.u32 %s3808_s3, 7 }
  0x37   : > { %s4878_s5 = sld [smem:[#allocation36_spill]]  ;;  %s793_s24 = scalar_lea.vmem [#allocation5], %s4033_s28 }
  0x38   : > { %s801_s23 = sshll.u32 %s793_s24, 4  ;;  %p3225_p11 = scmp.ge.s32.totalorder %s3816_s1, 1  ;;  %s802_s23 = int_to_ptr.vmem [resolvable:$true] %s801_s23 }
  0x39   : > { %s4829_s22 = scalar_lea.sflag [#allocation6], %s4026_s27  ;;  %s4830_s21 = smov 128  }
  0x3a   : > { %s4832_s20 = smov 8   ;;  %p993_p12 = scmp.lt.s32.totalorder %s3816_s1, 5 }
  0x3b   : > { %s4054_s8 = sshll.u32 %s4019_s0, 8  ;;  %s4057_s24 = sshll.u32 %s3808_s3, 8 }
  0x3c   : > { %p4059_p13 = pnand %p3225_p11, %p993_p12  ;;  %s4880_s11 = sld [smem:[#allocation42_spill]] }
  0x3d   : > { %s798_s6 = scalar_lea.hbm %s4878_s5, %s4036_s9  ;;  %s861_s16 = scalar_lea.vmem [#allocation8], %s4054_s8 }
  0x3e   : > { %s799_s25 = sshll.u32 %s798_s6, 4  ;;  %s4881_s17 = sld [smem:[#allocation48_spill]]  ;;  %s800_s25 = int_to_ptr.hbm [resolvable:$true] %s799_s25 }
  0x3f   : > { %3317 = dma.hbm_to_vmem [thread:$0]  (!%p4028_p10), %s800_s25, 2048, %s802_s23, %s4829_s22, %s4830_s21, %s4830_s21, %s4832_s20  }
  0x40   : > { %s869_s23 = sshll.u32 %s861_s16, 4  ;;  %s4834_s22 = scalar_lea.sflag [#allocation9], %s4026_s27  ;;  %s870_s23 = int_to_ptr.vmem [resolvable:$true] %s869_s23 }
  0x41   : > { %s3820_s21 = smov 256   ;;  %s3821_s20 = smov 16  }
  0x42   : > { %s866_s18 = scalar_lea.hbm %s4880_s11, %s4057_s24  ;;  %s930_s11 = scalar_lea.vmem [#allocation11], %s4054_s8 }
  0x43   : > { %s867_s25 = sshll.u32 %s866_s18, 4  ;;  %s938_s12 = sshll.u32 %s930_s11, 4  ;;  %s868_s25 = int_to_ptr.hbm [resolvable:$true] %s867_s25  ;;  %s939_s12 = int_to_ptr.vmem [resolvable:$true] %s938_s12 }
  0x44   : > { %3323 = dma.hbm_to_vmem [thread:$0]  (!%p4028_p10), %s868_s25, 4096, %s870_s23, %s4834_s22, %s3820_s21, %s3820_s21, %s3821_s20  }
  0x45   : > { %s935_s4 = scalar_lea.hbm %s4881_s17, %s4057_s24  ;;  %s927_s16 = scalar_lea.sflag [#allocation12], %s4026_s27 }
  0x46   : > { %s936_s5 = sshll.u32 %s935_s4, 4  ;;  %s3293_s18 = smul.u32 384, %s4019_s0  ;;  %s937_s5 = int_to_ptr.hbm [resolvable:$true] %s936_s5 }
  0x47   : > { %3329 = dma.hbm_to_vmem [thread:$0]  (!%p4028_p10), %s937_s5, 4096, %s939_s12, %s927_s16, %s3820_s21, %s3820_s21, %s3821_s20  }
  0x48   : > { %s3294_s10 = smul.u32 384, %s3808_s3  ;;  %s4882_s22 = sld [smem:[#allocation34_spill]] }
  0x49   : > { %s764_s15 = scalar_lea.vmem [#allocation3], %s3293_s18  ;;  %s761_s17 = scalar_lea.sflag [#allocation4], %s4019_s0 }
  0x4a   : > { %s772_s11 = sshll.u32 %s764_s15, 4  ;;  %s3822_s30 = smov 384   ;;  %s773_s11 = int_to_ptr.vmem [resolvable:$true] %s772_s11 }
  0x4b   : > { %s3823_s12 = smov 24   ;;  %s833_s5 = scalar_lea.vmem [#allocation7], %s4033_s28 }
  0x4c   : > { %s841_s18 = sshll.u32 %s833_s5, 4  ;;  %s4884_s0 = smov 8   ;;  %s842_s18 = int_to_ptr.vmem [resolvable:$true] %s841_s18 }
  0x4d   : > { %s4885_s25 = smov 128   ;;  %s4887_s13 = sld [smem:[#allocation44_spill]] }
  0x4e   : > { %s769_s14 = scalar_lea.hbm %s4882_s22, %s3294_s10  ;;  %s4883_s10 = sld [smem:[#allocation40_spill]] }
  0x4f   : > { %s770_s4 = sshll.u32 %s769_s14, 4  ;;  %s4886_s14 = scalar_lea.sflag [#allocation6], %s4026_s27  ;;  %s771_s4 = int_to_ptr.hbm [resolvable:$true] %s770_s4 }
  0x50   : > { %3314 = dma.hbm_to_vmem [thread:$0]  (!%p4028_p10), %s771_s4, 6144, %s773_s11, %s761_s17, %s3822_s30, %s3822_s30, %s3823_s12  }
  0x51   : > { %s890_s11 = scalar_lea.vmem [#allocation10], %s4033_s28  ;;  %s4888_s20 = scalar_lea.sflag [#allocation9], %s4026_s27 }
  0x52   : > { %s898_s4 = sshll.u32 %s890_s11, 4  ;;  %s4889_s19 = sld [smem:[#allocation50_spill]]  ;;  %s899_s4 = int_to_ptr.vmem [resolvable:$true] %s898_s4 }
  0x53   : > { %s895_s30 = scalar_lea.hbm %s4887_s13, %s4036_s9  ;;  %s959_s5 = scalar_lea.vmem [#allocation13], %s4054_s8 }
  0x54   : > { %s838_s22 = scalar_lea.hbm %s4883_s10, %s4036_s9  ;;  %s896_s12 = sshll.u32 %s895_s30, 4  ;;  %s897_s12 = int_to_ptr.hbm [resolvable:$true] %s896_s12 }
  0x55   : > { %s839_s23 = sshll.u32 %s838_s22, 4  ;;  %s840_s23 = int_to_ptr.hbm [resolvable:$true] %s839_s23 }
  0x56   : > { %3320 = dma.hbm_to_vmem [thread:$0]  (!%p4028_p10), %s840_s23, 2048, %s842_s18, %s4886_s14, %s4885_s25, %s4885_s25, %s4884_s0  }
  0x57   : > { %3326 = dma.hbm_to_vmem [thread:$0]  (!%p4028_p10), %s897_s12, 2048, %s899_s4, %s4888_s20, %s4885_s25, %s4885_s25, %s4884_s0  }
  0x58   : > { %s964_s22 = scalar_lea.hbm %s4889_s19, %s4057_s24  ;;  %s967_s18 = sshll.u32 %s959_s5, 4  ;;  %s968_s18 = int_to_ptr.vmem [resolvable:$true] %s967_s18 }
  0x59   : > { %s965_s23 = sshll.u32 %s964_s22, 4  ;;  %997 = sbr.rel (%p4059_p13) target bundleno = 3816 (0xee8), region = 120  ;;  %s966_s23 = int_to_ptr.hbm [resolvable:$true] %s965_s23 }
  0x5a   : > { %3332 = dma.hbm_to_vmem [thread:$0]  (!%p4028_p10), %s966_s23, 4096, %s968_s18, %s927_s16, %s4885_s25, %s4885_s25, %s4884_s0  }
  0x5e   : > { %s999_s28 = sand.u32 1, %s3792_s2  }
  0x5f   : > { %s3295_s9 = smul.u32 384, %s999_s28  ;;  %s1000_s14 = scalar_lea.sflag [#allocation4], %s999_s28 }
  0x61   : > { %s4130_s24 = scalar_lea.vmem [#allocation3], %s3295_s9 }
  0x62   : > { %3771 = dma.done.wait (%p4021_p9), %s1000_s14, 6144  }
  0x63   : > { %3773 = vsyncadd (%p4021_p9), %s1000_s14, 4294961152  ;;  %s4890_s29 = sadd.s32 4294967295, %s3816_s1   ;;  %s3226_s8 = sshll.u32 %s999_s28, 7 }
  0x64   : > { %s1009_s27 = sand.u32 1, %s4890_s29   ;;  %s4138_s6 = scalar_lea.vmem [#allocation5], %s3226_s8 }
  0x65   : > { %s1010_s16 = scalar_lea.sflag [#allocation6], %s1009_s27 }
  0x66   : > { %3775 = dma.done.wait (%p4021_p9), %s1010_s16, 4096  }
  0x67   : > { %3777 = vsyncadd (%p4021_p9), %s1010_s16, 4294963200  ;;  %s4144_s0 = sshll.u32 %s999_s28, 8  ;;  %s4146_s25 = scalar_lea.vmem [#allocation7], %s3226_s8 }
  0x68   : > { %s1030_s15 = scalar_lea.sflag [#allocation9], %s1009_s27  ;;  %s4149_s17 = scalar_lea.vmem [#allocation8], %s4144_s0 }
  0x69   : > { %3779 = dma.done.wait (%p4021_p9), %s1030_s15, 6144  }
  0x6a   : > { %3781 = vsyncadd (%p4021_p9), %s1030_s15, 4294961152  ;;  %s4155_s30 = scalar_lea.vmem [#allocation10], %s3226_s8  ;;  %s1050_s11 = scalar_lea.sflag [#allocation12], %s1009_s27 }
  0x6b   : > { %4891 = sst [smem:[#allocation27_spill]] %s4155_s30  ;;  %s4158_s4 = scalar_lea.vmem [#allocation11], %s4144_s0 }
  0x6c   : > { %4892 = sst [smem:[#allocation28_spill]] %s4158_s4 }
  0x6d   : > { %3783 = dma.done.wait (%p4021_p9), %s1050_s11, 8192  }
  0x6e   : > { %3785 = vsyncadd (%p4021_p9), %s1050_s11, 4294959104  ;;  %s4893_s12 = sld [smem:[#allocation20_spill]]  ;;  %p1210_p0 = scmp.lt.s32.totalorder %s3804_s7, 1 }
  0x6f   : > { %s4895_s28 = sld [smem:[#allocation32_spill]] }
  0x70   : > { %s4955_s7 = smov (!%p1210_p0, %s3804_s7), 1  ;;  %s4899_s22 = sld [smem:[#allocation35_spill]] }
  0x71   : > { %s3232_s26 = sshll.u32 %s4955_s7, 3  ;;  %s4902_s16 = sld [smem:[#allocation43_spill]] }
  0x72   : > { %s4907_s1 = sld [smem:[#allocation49_spill]]  ;;  %s3291_s30 = sshll.u32 %s4955_s7, 4 }
  0x73   : > { %s4908_s8 = sld [smem:[#allocation51_spill]] }
  0x74   : > { %p1217_p1 = scmp.lt.s32.totalorder %s4893_s12, 1  ;;  %s4909_s19 = sld [smem:[#allocation52_spill]] }
  0x75   : > { %s4180_s9 = scalar_lea.vmem %s4895_s28, %s3232_s26  ;;  %s4910_s10 = sld [smem:[#allocation53_spill]] }
  0x76   : > { %s4170_s20 = scalar_select %p1217_p1, %s4893_s12, 1 }
  0x77   : > { %4896 = sst [smem:[#allocation29_spill]] %s4180_s9  ;;  %p3237_p2 = scmp.ne.s32.totalorder %s4893_s12, 0 }
  0x78   : > { %s3296_s14 = smul.u32 3, %s4170_s20  ;;  %s3233_s29 = sshll.u32 %s4170_s20, 1 }
  0x79   : > { %s4208_s15 = scalar_lea.vmem %s4902_s16, %s3233_s29  ;;  %s4225_s4 = scalar_lea.vmem %s4907_s1, %s3233_s29 }
  0x7a   : > { %s4194_s5 = scalar_lea.vmem %s4899_s22, %s3296_s14  ;;  %4903 = sst [smem:[#allocation30_spill]] %s4208_s15 }
  0x7b   : > { %s1252_s15 = scalar_lea.vmem %s4908_s8, %s4170_s20  ;;  %s1255_s11 = scalar_lea.vmem %s4909_s19, %s4170_s20 }
  0x7c   : > { %s1258_s22 = scalar_lea.vmem %s4910_s10, %s4170_s20  ;;  %s4911_s26 = sld [smem:[#allocation56_spill]] }
  0x7d   : > { %s4246_s29 = scalar_lea.vmem [#allocation13], %s4144_s0  ;;  %s4912_s1 = sld [smem:[#allocation31_spill]] (!%p3237_p2) }
  0x7e   : > { %1267 = sbr.rel (%p3237_p2) target bundleno = 134 (0x86), region = 152 }
  0x82   : > { %s4243_s28 = scalar_lea.vmem %s4911_s26, %s3291_s30 }
  0x83   : > { %s4913_s27 = smov %s4912_s1  ;;  %v1268_v0 = vld [vmem:[%s4912_s1] sm:$0xff] }
  0x84   : > { %v1269_v1 = vld [vmem:[%s4913_s27 + $0x8] sm:$0xff]  ;;  %1270 = vst [vmem:[#allocation2] sm:$0xff] %v1268_v0 }
  0x85   : > { %1271 = vst [vmem:[#allocation2 + $0x8] sm:$0xff] %v1269_v1 }
  0x86 PF: > { %v1324_v2 = vld [vmem:[%s4130_s24 + $0x170] sm:$0xff]  ;;  %v1321_v3 = vld [vmem:[%s4130_s24 + $0x158] sm:$0xff]  ;;  %v1318_v4 = vld [vmem:[%s4130_s24 + $0x140] sm:$0xff]  ;;  %vm1414_vm0 = vcmask 261120   ;;  %s3824_s0 = smov 64   ;;  %s3826_s30 = smov 32  }
  0x87   : > { %1357 = vmatpush.msra.mxu1 %v1324_v2  ;;  %v1323_v5 = vld [vmem:[%s4130_s24 + $0x168] sm:$0xff]  ;;  %v1320_v6 = vld [vmem:[%s4130_s24 + $0x150] sm:$0xff]  ;;  %v1317_v8 = vld [vmem:[%s4130_s24 + $0x138] sm:$0xff]  ;;  %vm1450_vm2 = vcmask 130048   ;;  %vm1818_vm4 = vcmask 523264   ;;  %vm1821_vm5 = vcmask 785408  }
  0x88   : > { %1334 = vmatpush.msra.mxu0 %v1323_v5  ;;  %v1315_v7 = vld [vmem:[%s4130_s24 + $0x128] sm:$0xff]  ;;  %v1312_v9 = vld [vmem:[%s4130_s24 + $0x110] sm:$0xff]  ;;  %v1314_v10 = vld [vmem:[%s4130_s24 + $0x120] sm:$0xff]  ;;  %s4916_s8 = sld [smem:[#allocation29_spill]]  ;;  %vm2086_vm13 = vcmask 64512  }
  0x89   : > { %1358 = vmatpush.msra.mxu1 %v1321_v3  ;;  %v1309_v11 = vld [vmem:[%s4130_s24 + $0xf8] sm:$0xff]  ;;  %v1311_v12 = vld [vmem:[%s4130_s24 + $0x108] sm:$0xff]  ;;  %v1306_v13 = vld [vmem:[%s4130_s24 + $0xe0] sm:$0xff]  ;;  %s4917_s19 = sld [smem:[#allocation38_spill]] }
  0x8a   : > { %1335 = vmatpush.msra.mxu0 %v1320_v6  ;;  %v1308_v14 = vld [vmem:[%s4130_s24 + $0xf0] sm:$0xff]  ;;  %v1325_v15 = vld [vmem:[%s4130_s24 + $0x178] sm:$0xff]  ;;  %v1322_v16 = vld [vmem:[%s4130_s24 + $0x160] sm:$0xff]  ;;  %s4919_s23 = sld [smem:[#allocation39_spill]] }
  0x8b   : > { %1359 = vmatpush.msra.mxu1 %v1318_v4  ;;  %v1303_v17 = vld [vmem:[%s4130_s24 + $0xc8] sm:$0xff]  ;;  %v1305_v18 = vld [vmem:[%s4130_s24 + $0xd8] sm:$0xff]  ;;  %1380 = vmatpush.msra.mxu2 %v1325_v15  ;;  %v1300_v20 = vld [vmem:[%s4130_s24 + $0xb0] sm:$0xff]  ;;  %v3827_v15 = vmov -1e+30   ;;  %s4921_s2 = sld [smem:[#allocation30_spill]] }
  0x8c   : > { %1336 = vmatpush.msra.mxu0 %v1317_v8  ;;  %v1319_v19 = vld [vmem:[%s4130_s24 + $0x148] sm:$0xff]  ;;  %v1302_v21 = vld [vmem:[%s4130_s24 + $0xc0] sm:$0xff]  ;;  %v1297_v22 = vld [vmem:[%s4130_s24 + $0x98] sm:$0xff]  ;;  %s4922_s9 = sld [smem:[#allocation41_spill]] }
  0x8d   : > { %1360 = vmatpush.msra.mxu1 %v1315_v7  ;;  %1381 = vmatpush.msra.mxu2 %v1322_v16  ;;  %v1299_v23 = vld [vmem:[%s4130_s24 + $0xa8] sm:$0xff]  ;;  %v1316_v24 = vld [vmem:[%s4130_s24 + $0x130] sm:$0xff]  ;;  %v1294_v25 = vld [vmem:[%s4130_s24 + $0x80] sm:$0xff] }
  0x8e   : > { %1337 = vmatpush.msra.mxu0 %v1314_v10  ;;  %v1296_v26 = vld [vmem:[%s4130_s24 + $0x90] sm:$0xff]  ;;  %v1313_v27 = vld [vmem:[%s4130_s24 + $0x118] sm:$0xff]  ;;  %v1310_v28 = vld [vmem:[%s4130_s24 + $0x100] sm:$0xff] }
  0x8f   : > { %1361 = vmatpush.msra.mxu1 %v1312_v9  ;;  %1382 = vmatpush.msra.mxu2 %v1319_v19  ;;  %v1291_v29 = vld [vmem:[%s4130_s24 + $0x68] sm:$0xff]  ;;  %v1293_v30 = vld [vmem:[%s4130_s24 + $0x78] sm:$0xff]  ;;  %v1288_v32 = vld [vmem:[%s4130_s24 + $0x50] sm:$0xff]  ;;  %s4918_s14 = scalar_lea.vmem %s4917_s19, %s4170_s20  ;;  %s4930_s19 = sld [smem:[#allocation46_spill]] }
  0x90   : > { %1338 = vmatpush.msra.mxu0 %v1311_v12  ;;  %v1307_v31 = vld [vmem:[%s4130_s24 + $0xe8] sm:$0xff]  ;;  %v1290_v33 = vld [vmem:[%s4130_s24 + $0x60] sm:$0xff]  ;;  %v1304_v34 = vld [vmem:[%s4130_s24 + $0xd0] sm:$0xff]  ;;  %v1403_v12 = vlaneseq  ;;  %s4920_s26 = scalar_lea.vmem %s4919_s23, %s4170_s20  ;;  %s4932_s23 = sld [smem:[#allocation47_spill]] }
  0x91   : > { %1362 = vmatpush.msra.mxu1 %v1309_v11  ;;  %1383 = vmatpush.msra.mxu2 %v1316_v24  ;;  %v1285_v35 = vld [vmem:[%s4130_s24 + $0x38] sm:$0xff]  ;;  %v1287_v36 = vld [vmem:[%s4130_s24 + $0x48] sm:$0xff]  ;;  %v1282_v38 = vld [vmem:[%s4130_s24 + $0x20] sm:$0xff] }
  0x92   : > { %1339 = vmatpush.msra.mxu0 %v1308_v14  ;;  %v1301_v37 = vld [vmem:[%s4130_s24 + $0xb8] sm:$0xff]  ;;  %v1284_v39 = vld [vmem:[%s4130_s24 + $0x30] sm:$0xff]  ;;  %v1298_v40 = vld [vmem:[%s4130_s24 + $0xa0] sm:$0xff]  ;;  %v1407_v14 = vand.u32 127, %v1403_v12  ;;  %s4923_s16 = scalar_lea.vmem %s4922_s9, %s4170_s20 }
  0x93   : > { %1363 = vmatpush.msra.mxu1 %v1306_v13  ;;  %1384 = vmatpush.msra.mxu2 %v1313_v27  ;;  %v1279_v41 = vld [vmem:[%s4130_s24 + $0x8] sm:$0xff]  ;;  %v1281_v42 = vld [vmem:[%s4130_s24 + $0x18] sm:$0xff]  ;;  %v4296_v43 = vld [vmem:[#allocation2] sm:$0xff]  ;;  %v1404_v13 = vshrl.u32 %v1403_v12, 7 }
  0x94   : > { %1340 = vmatpush.msra.mxu0 %v1305_v18  ;;  %v1295_v44 = vld [vmem:[%s4130_s24 + $0x88] sm:$0xff]  ;;  %v1278_v45 = vld [vmem:[%s4130_s24] sm:$0xff]  ;;  %v1292_v46 = vld [vmem:[%s4130_s24 + $0x70] sm:$0xff] }
  0x95   : > { %1364 = vmatpush.msra.mxu1 %v1303_v17  ;;  %1385 = vmatpush.msra.mxu2 %v1310_v28  ;;  %v1289_v47 = vld [vmem:[%s4130_s24 + $0x58] sm:$0xff]  ;;  %v1286_v48 = vld [vmem:[%s4130_s24 + $0x40] sm:$0xff]  ;;  %v1283_v50 = vld [vmem:[%s4130_s24 + $0x28] sm:$0xff]  ;;  %vm1408_vm1 = vcmp.ge.s32.totalorder %v1404_v13, %v1407_v14  ;;  %v1405_v17 = vadd.s32 8, %v1404_v13 }
  0x96   : > { %1341 = vmatpush.msra.mxu0 %v1302_v21  ;;  %v4305_v49 = vld [vmem:[#allocation2 + $0x8] sm:$0xff]  ;;  %v1280_v51 = vld [vmem:[%s4130_s24 + $0x10] sm:$0xff]  ;;  %s3825_s24 = smov 96   ;;  %v4343_v16 = vsel %vm1408_vm1, 0.0, %v3827_v15 }
  0x97   : > { %1365 = vmatpush.msra.mxu1 %v1300_v20  ;;  %1386 = vmatpush.msra.mxu2 %v1307_v31  ;;  %v1326_v53 = vld [vmem:[%s4194_s5] sm:$0x7]  ;;  %vm1409_vm3 = vcmp.ge.s32.totalorder %v1405_v17, %v1407_v14  ;;  %s4914_s5 = sld [smem:[#allocation37_spill]] }
  0x98   : > { %1342 = vmatpush.msra.mxu0 %v1299_v23  ;;  %v1329_v55 = vperm.slane %v1326_v53, 1  ;;  %v1328_v56 = vperm.slane %v1326_v53, 0  ;;  %v1330_v2 = vperm.slane %v1326_v53, 2  ;;  %v4347_v21 = vsel %vm1409_vm3, 0.0, %v3827_v15 }
  0x99   : > { %1366 = vmatpush.msra.mxu1 %v1297_v22  ;;  %1387 = vmatpush.msra.mxu2 %v1304_v34 }
  0x9a   : > { %1343 = vmatpush.msra.mxu0 %v1296_v26 }
  0x9b   : > { %1367 = vmatpush.msra.mxu1 %v1294_v25  ;;  %1388 = vmatpush.msra.mxu2 %v1301_v37 }
  0x9c   : > { %1344 = vmatpush.msra.mxu0 %v1293_v30 }
  0x9d   : > { %1368 = vmatpush.msra.mxu1 %v1291_v29  ;;  %1389 = vmatpush.msra.mxu2 %v1298_v40  ;;  %s4915_s21 = scalar_lea.vmem %s4914_s5, %s4170_s20  ;;  %s4924_s5 = sld [smem:[#allocation33_spill]] }
  0x9e   : > { %1345 = vmatpush.msra.mxu0 %v1290_v33 }
  0x9f   : > { %1369 = vmatpush.msra.mxu1 %v1288_v32  ;;  %1390 = vmatpush.msra.mxu2 %v1295_v44 }
  0xa0   : > { %1346 = vmatpush.msra.mxu0 %v1287_v36 }
  0xa1   : > { %1370 = vmatpush.msra.mxu1 %v1285_v35  ;;  %1391 = vmatpush.msra.mxu2 %v1292_v46 }
  0xa2   : > { %1347 = vmatpush.msra.mxu0 %v1284_v39 }
  0xa3   : > { %1371 = vmatpush.msra.mxu1 %v1282_v38  ;;  %1392 = vmatpush.msra.mxu2 %v1289_v47 }
  0xa4   : > { %1348 = vmatpush.msra.mxu0 %v1281_v42 }
  0xa5   : > { %1372 = vmatpush.msra.mxu1 %v1279_v41  ;;  %1393 = vmatpush.msra.mxu2 %v1286_v48 }
  0xa6   : > { %1373 = vmatmul.f32.vlgmr.msra.gmra.mxu1 %v4296_v43  ;;  %1349 = vmatpush.msra.mxu0 %v1278_v45 }
  0xa7   : > { %1350 = vmatmul.f32.vlgmr.msra.gmra.mxu0 %v4296_v43  ;;  %1394 = vmatpush.msra.mxu2 %v1283_v50 }
  0xa9   : > { %1395 = vmatpush.msra.mxu2 %v1280_v51 }
  0xaa   : > { %1396 = vmatmul.f32.vlgmr.msra.gmra.mxu2 %v4296_v43 }
  0xae   : > { %1376 = vmatmul.f32.gmra.mxu1 %v4305_v49 }
  0xaf   : > { %1353 = vmatmul.f32.gmra.mxu0 %v4305_v49 }
  0xb2   : > { %1399 = vmatmul.f32.gmra.mxu2 %v4305_v49 }
 0x123   : > { %v1374_v52 = vpop.f32.mrf.mxu1 }
 0x124   : > { %v1351_v54 = vpop.f32.mrf.mxu0  ;;  %v1375_v60 = vadd.f32 %v1374_v52, %v1329_v55 }
 0x125   : > { %v1352_v59 = vadd.f32 %v1351_v54, %v1328_v56 }
 0x127   : > { %v4317_v61 = vmul.f32 0.17677669, %v1352_v59 }
 0x12b   : > { %v1377_v57 = vpop.f32.mrf.mxu1 }
 0x12c   : > { %v1378_v58 = vadd.f32 %v1377_v57, %v1329_v55  ;;  %v1354_v62 = vpop.f32.mrf.mxu0 }
 0x12d   : > { %v1355_v63 = vadd.f32 %v1354_v62, %v1328_v56  ;;  %v1397_v1 = vpop.f32.mrf.mxu2 }
 0x12e   : > { %1606 = vrot.lane.b32.xlu1 %v1378_v58, %s3824_s0  ;;  %1508 = vrot.lane.b32.xlu2 %v1378_v58, %s3825_s24  ;;  %v4326_v4 = vadd.f32 %v1397_v1, %v1330_v2 }
 0x12f   : > { %3238 = vmatpush.xpose.msk.msra.mxu3 %vm1414_vm0, %v1378_v58  ;;  %v1413_v0 = vmul.f32 0.17677669, %v1355_v63 }
 0x133   : > { %3239 = vmatpush.xpose.msk.msra.mxu3 %vm1414_vm0, %v1375_v60 }
 0x135   : > { %v1400_v3 = vpop.f32.mrf.mxu2 }
 0x136   : > { %3240 = vmatmul.msk.f32.vlgmr.msra.gmra.mxu3 %vm1414_vm0, %v4317_v61  ;;  %1506 = vrot.lane.b32.xlu2 %v1375_v60, %s3825_s24  ;;  %v4328_v5 = vadd.f32 %v1400_v3, %v1330_v2 }
 0x138   : > { %1493 = vmatpush.msrb.mxu3 %v4328_v5  ;;  %v3409_v12 = vpack.i.bf16 %v4326_v4, %v4328_v5 }
 0x13a   : > { %1494 = vmatpush.msrb.mxu3 %v4326_v4 }
 0x13e   : > { %3241 = vmatmul.msk.f32.gmra.mxu3 %vm1414_vm0, %v1413_v0  ;;  %1604 = vrot.lane.b32.xlu2 %v1375_v60, %s3824_s0 }
 0x146   : > { %1504 = vrot.lane.b32.xlu2 %v1413_v0, %s3825_s24 }
 0x14e   : > { %1600 = vrot.lane.b32.xlu2 %v4317_v61, %s3824_s0 }
 0x156   : > { %1700 = vrot.lane.b32.xlu2 %v1375_v60, %s3826_s30 }
 0x15e   : > { %1698 = vrot.lane.b32.xlu2 %v1413_v0, %s3826_s30 }
 0x188   : > { %v1509_v6 = vpop.permute.xlu2 %1508 }
 0x189   : > { %3244 = vmatpush.xpose.msk.msra.mxu3 %vm1414_vm0, %v1509_v6 }
 0x190   : > { %v1507_v7 = vpop.permute.xlu2 %1506 }
 0x191   : > { %3245 = vmatpush.xpose.msk.msra.mxu3 %vm1414_vm0, %v1507_v7 }
 0x198   : > { %v1605_v8 = vpop.permute.xlu2 %1604 }
 0x1a0   : > { %v1607_v9 = vpop.permute.xlu1 %1606  ;;  %v4338_v10 = vpop.permute.xlu2 %1504 }
 0x1a1   : > { %3250 = vmatpush.xpose.msk.msrb.mxu2 %vm1414_vm0, %v1607_v9 }
 0x1a5   : > { %3251 = vmatpush.xpose.msk.msrb.mxu2 %vm1414_vm0, %v1605_v8 }
 0x1a8   : > { %v1601_v11 = vpop.permute.xlu2 %1600 }
 0x1a9   : > { %3252 = vmatmul.msk.f32.vlgmr.msrb.gmra.mxu2 %vm1414_vm0, %v1601_v11 }
 0x1b0   : > { %v1701_v46 = vpop.permute.xlu2 %1700 }
 0x1b8   : > { %v1699_v53 = vpop.permute.xlu2 %1698 }
 0x1b9   : > { %v1444_v18 = vpop.f32.mrf.mxu3 }
 0x1ba   : > { %v1445_v19 = vadd.f32 %v1444_v18, %v4343_v16 }
 0x1bc   : > { %v1451_v20 = vsel %vm1450_vm2, %v1445_v19, -inf }
 0x1bd   : > { %1452 = vmax.xlane.f32.xlu0 %v1451_v20 }
 0x1c1   : > { %v1447_v22 = vpop.f32.mrf.mxu3 }
 0x1c2   : > { %v1448_v23 = vadd.f32 %v1447_v22, %v4347_v21 }
 0x1c4   : > { %v1454_v24 = vsel %vm1450_vm2, %v1448_v23, -inf }
 0x1c5   : > { %1455 = vmax.xlane.f32.xlu0 %v1454_v24 }
 0x1d9   : > { %1502 = vrot.lane.b32.xlu0 %v4317_v61, %s3825_s24 }
 0x1e1   : > { %1702 = vrot.lane.b32.xlu0 %v1378_v58, %s3826_s30 }
 0x1e9   : > { %1602 = vrot.lane.b32.xlu0 %v1413_v0, %s3824_s0 }
 0x22c   : > { %v1633_v25 = vpop.f32.mrf.mxu2 }
 0x22d   : > { %v1634_v26 = vadd.f32 %v1633_v25, %v4343_v16 }
 0x22f   : > { %v1639_v27 = vsel %vm1450_vm2, %v1634_v26, -inf }
 0x230   : > { %v1453_v28 = vpop.xlane.xlu0 %1452  ;;  %1640 = vmax.xlane.f32.xlu2 %v1639_v27 }
 0x231   : > { %v1457_v29 = vsub.f32 %v1445_v19, %v1453_v28 }
 0x233   : > { %v1459_v30 = vmul.f32 1.442695, %v1457_v29 }
 0x235   : > { %3434 = vpow2.f32 %v1459_v30 }
 0x238   : > { %v1456_v31 = vpop.xlane.xlu0 %1455 }
 0x239   : > { %v1458_v32 = vsub.f32 %v1448_v23, %v1456_v31 }
 0x23b   : > { %v3435_v33 = vpop.eup %3434  ;;  %v1461_v34 = vmul.f32 1.442695, %v1458_v32 }
 0x23c   : > { %v1463_v35 = vsel %vm1450_vm2, %v3435_v33, 0.0 }
 0x23d   : > { %3436 = vpow2.f32 %v1461_v34  ;;  %1464 = vadd.xlane.f32.xlu1 %v1463_v35 }
 0x243   : > { %v3437_v36 = vpop.eup %3436 }
 0x244   : > { %v1466_v37 = vsel %vm1450_vm2, %v3437_v36, 0.0 }
 0x245   : > { %1467 = vadd.xlane.f32.xlu1 %v1466_v37 }
 0x24b   : > { %v1503_v38 = vpop.permute.xlu0 %1502 }
 0x253   : > { %v1703_v39 = vpop.permute.xlu0 %1702 }
 0x25b   : > { %v1603_v40 = vpop.permute.xlu0 %1602 }
 0x25c   : > { %3253 = vmatmul.msk.f32.gmra.mxu2 %vm1414_vm0, %v1603_v40 }
 0x25e   : > { %1696 = vrot.lane.b32.xlu1 %v4317_v61, %s3826_s30 }
 0x2a3   : > { %v1641_v60 = vpop.xlane.xlu2 %1640 }
 0x2a4   : > { %v1645_v63 = vsub.f32 %v1634_v26, %v1641_v60 }
 0x2a6   : > { %v1647_v1 = vmul.f32 1.442695, %v1645_v63 }
 0x2b0   : > { %v1465_v41 = vpop.xlane.xlu1 %1464 }
 0x2b1   : > { %3438 = vrcp.f32 %v1465_v41 }
 0x2b7   : > { %v3439_v42 = vpop.eup %3438 }
 0x2b8   : > { %v1468_v44 = vpop.xlane.xlu1 %1467  ;;  %v1471_v45 = vmul.f32 %v3439_v42, %v3435_v33 }
 0x2b9   : > { %3440 = vrcp.f32 %v1468_v44 }
 0x2ba   : > { %3242 = vmatmul.msk.f32.vlgmr.msrb.gmra.mxu3 %vm1450_vm2, %v1471_v45  ;;  %3442 = vpow2.f32 %v1647_v1 }
 0x2bb   : > { %3256 = vmatpush.xpose.msk.msrb.mxu3 %vm1414_vm0, %v1703_v39 }
 0x2bf   : > { %v3441_v47 = vpop.eup %3440  ;;  %3257 = vmatpush.xpose.msk.msrb.mxu3 %vm1414_vm0, %v1701_v46 }
 0x2c0   : > { %v1472_v48 = vmul.f32 %v3441_v47, %v3437_v36  ;;  %v4383_v7 = vpop.eup %3442 }
 0x2c1   : > { %v1651_v11 = vsel %vm1450_vm2, %v4383_v7, 0.0 }
 0x2c2   : > { %3243 = vmatmul.msk.f32.gmra.mxu3 %vm1450_vm2, %v1472_v48 }
 0x2ca   : > { %3246 = vmatmul.msk.f32.vlgmr.msra.gmra.mxu3 %vm1414_vm0, %v1503_v38 }
 0x2d0   : > { %v1697_v50 = vpop.permute.xlu1 %1696 }
 0x2d2   : > { %3247 = vmatmul.msk.f32.gmra.mxu3 %vm1414_vm0, %v4338_v10 }
 0x2da   : > { %3258 = vmatmul.msk.f32.vlgmr.msrb.gmra.mxu3 %vm1414_vm0, %v1697_v50 }
 0x2df   : > { %v1636_v51 = vpop.f32.mrf.mxu2 }
 0x2e0   : > { %v1637_v52 = vadd.f32 %v1636_v51, %v4347_v21 }
 0x2e2   : > { %3259 = vmatmul.msk.f32.gmra.mxu3 %vm1414_vm0, %v1699_v53  ;;  %v1642_v54 = vsel %vm1450_vm2, %v1637_v52, -inf }
 0x2e3   : > { %1643 = vmax.xlane.f32.xlu0 %v1642_v54 }
 0x33d   : > { %v4373_v55 = vpop.f32.mrf.mxu3 }
 0x345   : > { %v4375_v56 = vpop.f32.mrf.mxu3 }
 0x34d   : > { %v1535_v57 = vpop.f32.mrf.mxu3 }
 0x34e   : > { %v1536_v58 = vadd.f32 %v1535_v57, %v4343_v16 }
 0x350   : > { %v1541_v59 = vsel %vm1450_vm2, %v1536_v58, -inf }
 0x351   : > { %1542 = vmax.xlane.f32.xlu1 %v1541_v59 }
 0x355   : > { %v1538_v61 = vpop.f32.mrf.mxu3 }
 0x356   : > { %v1539_v62 = vadd.f32 %v1538_v61, %v4347_v21  ;;  %v1644_v13 = vpop.xlane.xlu0 %1643 }
 0x357   : > { %v1646_v14 = vsub.f32 %v1637_v52, %v1644_v13  ;;  %v1836_v13 = vld [vmem:[%s4138_s6 + $0x60] sm:$0xff] }
 0x358   : > { %v1544_v0 = vsel %vm1450_vm2, %v1539_v62, -inf }
 0x359   : > { %1545 = vmax.xlane.f32.xlu0 %v1544_v0  ;;  %v1649_v15 = vmul.f32 1.442695, %v1646_v14  ;;  %v1835_v14 = vld [vmem:[%s4138_s6 + $0x58] sm:$0xff] }
 0x35b   : > { %3444 = vpow2.f32 %v1649_v15  ;;  %v1834_v15 = vld [vmem:[%s4138_s6 + $0x50] sm:$0xff] }
 0x35d   : > { %v1729_v2 = vpop.f32.mrf.mxu3 }
 0x35e   : > { %v1730_v3 = vadd.f32 %v1729_v2, %v4343_v16 }
 0x360   : > { %v1735_v6 = vsel %vm1450_vm2, %v1730_v3, -inf }
 0x361   : > { %1736 = vmax.xlane.f32.xlu1 %v1735_v6  ;;  %v3445_v16 = vpop.eup %3444 }
 0x362   : > { %v1654_v17 = vsel %vm1450_vm2, %v3445_v16, 0.0 }
 0x365   : > { %v1732_v8 = vpop.f32.mrf.mxu3 }
 0x366   : > { %v1733_v9 = vadd.f32 %v1732_v8, %v4347_v21 }
 0x368   : > { %v1738_v10 = vsel %vm1450_vm2, %v1733_v9, -inf }
 0x369   : > { %1739 = vmax.xlane.f32.xlu2 %v1738_v10  ;;  %1652 = vadd.xlane.f32.xlu1 %v1651_v11  ;;  %v1839_v10 = vld [vmem:[%s4138_s6 + $0x78] sm:$0xff]  ;;  %v1838_v11 = vld [vmem:[%s4138_s6 + $0x70] sm:$0xff] }
 0x36a   : > { %1844 = vmatpush.msrb.mxu1 %v1839_v10 }
 0x36c   : > { %1845 = vmatpush.msrb.mxu1 %v1838_v11 }
 0x36d   : > { %3410 = vrot.lane.b32.xlu0 %v3409_v12, %s3825_s24 }
 0x397   : > { %1655 = vadd.xlane.f32.xlu0 %v1654_v17  ;;  %v1833_v17 = vld [vmem:[%s4138_s6 + $0x48] sm:$0xff] }
 0x3c4   : > { %v1543_v18 = vpop.xlane.xlu1 %1542 }
 0x3c5   : > { %v1547_v19 = vsub.f32 %v1536_v58, %v1543_v18  ;;  %v1832_v18 = vld [vmem:[%s4138_s6 + $0x40] sm:$0xff] }
 0x3c7   : > { %v1549_v20 = vmul.f32 1.442695, %v1547_v19  ;;  %v1831_v19 = vld [vmem:[%s4138_s6 + $0x38] sm:$0xff] }
 0x3c9   : > { %3446 = vpow2.f32 %v1549_v20  ;;  %v1830_v20 = vld [vmem:[%s4138_s6 + $0x30] sm:$0xff] }
 0x3cc   : > { %v1546_v21 = vpop.xlane.xlu0 %1545 }
 0x3cd   : > { %v1548_v22 = vsub.f32 %v1539_v62, %v1546_v21  ;;  %v1829_v21 = vld [vmem:[%s4138_s6 + $0x28] sm:$0xff] }
 0x3cf   : > { %v3447_v23 = vpop.eup %3446  ;;  %v1551_v24 = vmul.f32 1.442695, %v1548_v22  ;;  %v1828_v22 = vld [vmem:[%s4138_s6 + $0x20] sm:$0xff] }
 0x3d0   : > { %v1553_v4 = vsel %vm1450_vm2, %v3447_v23, 0.0 }
 0x3d1   : > { %3448 = vpow2.f32 %v1551_v24  ;;  %1554 = vadd.xlane.f32.xlu1 %v1553_v4  ;;  %v1826_v24 = vld [vmem:[%s4138_s6 + $0x10] sm:$0xff]  ;;  %v1825_v4 = vld [vmem:[%s4138_s6 + $0x8] sm:$0xff] }
 0x3d4   : > { %v1737_v5 = vpop.xlane.xlu1 %1736 }
 0x3d5   : > { %v1741_v25 = vsub.f32 %v1730_v3, %v1737_v5  ;;  %v1824_v5 = vld [vmem:[%s4138_s6] sm:$0xff] }
 0x3d7   : > { %v3449_v26 = vpop.eup %3448  ;;  %v1743_v27 = vmul.f32 1.442695, %v1741_v25 }
 0x3d8   : > { %v1556_v28 = vsel %vm1450_vm2, %v3449_v26, 0.0 }
 0x3d9   : > { %3450 = vpow2.f32 %v1743_v27  ;;  %1557 = vadd.xlane.f32.xlu2 %v1556_v28 }
 0x3dc   : > { %v1740_v34 = vpop.xlane.xlu2 %1739  ;;  %v1653_v39 = vpop.xlane.xlu1 %1652 }
 0x3dd   : > { %v1742_v35 = vsub.f32 %v1733_v9, %v1740_v34 }
 0x3df   : > { %v3451_v29 = vpop.eup %3450  ;;  %v3411_v30 = vpop.permute.xlu0 %3410  ;;  %v1745_v36 = vmul.f32 1.442695, %v1742_v35 }
 0x3e0   : > { %v1747_v31 = vsel %vm1450_vm2, %v3451_v29, 0.0  ;;  %v3412_v32 = vunpack.i.l.bf16 %v3411_v30  ;;  %v3413_v33 = vunpack.i.h.bf16 %v3411_v30 }
 0x3e1   : > { %1748 = vadd.xlane.f32.xlu1 %v1747_v31  ;;  %3452 = vpow2.f32 %v1745_v36 }
 0x3e2   : > { %1591 = vmatpush.msrb.mxu0 %v3412_v32 }
 0x3e4   : > { %1592 = vmatpush.msrb.mxu0 %v3413_v33 }
 0x3e7   : > { %v3453_v37 = vpop.eup %3452 }
 0x3e8   : > { %v1750_v38 = vsel %vm1450_vm2, %v3453_v37, 0.0 }
 0x3f1   : > { %3415 = vrot.lane.b32.xlu2 %v3409_v12, %s3824_s0 }
 0x3fa   : > { %3420 = vrot.lane.b32.xlu1 %v3409_v12, %s3826_s30  ;;  %v1837_v12 = vld [vmem:[%s4138_s6 + $0x68] sm:$0xff] }
 0x3fb   : > { %1846 = vmatpush.msrb.mxu1 %v1837_v12  ;;  %v1941_v12 = vld [vmem:[%s4146_s25 + $0x68] sm:$0xff] }
 0x3fd   : > { %1847 = vmatpush.msrb.mxu1 %v1836_v13  ;;  %v1975_v13 = vld [vmem:[%s4149_s17 + $0x20] sm:$0xff] }
 0x3ff   : > { %1848 = vmatpush.msrb.mxu1 %v1835_v14  ;;  %v1940_v14 = vld [vmem:[%s4146_s25 + $0x60] sm:$0xff] }
 0x401   : > { %1849 = vmatpush.msrb.mxu1 %v1834_v15  ;;  %v1973_v15 = vld [vmem:[%s4149_s17 + $0x10] sm:$0xff] }
 0x403   : > { %1850 = vmatpush.msrb.mxu1 %v1833_v17  ;;  %v1971_v17 = vld [vmem:[%s4149_s17] sm:$0xff] }
 0x405   : > { %1851 = vmatpush.msrb.mxu1 %v1832_v18  ;;  %v4477_v18 = vld [vmem:[%s4916_s8] sm:$0xff] }
 0x407   : > { %1852 = vmatpush.msrb.mxu1 %v1831_v19  ;;  %v1938_v19 = vld [vmem:[%s4146_s25 + $0x50] sm:$0xff] }
 0x409   : > { %1853 = vmatpush.msrb.mxu1 %v1830_v20  ;;  %v1937_v20 = vld [vmem:[%s4146_s25 + $0x48] sm:$0xff] }
 0x40a   : > { %v1656_v46 = vpop.xlane.xlu0 %1655 }
 0x40b   : > { %1854 = vmatpush.msrb.mxu1 %v1829_v21  ;;  %v1936_v21 = vld [vmem:[%s4146_s25 + $0x40] sm:$0xff] }
 0x40d   : > { %1855 = vmatpush.msrb.mxu1 %v1828_v22  ;;  %v1935_v22 = vld [vmem:[%s4146_s25 + $0x38] sm:$0xff] }
 0x41a   : > { %1751 = vadd.xlane.f32.xlu2 %v1750_v38 }
 0x444   : > { %v1555_v40 = vpop.xlane.xlu1 %1554 }
 0x445   : > { %3454 = vrcp.f32 %v1555_v40 }
 0x44b   : > { %v3455_v41 = vpop.eup %3454 }
 0x44c   : > { %v1558_v42 = vpop.xlane.xlu2 %1557  ;;  %v1561_v44 = vmul.f32 %v3455_v41, %v3447_v23  ;;  %v1827_v23 = vld [vmem:[%s4138_s6 + $0x18] sm:$0xff] }
 0x44d   : > { %3456 = vrcp.f32 %v1558_v42  ;;  %1856 = vmatpush.msrb.mxu1 %v1827_v23  ;;  %v3828_v42 = vmov 128.0   ;;  %v1934_v23 = vld [vmem:[%s4146_s25 + $0x30] sm:$0xff] }
 0x44e   : > { %3248 = vmatmul.msk.f32.vlgmr.msrb.gmra.mxu0 %vm1450_vm2, %v1561_v44  ;;  %3458 = vrcp.f32 %v1653_v39 }
 0x44f   : > { %3460 = vrcp.f32 %v1656_v46  ;;  %1857 = vmatpush.msrb.mxu1 %v1826_v24  ;;  %v1933_v24 = vld [vmem:[%s4146_s25 + $0x28] sm:$0xff] }
 0x451   : > { %1858 = vmatpush.msrb.mxu1 %v1825_v4  ;;  %v1932_v4 = vld [vmem:[%s4146_s25 + $0x20] sm:$0xff] }
 0x453   : > { %v3457_v45 = vpop.eup %3456  ;;  %1859 = vmatpush.msrb.mxu1 %v1824_v5  ;;  %v1931_v5 = vld [vmem:[%s4146_s25 + $0x18] sm:$0xff] }
 0x454   : > { %v3416_v47 = vpop.permute.xlu2 %3415  ;;  %v1562_v48 = vmul.f32 %v3457_v45, %v3449_v26  ;;  %v3459_v50 = vpop.eup %3458 }
 0x455   : > { %v3417_v51 = vunpack.i.l.bf16 %v3416_v47  ;;  %v3418_v52 = vunpack.i.h.bf16 %v3416_v47  ;;  %v1659_v53 = vmul.f32 %v3459_v50, %v4383_v7  ;;  %v3461_v54 = vpop.eup %3460  ;;  %v1749_v58 = vpop.xlane.xlu1 %1748  ;;  %v2001_v47 = vld [vmem:[%s4149_s17 + $0xf0] sm:$0xff] }
 0x456   : > { %3249 = vmatmul.msk.f32.gmra.mxu0 %vm1450_vm2, %v1562_v48  ;;  %v1660_v57 = vmul.f32 %v3461_v54, %v3445_v16  ;;  %3462 = vrcp.f32 %v1749_v58  ;;  %v1999_v48 = vld [vmem:[%s4149_s17 + $0xe0] sm:$0xff]  ;;  %2009 = vmatpush.msra.mxu3 %v2001_v47  ;;  %v1997_v50 = vld [vmem:[%s4149_s17 + $0xd0] sm:$0xff] }
 0x457   : > { %1687 = vmatpush.msra.mxu2 %v3417_v51  ;;  %v1943_v51 = vld [vmem:[%s4146_s25 + $0x78] sm:$0xff]  ;;  %v1993_v54 = vld [vmem:[%s4149_s17 + $0xb0] sm:$0xff] }
 0x458   : > { %2010 = vmatpush.msra.mxu3 %v1999_v48 }
 0x459   : > { %1688 = vmatpush.msra.mxu2 %v3418_v52  ;;  %v1995_v52 = vld [vmem:[%s4149_s17 + $0xc0] sm:$0xff] }
 0x45a   : > { %3254 = vmatmul.msk.f32.vlgmr.msra.gmra.mxu2 %vm1450_vm2, %v1659_v53  ;;  %2011 = vmatpush.msra.mxu3 %v1997_v50 }
 0x45b   : > { %1948 = vmatpush.msrb.mxu2 %v1943_v51 }
 0x45c   : > { %v3463_v60 = vpop.eup %3462  ;;  %2012 = vmatpush.msra.mxu3 %v1995_v52 }
 0x45d   : > { %v1755_v63 = vmul.f32 %v3463_v60, %v3451_v29 }
 0x45e   : > { %2013 = vmatpush.msra.mxu3 %v1993_v54  ;;  %v4512_v54 = vld [vmem:[%s4921_s2] sm:$0x3] }
 0x462   : > { %3255 = vmatmul.msk.f32.gmra.mxu2 %vm1450_vm2, %v1660_v57  ;;  %v1991_v57 = vld [vmem:[%s4149_s17 + $0xa0] sm:$0xff] }
 0x463   : > { %2014 = vmatpush.msra.mxu3 %v1991_v57  ;;  %v2005_v57 = vperm.slane %v4512_v54, 0 }
 0x46c   : > { %v3421_v59 = vpop.permute.xlu1 %3420 }
 0x46d   : > { %v3422_v61 = vunpack.i.l.bf16 %v3421_v59  ;;  %v3423_v62 = vunpack.i.h.bf16 %v3421_v59  ;;  %v1989_v59 = vld [vmem:[%s4149_s17 + $0x90] sm:$0xff] }
 0x46e   : > { %2015 = vmatpush.msra.mxu3 %v1989_v59 }
 0x46f   : > { %1783 = vmatpush.msra.mxu0 %v3422_v61  ;;  %v1987_v61 = vld [vmem:[%s4149_s17 + $0x80] sm:$0xff] }
 0x470   : > { %2016 = vmatpush.msra.mxu3 %v1987_v61  ;;  %v3427_v61 = vld [vmem:[%s4923_s16] ss:$0 sm:$0xff] }
 0x471   : > { %1784 = vmatpush.msra.mxu0 %v3423_v62 }
 0x472   : > { %3260 = vmatmul.msk.f32.vlgmr.msra.gmra.mxu0 %vm1450_vm2, %v1755_v63  ;;  %v1985_v63 = vld [vmem:[%s4149_s17 + $0x70] sm:$0xff] }
 0x473   : > { %2017 = vmatpush.msra.mxu3 %v1985_v63 }
 0x48d   : > { %v1752_v0 = vpop.xlane.xlu2 %1751 }
 0x48e   : > { %3464 = vrcp.f32 %v1752_v0 }
 0x48f   : > { %3466 = vrcp.f32 %v3828_v42 }
 0x494   : > { %v3465_v1 = vpop.eup %3464 }
 0x495   : > { %v1756_v2 = vmul.f32 %v3465_v1, %v3453_v37  ;;  %v3467_v44 = vpop.eup %3466  ;;  %v1983_v1 = vld [vmem:[%s4149_s17 + $0x60] sm:$0xff] }
 0x496   : > { %v1876_v45 = vmul.f32 128.0, %v3467_v44  ;;  %vm1880_vm6 = vweird.f32 %v3467_v44  ;;  %2018 = vmatpush.msra.mxu3 %v1983_v1 }
 0x497   : > { %3261 = vmatmul.msk.f32.gmra.mxu0 %vm1450_vm2, %v1756_v2 }
 0x498   : > { %v1877_v46 = vsub.f32 1.0, %v1876_v45 }
 0x4cb   : > { %v1594_v3 = vpop.f32.mrf.mxu0 }
 0x4d3   : > { %v1597_v7 = vpop.f32.mrf.mxu0 }
 0x4dd   : > { %v1690_v6 = vpop.f32.mrf.mxu2 }
 0x4de   : > { %1802 = vrot.lane.b32.xlu1 %v1690_v6, %s3824_s0  ;;  %v1979_v6 = vld [vmem:[%s4149_s17 + $0x40] sm:$0xff] }
 0x4e5   : > { %v1693_v9 = vpop.f32.mrf.mxu2 }
 0x4e6   : > { %1794 = vrot.lane.b32.xlu1 %v1594_v3, %s3826_s30  ;;  %v1981_v3 = vld [vmem:[%s4149_s17 + $0x50] sm:$0xff] }
 0x4e7   : > { %2019 = vmatpush.msra.mxu3 %v1981_v3 }
 0x4e9   : > { %2020 = vmatpush.msra.mxu3 %v1979_v6 }
 0x4ee   : > { %1796 = vrot.lane.b32.xlu1 %v1597_v7, %s3826_s30  ;;  %v1977_v7 = vld [vmem:[%s4149_s17 + $0x30] sm:$0xff] }
 0x4ef   : > { %v1786_v8 = vpop.f32.mrf.mxu0  ;;  %2021 = vmatpush.msra.mxu3 %v1977_v7 }
 0x4f0   : > { %1810 = vrot.lane.b32.xlu0 %v1786_v8, %s3825_s24 }
 0x4f1   : > { %2022 = vmatpush.msra.mxu3 %v1975_v13  ;;  %v2000_v13 = vld [vmem:[%s4149_s17 + $0xe8] sm:$0xff] }
 0x4f3   : > { %2023 = vmatpush.msra.mxu3 %v1973_v15 }
 0x4f5   : > { %2024 = vmatpush.msra.mxu3 %v1971_v17 }
 0x4f6   : > { %1804 = vrot.lane.b32.xlu1 %v1693_v9, %s3824_s0  ;;  %2025 = vmatmul.f32.vlgmr.msra.gmra.mxu3 %v4477_v18 }
 0x514   : > { %v1789_v16 = vpop.f32.mrf.mxu0 }
 0x515   : > { %1812 = vrot.lane.b32.xlu2 %v1789_v16, %s3825_s24  ;;  %v1939_v16 = vld [vmem:[%s4146_s25 + $0x58] sm:$0xff] }
 0x550   : > { %v1803_v25 = vpop.permute.xlu1 %1802 }
 0x558   : > { %v1795_v26 = vpop.permute.xlu1 %1794 }
 0x559   : > { %v1816_v27 = vsel %vm1414_vm0, %v4373_v55, %v1795_v26  ;;  %v3424_v55 = vld [vmem:[%s4915_s21] ss:$0 sm:$0xff]  ;;  %v1929_v26 = vld [vmem:[%s4146_s25 + $0x8] sm:$0xff]  ;;  %s4925_s21 = scalar_lea.vmem %s4924_s5, %s4955_s7  ;;  %s4926_s7 = sld [smem:[#allocation27_spill]] }
 0x55a   : > { %v1819_v30 = vsel %vm1818_vm4, %v1816_v27, %v1803_v25  ;;  %v1930_v25 = vld [vmem:[%s4146_s25 + $0x10] sm:$0xff]  ;;  %v1928_v27 = vld [vmem:[%s4146_s25] sm:$0xff] }
 0x560   : > { %v1797_v28 = vpop.permute.xlu1 %1796 }
 0x561   : > { %v1817_v33 = vsel %vm1414_vm0, %v4375_v56, %v1797_v28 }
 0x562   : > { %v1811_v29 = vpop.permute.xlu0 %1810 }
 0x563   : > { %v1822_v31 = vsel %vm1821_vm5, %v1819_v30, %v1811_v29 }
 0x564   : > { %1860 = vmatmul.f32.vlgmr.msrb.gmra.mxu1 %v1822_v31 }
 0x568   : > { %v1805_v32 = vpop.permute.xlu1 %1804 }
 0x569   : > { %v1820_v34 = vsel %vm1818_vm4, %v1817_v33, %v1805_v32 }
 0x56f   : > { %v1813_v35 = vpop.permute.xlu2 %1812 }
 0x570   : > { %v1823_v36 = vsel %vm1821_vm5, %v1820_v34, %v1813_v35 }
 0x571   : > { %1863 = vmatmul.f32.gmra.mxu1 %v1823_v36 }
 0x579   : > { %v2026_v59 = vpop.f32.mrf.mxu3 }
 0x5e1   : > { %v1861_v37 = vpop.f32.mrf.mxu1 }
 0x5e2   : > { %v1862_v38 = vadd.f32 %v3424_v55, %v1861_v37 }
 0x5e4   : > { %v1867_v39 = vadd.f32 %v1862_v38, %v4296_v43  ;;  %v1878_v43 = vmul.f32 %v3467_v44, %v1877_v46 }
 0x5e6   : > { %1871 = vadd.xlane.f32.xlu1 %v1867_v39  ;;  %v1879_v53 = vadd.f32 %v3467_v44, %v1878_v43 }
 0x5e8   : > { %v4451_v58 = vsel %vm1880_vm6, %v3467_v44, %v1879_v53 }
 0x5ee   : > { %v1864_v56 = vpop.f32.mrf.mxu1 }
 0x5ef   : > { %v1865_v40 = vadd.f32 %v3424_v55, %v1864_v56 }
 0x5f1   : > { %v1868_v41 = vadd.f32 %v1865_v40, %v4305_v49  ;;  %v1942_v49 = vld [vmem:[%s4146_s25 + $0x70] sm:$0xff] }
 0x5f2   : > { %1949 = vmatpush.msrb.mxu2 %v1942_v49 }
 0x5f3   : > { %1873 = vadd.xlane.f32.xlu0 %v1868_v41 }
 0x5f4   : > { %1950 = vmatpush.msrb.mxu2 %v1941_v12  ;;  %v2002_v12 = vld [vmem:[%s4149_s17 + $0xf8] sm:$0xff] }
 0x5f5   : > { %2029 = vmatpush.msrb.mxu0 %v2002_v12 }
 0x5f6   : > { %1951 = vmatpush.msrb.mxu2 %v1940_v14  ;;  %v1998_v14 = vld [vmem:[%s4149_s17 + $0xd8] sm:$0xff] }
 0x5f7   : > { %2030 = vmatpush.msrb.mxu0 %v2000_v13 }
 0x5f8   : > { %1952 = vmatpush.msrb.mxu2 %v1939_v16  ;;  %v1996_v16 = vld [vmem:[%s4149_s17 + $0xc8] sm:$0xff] }
 0x5f9   : > { %2031 = vmatpush.msrb.mxu0 %v1998_v14 }
 0x5fa   : > { %1953 = vmatpush.msrb.mxu2 %v1938_v19 }
 0x5fb   : > { %2032 = vmatpush.msrb.mxu0 %v1996_v16 }
 0x5fc   : > { %1954 = vmatpush.msrb.mxu2 %v1937_v20 }
 0x5fe   : > { %1955 = vmatpush.msrb.mxu2 %v1936_v21  ;;  %v1994_v21 = vld [vmem:[%s4149_s17 + $0xb8] sm:$0xff] }
 0x5ff   : > { %2033 = vmatpush.msrb.mxu0 %v1994_v21 }
 0x600   : > { %1956 = vmatpush.msrb.mxu2 %v1935_v22  ;;  %v1992_v22 = vld [vmem:[%s4149_s17 + $0xa8] sm:$0xff] }
 0x601   : > { %2034 = vmatpush.msrb.mxu0 %v1992_v22 }
 0x602   : > { %1957 = vmatpush.msrb.mxu2 %v1934_v23 }
 0x604   : > { %1958 = vmatpush.msrb.mxu2 %v1933_v24 }
 0x606   : > { %1959 = vmatpush.msrb.mxu2 %v1932_v4  ;;  %v1990_v4 = vld [vmem:[%s4149_s17 + $0x98] sm:$0xff] }
 0x607   : > { %2035 = vmatpush.msrb.mxu0 %v1990_v4 }
 0x608   : > { %1960 = vmatpush.msrb.mxu2 %v1931_v5 }
 0x60a   : > { %1961 = vmatpush.msrb.mxu2 %v1930_v25  ;;  %v1988_v25 = vld [vmem:[%s4149_s17 + $0x88] sm:$0xff] }
 0x60b   : > { %2036 = vmatpush.msrb.mxu0 %v1988_v25 }
 0x60c   : > { %1962 = vmatpush.msrb.mxu2 %v1929_v26 }
 0x60e   : > { %1963 = vmatpush.msrb.mxu2 %v1928_v27 }
 0x659   : > { %v1872_v60 = vpop.xlane.xlu1 %1871 }
 0x65a   : > { %v1882_v62 = vmul.f32 %v4451_v58, %v1872_v60  ;;  %v2027_v60 = vadd.f32 %v2026_v59, %v2005_v57 }
 0x65c   : > { %v4457_v0 = vsub.f32 %v1867_v39, %v1882_v62  ;;  %v3425_v39 = vld [vmem:[%s4918_s14] ss:$0 sm:$0xff]  ;;  %2142 = vrot.lane.b32.xlu0 %v2027_v60, %s3825_s24  ;;  %3262 = vmatpush.xpose.msk.msra.mxu1 %vm1414_vm0, %v2027_v60  ;;  %s4931_s14 = scalar_lea.vmem %s4930_s19, %s4170_s20 }
 0x65d   : > { %3292 = vmatpush.xpose.msk.msrb.mxu3 %vm1414_vm0, %v2027_v60 }
 0x65e   : > { %v1886_v2 = vmul.f32 %v4457_v0, %v4457_v0 }
 0x660   : > { %1888 = vadd.xlane.f32.xlu2 %v1886_v2 }
 0x664   : > { %2232 = vrot.lane.b32.xlu0 %v2027_v60, %s3824_s0 }
 0x666   : > { %v1874_v8 = vpop.xlane.xlu0 %1873 }
 0x667   : > { %v1883_v9 = vmul.f32 %v4451_v58, %v1874_v8 }
 0x669   : > { %v4466_v10 = vsub.f32 %v1868_v41, %v1883_v9  ;;  %v3426_v41 = vld [vmem:[%s4920_s26] ss:$0 sm:$0xff]  ;;  %s4933_s26 = scalar_lea.vmem %s4932_s23, %s4170_s20 }
 0x66a   : > { %v1275_v9 = vld [vmem:[%s4925_s21] sm:$0x1] }
 0x66b   : > { %v1887_v11 = vmul.f32 %v4466_v10, %v4466_v10 }
 0x66c   : > { %2321 = vrot.lane.b32.xlu0 %v2027_v60, %s3826_s30 }
 0x66d   : > { %1890 = vadd.xlane.f32.xlu1 %v1887_v11  ;;  %v1276_v11 = vsub.f32 1.0, %v1275_v9 }
 0x66f   : > { %v1277_v15 = vmul.f32 -1e+30, %v1276_v11 }
 0x671   : > { %v4548_v20 = vperm.slane %v1277_v15, 0 }
 0x6ce   : > { %v2143_v6 = vpop.permute.xlu0 %2142 }
 0x6cf   : > { %3267 = vmatpush.xpose.msk.msra.mxu3 %vm1414_vm0, %v2143_v6 }
 0x6d3   : > { %v1889_v28 = vpop.xlane.xlu2 %1888 }
 0x6d4   : > { %v1892_v29 = vmul.f32 %v1889_v28, %v4451_v58  ;;  %v1986_v28 = vld [vmem:[%s4149_s17 + $0x78] sm:$0xff] }
 0x6d5   : > { %2037 = vmatpush.msrb.mxu0 %v1986_v28 }
 0x6d6   : > { %v1894_v30 = vadd.f32 1e-05, %v1892_v29  ;;  %v2233_v7 = vpop.permute.xlu0 %2232  ;;  %v1984_v29 = vld [vmem:[%s4149_s17 + $0x68] sm:$0xff] }
 0x6d7   : > { %3272 = vmatpush.xpose.msk.msrb.mxu1 %vm1414_vm0, %v2233_v7  ;;  %2038 = vmatpush.msrb.mxu0 %v1984_v29 }
 0x6d8   : > { %3468 = vrsqrt.f32 %v1894_v30  ;;  %vm1902_vm8 = vweird.f32 %v1894_v30 }
 0x6de   : > { %v3469_v31 = vpop.eup %3468  ;;  %v2322_v8 = vpop.permute.xlu0 %2321 }
 0x6df   : > { %v1897_v32 = vmul.f32 %v3469_v31, %v1894_v30  ;;  %vm1903_vm7 = vweird.f32 %v3469_v31  ;;  %v1982_v30 = vld [vmem:[%s4149_s17 + $0x58] sm:$0xff] }
 0x6e0   : > { %v1891_v33 = vpop.xlane.xlu1 %1890  ;;  %vm1904_vm9 = vmor %vm1902_vm8, %vm1903_vm7  ;;  %2039 = vmatpush.msrb.mxu0 %v1982_v30 }
 0x6e1   : > { %v1898_v34 = vmul.f32 %v3469_v31, %v1897_v32  ;;  %v1893_v35 = vmul.f32 %v1891_v33, %v4451_v58  ;;  %v1978_v33 = vld [vmem:[%s4149_s17 + $0x38] sm:$0xff] }
 0x6e3   : > { %v1899_v36 = vmul.f32 0.5, %v1898_v34  ;;  %v1895_v55 = vadd.f32 1e-05, %v1893_v35  ;;  %v1976_v34 = vld [vmem:[%s4149_s17 + $0x28] sm:$0xff]  ;;  %v1974_v35 = vld [vmem:[%s4149_s17 + $0x18] sm:$0xff] }
 0x6e5   : > { %v1900_v37 = vsub.f32 1.5, %v1899_v36  ;;  %3470 = vrsqrt.f32 %v1895_v55  ;;  %vm1912_vm11 = vweird.f32 %v1895_v55 }
 0x6e7   : > { %v1901_v38 = vmul.f32 %v3469_v31, %v1900_v37  ;;  %v1972_v37 = vld [vmem:[%s4149_s17 + $0x8] sm:$0xff] }
 0x6e9   : > { %v1905_v56 = vsel %vm1904_vm9, %v3469_v31, %v1901_v38  ;;  %v1980_v31 = vld [vmem:[%s4149_s17 + $0x48] sm:$0xff]  ;;  %s4927_s17 = sld [smem:[#allocation28_spill]] }
 0x6ea   : > { %v1916_v40 = vmul.f32 %v1905_v56, %v4457_v0  ;;  %2040 = vmatpush.msrb.mxu0 %v1980_v31 }
 0x6eb   : > { %v3471_v42 = vpop.eup %3470 }
 0x6ec   : > { %v1907_v44 = vmul.f32 %v3471_v42, %v1895_v55  ;;  %v1921_v45 = vmul.f32 %v3425_v39, %v1916_v40  ;;  %vm1913_vm10 = vweird.f32 %v3471_v42  ;;  %2041 = vmatpush.msrb.mxu0 %v1978_v33 }
 0x6ed   : > { %vm1914_vm12 = vmor %vm1912_vm11, %vm1913_vm10 }
 0x6ee   : > { %v1908_v46 = vmul.f32 %v3471_v42, %v1907_v44  ;;  %v4504_v47 = vadd.f32 %v3426_v41, %v1921_v45  ;;  %2042 = vmatpush.msrb.mxu0 %v1976_v34 }
 0x6f0   : > { %v1909_v48 = vmul.f32 0.5, %v1908_v46  ;;  %1964 = vmatmul.f32.vlgmr.msrb.gmra.mxu2 %v4504_v47  ;;  %2043 = vmatpush.msrb.mxu0 %v1974_v35 }
 0x6f2   : > { %v1910_v43 = vsub.f32 1.5, %v1909_v48  ;;  %2044 = vmatpush.msrb.mxu0 %v1972_v37 }
 0x6f3   : > { %2045 = vmatmul.f32.vlgmr.msrb.gmra.mxu0 %v4477_v18 }
 0x6f4   : > { %v1911_v50 = vmul.f32 %v3471_v42, %v1910_v43 }
 0x6f6   : > { %v1915_v51 = vsel %vm1914_vm12, %v3471_v42, %v1911_v50 }
 0x6f7   : > { %v1917_v52 = vmul.f32 %v1915_v51, %v4466_v10 }
 0x6f9   : > { %v1922_v49 = vmul.f32 %v3425_v39, %v1917_v52 }
 0x6fb   : > { %v4508_v53 = vadd.f32 %v3426_v41, %v1922_v49 }
 0x6fd   : > { %1967 = vmatmul.f32.gmra.mxu2 %v4508_v53 }
 0x773   : > { %v1965_v62 = vpop.f32.mrf.mxu2 }
 0x774   : > { %v1966_v63 = vadd.f32 %v3427_v61, %v1965_v62 }
 0x776   : > { %v2049_v0 = vmul.f32 0.17677669, %v1966_v63 }
 0x778   : > { %2317 = vrot.lane.b32.xlu0 %v2049_v0, %s3826_s30  ;;  %2138 = vrot.lane.b32.xlu1 %v2049_v0, %s3825_s24 }
 0x779   : > { %3263 = vmatmul.msk.f32.vlgmr.msra.gmra.mxu1 %vm1414_vm0, %v2049_v0 }
 0x780   : > { %v1968_v1 = vpop.f32.mrf.mxu2  ;;  %2228 = vrot.lane.b32.xlu1 %v2049_v0, %s3824_s0 }
 0x781   : > { %v1969_v2 = vadd.f32 %v3427_v61, %v1968_v1 }
 0x783   : > { %v2050_v3 = vmul.f32 0.17677669, %v1969_v2 }
 0x785   : > { %2140 = vrot.lane.b32.xlu2 %v2050_v3, %s3825_s24  ;;  %3264 = vmatmul.msk.f32.vlgmr.msrb.gmra.mxu3 %vm1414_vm0, %v2050_v3 }
 0x786   : > { %3277 = vmatpush.xpose.msk.msrb.mxu3 %vm1414_vm0, %v2322_v8  ;;  %v2046_v8 = vpop.f32.mrf.mxu0 }
 0x788   : > { %2230 = vrot.lane.b32.xlu1 %v2050_v3, %s3824_s0 }
 0x78d   : > { %2319 = vrot.lane.b32.xlu2 %v2050_v3, %s3826_s30  ;;  %v2006_v3 = vperm.slane %v4512_v54, 1 }
 0x78f   : > { %v2047_v9 = vadd.f32 %v2046_v8, %v2006_v3 }
 0x791   : > { %2130 = vmatpush.msra.mxu2 %v2047_v9 }
 0x7df   : > { %v2141_v17 = vpop.permute.xlu2 %2140 }
 0x7e7   : > { %v2320_v32 = vpop.permute.xlu2 %2319 }
 0x7ea   : > { %v2139_v10 = vpop.permute.xlu1 %2138  ;;  %v2318_v26 = vpop.permute.xlu0 %2317 }
 0x7eb   : > { %3268 = vmatmul.msk.f32.vlgmr.msra.gmra.mxu3 %vm1414_vm0, %v2139_v10 }
 0x7f2   : > { %v2229_v19 = vpop.permute.xlu1 %2228 }
 0x7f3   : > { %3269 = vmatmul.msk.f32.gmra.mxu3 %vm1414_vm0, %v2141_v17  ;;  %3273 = vmatmul.msk.f32.vlgmr.msrb.gmra.mxu1 %vm1414_vm0, %v2229_v19 }
 0x7f6   : > { %v2080_v23 = vpop.f32.mrf.mxu1 }
 0x7f7   : > { %v2081_v24 = vadd.f32 %v2080_v23, %v4548_v20 }
 0x7f9   : > { %v2087_v5 = vsel %vm2086_vm13, %v2081_v24, -inf }
 0x7fa   : > { %2088 = vmax.xlane.f32.xlu0 %v2087_v5  ;;  %v2231_v27 = vpop.permute.xlu1 %2230 }
 0x7fb   : > { %3274 = vmatmul.msk.f32.gmra.mxu1 %vm1414_vm0, %v2231_v27  ;;  %3278 = vmatmul.msk.f32.vlgmr.msrb.gmra.mxu3 %vm1414_vm0, %v2318_v26 }
 0x803   : > { %3279 = vmatmul.msk.f32.gmra.mxu3 %vm1414_vm0, %v2320_v32 }
 0x808   : > { %v2083_v36 = vpop.f32.mrf.mxu3 }
 0x809   : > { %v2084_v55 = vadd.f32 %v2083_v36, %v4548_v20 }
 0x80b   : > { %v2090_v38 = vsel %vm2086_vm13, %v2084_v55, -inf }
 0x80c   : > { %2091 = vmax.xlane.f32.xlu2 %v2090_v38 }
 0x86d   : > { %v2089_v42 = vpop.xlane.xlu0 %2088 }
 0x86e   : > { %v2167_v39 = vpop.f32.mrf.mxu3  ;;  %v2093_v46 = vsub.f32 %v2081_v24, %v2089_v42 }
 0x86f   : > { %v2168_v56 = vadd.f32 %v2167_v39, %v4548_v20 }
 0x870   : > { %v2257_v40 = vpop.f32.mrf.mxu1  ;;  %v2095_v51 = vmul.f32 1.442695, %v2093_v46 }
 0x871   : > { %v2173_v41 = vsel %vm2086_vm13, %v2168_v56, -inf  ;;  %v2258_v44 = vadd.f32 %v2257_v40, %v4548_v20 }
 0x872   : > { %2174 = vmax.xlane.f32.xlu1 %v2173_v41  ;;  %3472 = vpow2.f32 %v2095_v51 }
 0x873   : > { %v2263_v50 = vsel %vm2086_vm13, %v2258_v44, -inf }
 0x876   : > { %v2170_v45 = vpop.f32.mrf.mxu3 }
 0x877   : > { %v2171_v49 = vadd.f32 %v2170_v45, %v4548_v20 }
 0x878   : > { %v2260_v48 = vpop.f32.mrf.mxu1  ;;  %v3473_v0 = vpop.eup %3472 }
 0x879   : > { %v2261_v43 = vadd.f32 %v2260_v48, %v4548_v20  ;;  %v2176_v62 = vsel %vm2086_vm13, %v2171_v49, -inf  ;;  %v2099_v7 = vsel %vm2086_vm13, %v3473_v0, 0.0 }
 0x87a   : > { %2264 = vmax.xlane.f32.xlu1 %v2263_v50 }
 0x87b   : > { %v2266_v18 = vsel %vm2086_vm13, %v2261_v43, -inf }
 0x87c   : > { %2267 = vmax.xlane.f32.xlu0 %v2266_v18 }
 0x87e   : > { %v2346_v52 = vpop.f32.mrf.mxu3 }
 0x87f   : > { %v2347_v57 = vadd.f32 %v2346_v52, %v4548_v20  ;;  %v2092_v59 = vpop.xlane.xlu2 %2091 }
 0x880   : > { %v2094_v60 = vsub.f32 %v2084_v55, %v2092_v59 }
 0x881   : > { %v2352_v61 = vsel %vm2086_vm13, %v2347_v57, -inf }
 0x882   : > { %2353 = vmax.xlane.f32.xlu2 %v2352_v61  ;;  %v2097_v63 = vmul.f32 1.442695, %v2094_v60 }
 0x884   : > { %2177 = vmax.xlane.f32.xlu0 %v2176_v62  ;;  %3474 = vpow2.f32 %v2097_v63 }
 0x886   : > { %v2349_v1 = vpop.f32.mrf.mxu3 }
 0x887   : > { %v2350_v2 = vadd.f32 %v2349_v1, %v4548_v20 }
 0x889   : > { %v2355_v6 = vsel %vm2086_vm13, %v2350_v2, -inf }
 0x88a   : > { %2356 = vmax.xlane.f32.xlu1 %v2355_v6  ;;  %2100 = vadd.xlane.f32.xlu2 %v2099_v7  ;;  %v3475_v10 = vpop.eup %3474 }
 0x88b   : > { %v2102_v11 = vsel %vm2086_vm13, %v3475_v10, 0.0 }
 0x892   : > { %2103 = vadd.xlane.f32.xlu1 %v2102_v11 }
 0x898   : > { %2196 = vrot.lane.b32.xlu0 %v2047_v9, %s3825_s24 }
 0x8e5   : > { %v2175_v12 = vpop.xlane.xlu1 %2174 }
 0x8e6   : > { %v2179_v13 = vsub.f32 %v2168_v56, %v2175_v12 }
 0x8e8   : > { %v2181_v14 = vmul.f32 1.442695, %v2179_v13 }
 0x8ea   : > { %3476 = vpow2.f32 %v2181_v14 }
 0x8ed   : > { %v2265_v54 = vpop.xlane.xlu1 %2264 }
 0x8ee   : > { %v2269_v15 = vsub.f32 %v2258_v44, %v2265_v54 }
 0x8ef   : > { %v2268_v16 = vpop.xlane.xlu0 %2267 }
 0x8f0   : > { %v3477_v17 = vpop.eup %3476  ;;  %v2271_v19 = vmul.f32 1.442695, %v2269_v15  ;;  %v2270_v20 = vsub.f32 %v2261_v43, %v2268_v16  ;;  %v2451_v15 = vld [vmem:[%s4926_s7 + $0x78] sm:$0xff]  ;;  %v2450_v16 = vld [vmem:[%s4926_s7 + $0x70] sm:$0xff] }
 0x8f1   : > { %v2185_v21 = vsel %vm2086_vm13, %v3477_v17, 0.0  ;;  %2456 = vmatpush.msra.mxu1 %v2451_v15  ;;  %v2543_v15 = vld [vmem:[%s4927_s17 + $0x50] sm:$0xff] }
 0x8f2   : > { %3478 = vpow2.f32 %v2271_v19  ;;  %2186 = vadd.xlane.f32.xlu0 %v2185_v21  ;;  %v2273_v22 = vmul.f32 1.442695, %v2270_v20  ;;  %v2448_v19 = vld [vmem:[%s4926_s7 + $0x60] sm:$0xff]  ;;  %v2447_v20 = vld [vmem:[%s4926_s7 + $0x58] sm:$0xff]  ;;  %v2446_v21 = vld [vmem:[%s4926_s7 + $0x50] sm:$0xff] }
 0x8f3   : > { %2457 = vmatpush.msra.mxu1 %v2450_v16  ;;  %v2544_v16 = vld [vmem:[%s4927_s17 + $0x58] sm:$0xff] }
 0x8f4   : > { %3480 = vpow2.f32 %v2273_v22  ;;  %v2445_v22 = vld [vmem:[%s4926_s7 + $0x48] sm:$0xff] }
 0x8f5   : > { %v2354_v23 = vpop.xlane.xlu2 %2353 }
 0x8f6   : > { %v2358_v25 = vsub.f32 %v2347_v57, %v2354_v23  ;;  %v2444_v23 = vld [vmem:[%s4926_s7 + $0x40] sm:$0xff] }
 0x8f7   : > { %v2178_v24 = vpop.xlane.xlu0 %2177 }
 0x8f8   : > { %v3479_v4 = vpop.eup %3478  ;;  %v2180_v5 = vsub.f32 %v2171_v49, %v2178_v24  ;;  %v2360_v28 = vmul.f32 1.442695, %v2358_v25  ;;  %v2443_v24 = vld [vmem:[%s4926_s7 + $0x38] sm:$0xff]  ;;  %v2440_v25 = vld [vmem:[%s4926_s7 + $0x20] sm:$0xff] }
 0x8f9   : > { %v2275_v26 = vsel %vm2086_vm13, %v3479_v4, 0.0 }
 0x8fa   : > { %v2183_v27 = vmul.f32 1.442695, %v2180_v5  ;;  %2276 = vadd.xlane.f32.xlu1 %v2275_v26  ;;  %v3481_v31 = vpop.eup %3480  ;;  %v2441_v5 = vld [vmem:[%s4926_s7 + $0x28] sm:$0xff]  ;;  %v2439_v26 = vld [vmem:[%s4926_s7 + $0x18] sm:$0xff] }
 0x8fb   : > { %v2278_v34 = vsel %vm2086_vm13, %v3481_v31, 0.0 }
 0x8fc   : > { %3482 = vpow2.f32 %v2183_v27  ;;  %v2438_v27 = vld [vmem:[%s4926_s7 + $0x10] sm:$0xff] }
 0x8fd   : > { %v2357_v29 = vpop.xlane.xlu1 %2356  ;;  %v2101_v30 = vpop.xlane.xlu2 %2100 }
 0x8fe   : > { %v2359_v32 = vsub.f32 %v2350_v2, %v2357_v29  ;;  %3484 = vrcp.f32 %v2101_v30  ;;  %v2436_v29 = vld [vmem:[%s4926_s7] sm:$0xff] }
 0x8ff   : > { %3486 = vpow2.f32 %v2360_v28  ;;  %v2437_v28 = vld [vmem:[%s4926_s7 + $0x8] sm:$0xff] }
 0x900   : > { %v2362_v33 = vmul.f32 1.442695, %v2359_v32 }
 0x902   : > { %v3483_v35 = vpop.eup %3482  ;;  %3488 = vpow2.f32 %v2362_v33  ;;  %2279 = vadd.xlane.f32.xlu1 %v2278_v34 }
 0x903   : > { %v2188_v36 = vsel %vm2086_vm13, %v3483_v35, 0.0 }
 0x904   : > { %v3485_v55 = vpop.eup %3484  ;;  %2189 = vadd.xlane.f32.xlu2 %v2188_v36 }
 0x905   : > { %v2107_v37 = vmul.f32 %v3485_v55, %v3473_v0  ;;  %v2104_v38 = vpop.xlane.xlu1 %2103  ;;  %v3487_v39 = vpop.eup %3486 }
 0x906   : > { %3490 = vrcp.f32 %v2104_v38  ;;  %2374 = vrot.lane.b32.xlu0 %v2047_v9, %s3826_s30  ;;  %v2364_v42 = vsel %vm2086_vm13, %v3487_v39, 0.0 }
 0x907   : > { %3265 = vmatmul.msk.f32.vlgmr.msra.gmra.mxu2 %vm2086_vm13, %v2107_v37 }
 0x908   : > { %v3489_v56 = vpop.eup %3488 }
 0x909   : > { %v2367_v40 = vsel %vm2086_vm13, %v3489_v56, 0.0 }
 0x90a   : > { %2368 = vadd.xlane.f32.xlu1 %v2367_v40  ;;  %v2197_v41 = vpop.permute.xlu0 %2196 }
 0x90b   : > { %2220 = vmatpush.msra.mxu0 %v2197_v41 }
 0x90c   : > { %v3491_v44 = vpop.eup %3490  ;;  %2365 = vadd.xlane.f32.xlu2 %v2364_v42 }
 0x90d   : > { %v2108_v45 = vmul.f32 %v3491_v44, %v3475_v10 }
 0x90f   : > { %3266 = vmatmul.msk.f32.gmra.mxu2 %vm2086_vm13, %v2108_v45 }
 0x924   : > { %2285 = vrot.lane.b32.xlu2 %v2047_v9, %s3824_s0 }
 0x965   : > { %v2187_v46 = vpop.xlane.xlu0 %2186 }
 0x966   : > { %3492 = vrcp.f32 %v2187_v46 }
 0x96c   : > { %v3493_v48 = vpop.eup %3492 }
 0x96d   : > { %v2193_v43 = vmul.f32 %v3493_v48, %v3477_v17  ;;  %v2277_v50 = vpop.xlane.xlu1 %2276  ;;  %v2449_v17 = vld [vmem:[%s4926_s7 + $0x68] sm:$0xff] }
 0x96e   : > { %2458 = vmatpush.msra.mxu1 %v2449_v17  ;;  %v2541_v17 = vld [vmem:[%s4927_s17 + $0x40] sm:$0xff] }
 0x96f   : > { %3270 = vmatmul.msk.f32.vlgmr.msra.gmra.mxu0 %vm2086_vm13, %v2193_v43  ;;  %v2563_v43 = vld [vmem:[%s4927_s17 + $0xf0] sm:$0xff] }
 0x970   : > { %2459 = vmatpush.msra.mxu1 %v2448_v19  ;;  %v2542_v19 = vld [vmem:[%s4927_s17 + $0x48] sm:$0xff] }
 0x972   : > { %2460 = vmatpush.msra.mxu1 %v2447_v20  ;;  %v2539_v20 = vld [vmem:[%s4927_s17 + $0x30] sm:$0xff] }
 0x974   : > { %2461 = vmatpush.msra.mxu1 %v2446_v21  ;;  %v2540_v21 = vld [vmem:[%s4927_s17 + $0x38] sm:$0xff] }
 0x975   : > { %v2280_v52 = vpop.xlane.xlu1 %2279 }
 0x976   : > { %2462 = vmatpush.msra.mxu1 %v2445_v22  ;;  %v2537_v22 = vld [vmem:[%s4927_s17 + $0x20] sm:$0xff] }
 0x977   : > { %v2190_v18 = vpop.xlane.xlu2 %2189 }
 0x978   : > { %3494 = vrcp.f32 %v2190_v18  ;;  %v2375_v51 = vpop.permute.xlu0 %2374  ;;  %2463 = vmatpush.msra.mxu1 %v2444_v23  ;;  %v2561_v18 = vld [vmem:[%s4927_s17 + $0xe0] sm:$0xff]  ;;  %v2538_v23 = vld [vmem:[%s4927_s17 + $0x28] sm:$0xff] }
 0x979   : > { %2398 = vmatpush.msrb.mxu0 %v2375_v51  ;;  %3496 = vrcp.f32 %v2277_v50  ;;  %v2564_v50 = vld [vmem:[%s4927_s17 + $0xf8] sm:$0xff]  ;;  %v2562_v51 = vld [vmem:[%s4927_s17 + $0xe8] sm:$0xff] }
 0x97a   : > { %2464 = vmatpush.msra.mxu1 %v2443_v24  ;;  %2594 = vmatpush.msra.mxu3 %v2564_v50  ;;  %v2535_v24 = vld [vmem:[%s4927_s17 + $0x10] sm:$0xff] }
 0x97c   : > { %2595 = vmatpush.msra.mxu3 %v2562_v51  ;;  %v3430_v51 = vld [vmem:[%s4933_s26] ss:$0 sm:$0xff] }
 0x97d   : > { %v2369_v60 = vpop.xlane.xlu1 %2368 }
 0x97e   : > { %v3495_v49 = vpop.eup %3494 }
 0x97f   : > { %v2366_v57 = vpop.xlane.xlu2 %2365  ;;  %v2194_v59 = vmul.f32 %v3495_v49, %v3483_v35  ;;  %v3497_v61 = vpop.eup %3496 }
 0x980   : > { %3498 = vrcp.f32 %v2366_v57  ;;  %v2283_v63 = vmul.f32 %v3497_v61, %v3479_v4  ;;  %v2442_v4 = vld [vmem:[%s4926_s7 + $0x30] sm:$0xff] }
 0x981   : > { %3271 = vmatmul.msk.f32.gmra.mxu0 %vm2086_vm13, %v2194_v59  ;;  %3500 = vrcp.f32 %v2280_v52  ;;  %2465 = vmatpush.msra.mxu1 %v2442_v4  ;;  %v2536_v4 = vld [vmem:[%s4927_s17 + $0x18] sm:$0xff] }
 0x982   : > { %3502 = vrcp.f32 %v2369_v60 }
 0x983   : > { %2466 = vmatpush.msra.mxu1 %v2441_v5  ;;  %v2533_v5 = vld [vmem:[%s4927_s17] sm:$0xff] }
 0x985   : > { %2467 = vmatpush.msra.mxu1 %v2440_v25  ;;  %v2534_v25 = vld [vmem:[%s4927_s17 + $0x8] sm:$0xff] }
 0x986   : > { %v3499_v62 = vpop.eup %3498 }
 0x987   : > { %v2372_v0 = vmul.f32 %v3499_v62, %v3487_v39  ;;  %v2286_v1 = vpop.permute.xlu2 %2285  ;;  %v3501_v2 = vpop.eup %3500  ;;  %2468 = vmatpush.msra.mxu1 %v2439_v26  ;;  %v2559_v62 = vld [vmem:[%s4927_s17 + $0xd0] sm:$0xff] }
 0x988   : > { %2309 = vmatpush.msrb.mxu2 %v2286_v1  ;;  %v3503_v3 = vpop.eup %3502  ;;  %v2284_v6 = vmul.f32 %v3501_v2, %v3481_v31  ;;  %v2558_v1 = vld [vmem:[%s4927_s17 + $0xc8] sm:$0xff]  ;;  %v2555_v2 = vld [vmem:[%s4927_s17 + $0xb0] sm:$0xff] }
 0x989   : > { %3275 = vmatmul.msk.f32.vlgmr.msrb.gmra.mxu2 %vm2086_vm13, %v2283_v63  ;;  %3280 = vmatmul.msk.f32.vlgmr.msrb.gmra.mxu0 %vm2086_vm13, %v2372_v0  ;;  %v2373_v7 = vmul.f32 %v3503_v3, %v3489_v56  ;;  %v2560_v63 = vld [vmem:[%s4927_s17 + $0xd8] sm:$0xff]  ;;  %v2557_v0 = vld [vmem:[%s4927_s17 + $0xc0] sm:$0xff] }
 0x98a   : > { %v2132_v9 = vpop.f32.mrf.mxu2  ;;  %2469 = vmatpush.msra.mxu1 %v2438_v27  ;;  %2571 = vmatpush.msra.mxu2 %v2563_v43  ;;  %v2556_v3 = vld [vmem:[%s4927_s17 + $0xb8] sm:$0xff] }
 0x98b   : > { %2596 = vmatpush.msra.mxu3 %v2560_v63 }
 0x98c   : > { %2470 = vmatpush.msra.mxu1 %v2437_v28  ;;  %2572 = vmatpush.msra.mxu2 %v2561_v18 }
 0x98d   : > { %2597 = vmatpush.msra.mxu3 %v2558_v1  ;;  %v2680_v1 = vld [vmem:[%s4246_s29 + $0xd8] sm:$0xff] }
 0x98e   : > { %2471 = vmatpush.msra.mxu1 %v2436_v29  ;;  %2573 = vmatpush.msra.mxu2 %v2559_v62  ;;  %v2668_v29 = vld [vmem:[%s4246_s29 + $0x78] sm:$0xff] }
 0x98f   : > { %2598 = vmatpush.msra.mxu3 %v2556_v3  ;;  %2689 = vmatpush.msra.mxu0 %v2668_v29  ;;  %v2679_v3 = vld [vmem:[%s4246_s29 + $0xd0] sm:$0xff] }
 0x990   : > { %2574 = vmatpush.msra.mxu2 %v2557_v0  ;;  %v2664_v0 = vld [vmem:[%s4246_s29 + $0x58] sm:$0xff] }
 0x991   : > { %3276 = vmatmul.msk.f32.gmra.mxu2 %vm2086_vm13, %v2284_v6  ;;  %3281 = vmatmul.msk.f32.gmra.mxu0 %vm2086_vm13, %v2373_v7  ;;  %v2553_v6 = vld [vmem:[%s4927_s17 + $0xa0] sm:$0xff]  ;;  %v2554_v7 = vld [vmem:[%s4927_s17 + $0xa8] sm:$0xff] }
 0x992   : > { %v2135_v11 = vpop.f32.mrf.mxu2  ;;  %2575 = vmatpush.msra.mxu2 %v2555_v2  ;;  %2599 = vmatpush.msra.mxu3 %v2554_v7  ;;  %v2663_v2 = vld [vmem:[%s4246_s29 + $0x50] sm:$0xff]  ;;  %v2661_v7 = vld [vmem:[%s4246_s29 + $0x40] sm:$0xff] }
 0x994   : > { %2576 = vmatpush.msra.mxu2 %v2553_v6  ;;  %v2678_v6 = vld [vmem:[%s4246_s29 + $0xc8] sm:$0xff] }
 0x9ec   : > { %v2222_v8 = vpop.f32.mrf.mxu0 }
 0x9ed   : > { %2408 = vrot.lane.b32.xlu1 %v2222_v8, %s3826_s30  ;;  %v2551_v8 = vld [vmem:[%s4927_s17 + $0x90] sm:$0xff] }
 0x9ee   : > { %2577 = vmatpush.msra.mxu2 %v2551_v8  ;;  %v2677_v8 = vld [vmem:[%s4246_s29 + $0xc0] sm:$0xff] }
 0x9fe   : > { %v2225_v10 = vpop.f32.mrf.mxu0 }
 0x9ff   : > { %2410 = vrot.lane.b32.xlu2 %v2225_v10, %s3826_s30  ;;  %s4928_s30 = sld [smem:[#allocation45_spill]]  ;;  %v2549_v10 = vld [vmem:[%s4927_s17 + $0x80] sm:$0xff] }
 0xa00   : > { %2578 = vmatpush.msra.mxu2 %v2549_v10  ;;  %v2676_v10 = vld [vmem:[%s4246_s29 + $0xb8] sm:$0xff] }
 0xa05   : > { %s4929_s8 = scalar_lea.vmem %s4928_s30, %s4170_s20 }
 0xa06   : > { %v2400_v12 = vpop.f32.mrf.mxu0  ;;  %v3428_v40 = vld [vmem:[%s4929_s8] ss:$0 sm:$0xff] }
 0xa0c   : > { %v2311_v13 = vpop.f32.mrf.mxu2 }
 0xa0d   : > { %2416 = vrot.lane.b32.xlu0 %v2311_v13, %s3824_s0  ;;  %v2548_v13 = vld [vmem:[%s4927_s17 + $0x78] sm:$0xff] }
 0xa0e   : > { %v2403_v14 = vpop.f32.mrf.mxu0 }
 0xa0f   : > { %2426 = vrot.lane.b32.xlu2 %v2403_v14, %s3825_s24  ;;  %v2545_v14 = vld [vmem:[%s4927_s17 + $0x60] sm:$0xff] }
 0xa14   : > { %v2314_v54 = vpop.f32.mrf.mxu2 }
 0xa15   : > { %2424 = vrot.lane.b32.xlu0 %v2400_v12, %s3825_s24  ;;  %v2547_v12 = vld [vmem:[%s4927_s17 + $0x70] sm:$0xff] }
 0xa16   : > { %2579 = vmatpush.msra.mxu2 %v2547_v12  ;;  %v2675_v12 = vld [vmem:[%s4246_s29 + $0xb0] sm:$0xff] }
 0xa18   : > { %2580 = vmatpush.msra.mxu2 %v2545_v14  ;;  %v2674_v14 = vld [vmem:[%s4246_s29 + $0xa8] sm:$0xff] }
 0xa1a   : > { %2581 = vmatpush.msra.mxu2 %v2543_v15  ;;  %v2673_v15 = vld [vmem:[%s4246_s29 + $0xa0] sm:$0xff] }
 0xa1c   : > { %2582 = vmatpush.msra.mxu2 %v2541_v17  ;;  %v2672_v17 = vld [vmem:[%s4246_s29 + $0x98] sm:$0xff] }
 0xa1d   : > { %2418 = vrot.lane.b32.xlu0 %v2314_v54, %s3824_s0  ;;  %v2546_v54 = vld [vmem:[%s4927_s17 + $0x68] sm:$0xff] }
 0xa1e   : > { %2583 = vmatpush.msra.mxu2 %v2539_v20  ;;  %v2671_v20 = vld [vmem:[%s4246_s29 + $0x90] sm:$0xff] }
 0xa20   : > { %2584 = vmatpush.msra.mxu2 %v2537_v22  ;;  %v2670_v22 = vld [vmem:[%s4246_s29 + $0x88] sm:$0xff] }
 0xa22   : > { %2585 = vmatpush.msra.mxu2 %v2535_v24  ;;  %v2669_v24 = vld [vmem:[%s4246_s29 + $0x80] sm:$0xff] }
 0xa24   : > { %2586 = vmatpush.msra.mxu2 %v2533_v5 }
 0xa59   : > { %v2411_v35 = vpop.permute.xlu2 %2410 }
 0xa5a   : > { %v2431_v55 = vsel %vm1414_vm0, %v2135_v11, %v2411_v35  ;;  %v2550_v11 = vld [vmem:[%s4927_s17 + $0x88] sm:$0xff] }
 0xa5f   : > { %v2409_v31 = vpop.permute.xlu1 %2408 }
 0xa60   : > { %v2430_v32 = vsel %vm1414_vm0, %v2132_v9, %v2409_v31  ;;  %v2552_v9 = vld [vmem:[%s4927_s17 + $0x98] sm:$0xff]  ;;  %v2667_v31 = vld [vmem:[%s4246_s29 + $0x70] sm:$0xff] }
 0xa61   : > { %2600 = vmatpush.msra.mxu3 %v2552_v9  ;;  %2690 = vmatpush.msra.mxu0 %v2667_v31  ;;  %v2660_v9 = vld [vmem:[%s4246_s29 + $0x38] sm:$0xff] }
 0xa63   : > { %2601 = vmatpush.msra.mxu3 %v2550_v11  ;;  %v2659_v11 = vld [vmem:[%s4246_s29 + $0x30] sm:$0xff] }
 0xa65   : > { %2602 = vmatpush.msra.mxu3 %v2548_v13  ;;  %v2658_v13 = vld [vmem:[%s4246_s29 + $0x28] sm:$0xff] }
 0xa67   : > { %2603 = vmatpush.msra.mxu3 %v2546_v54  ;;  %v2657_v54 = vld [vmem:[%s4246_s29 + $0x20] sm:$0xff] }
 0xa69   : > { %v2427_v38 = vpop.permute.xlu2 %2426  ;;  %2604 = vmatpush.msra.mxu3 %v2544_v16  ;;  %v2656_v16 = vld [vmem:[%s4246_s29 + $0x18] sm:$0xff] }
 0xa6b   : > { %2605 = vmatpush.msra.mxu3 %v2542_v19  ;;  %v2655_v19 = vld [vmem:[%s4246_s29 + $0x10] sm:$0xff] }
 0xa6d   : > { %2606 = vmatpush.msra.mxu3 %v2540_v21  ;;  %v2654_v21 = vld [vmem:[%s4246_s29 + $0x8] sm:$0xff] }
 0xa6f   : > { %2607 = vmatpush.msra.mxu3 %v2538_v23  ;;  %v2653_v23 = vld [vmem:[%s4246_s29] sm:$0xff] }
 0xa71   : > { %2608 = vmatpush.msra.mxu3 %v2536_v4  ;;  %v2565_v4 = vld [vmem:[%s4225_s4] sm:$0x3] }
 0xa72   : > { %v2567_v5 = vperm.slane %v2565_v4, 0 }
 0xa73   : > { %2609 = vmatpush.msra.mxu3 %v2534_v25  ;;  %v2568_v25 = vperm.slane %v2565_v4, 1 }
 0xa7f   : > { %v2417_v30 = vpop.permute.xlu0 %2416 }
 0xa80   : > { %v2432_v33 = vsel %vm1818_vm4, %v2430_v32, %v2417_v30  ;;  %v2684_v30 = vld [vmem:[%s4246_s29 + $0xf8] sm:$0xff]  ;;  %v2683_v32 = vld [vmem:[%s4246_s29 + $0xf0] sm:$0xff] }
 0xa81   : > { %2712 = vmatpush.msrb.mxu1 %v2684_v30 }
 0xa83   : > { %2713 = vmatpush.msrb.mxu1 %v2683_v32 }
 0xa87   : > { %v2425_v34 = vpop.permute.xlu0 %2424 }
 0xa88   : > { %v2434_v36 = vsel %vm1821_vm5, %v2432_v33, %v2425_v34  ;;  %v2666_v33 = vld [vmem:[%s4246_s29 + $0x68] sm:$0xff] }
 0xa89   : > { %2472 = vmatmul.f32.vlgmr.msra.gmra.mxu1 %v2434_v36  ;;  %v2682_v34 = vld [vmem:[%s4246_s29 + $0xe8] sm:$0xff]  ;;  %2691 = vmatpush.msra.mxu0 %v2666_v33 }
 0xa8a   : > { %2714 = vmatpush.msrb.mxu1 %v2682_v34 }
 0xa8f   : > { %v2419_v37 = vpop.permute.xlu0 %2418 }
 0xa90   : > { %v2433_v39 = vsel %vm1818_vm4, %v2431_v55, %v2419_v37  ;;  %v2665_v55 = vld [vmem:[%s4246_s29 + $0x60] sm:$0xff] }
 0xa91   : > { %v2435_v56 = vsel %vm1821_vm5, %v2433_v39, %v2427_v38  ;;  %v2681_v37 = vld [vmem:[%s4246_s29 + $0xe0] sm:$0xff]  ;;  %2692 = vmatpush.msra.mxu0 %v2665_v55 }
 0xa92   : > { %2475 = vmatmul.f32.gmra.mxu1 %v2435_v56 }
 0xa93   : > { %2715 = vmatpush.msrb.mxu1 %v2681_v37  ;;  %2693 = vmatpush.msra.mxu0 %v2664_v0 }
 0xa95   : > { %2716 = vmatpush.msrb.mxu1 %v2680_v1  ;;  %2694 = vmatpush.msra.mxu0 %v2663_v2 }
 0xa97   : > { %2717 = vmatpush.msrb.mxu1 %v2679_v3 }
 0xa99   : > { %2718 = vmatpush.msrb.mxu1 %v2678_v6 }
 0xa9b   : > { %2719 = vmatpush.msrb.mxu1 %v2677_v8 }
 0xa9d   : > { %2720 = vmatpush.msrb.mxu1 %v2676_v10 }
 0xa9f   : > { %2721 = vmatpush.msrb.mxu1 %v2675_v12 }
 0xaa1   : > { %2722 = vmatpush.msrb.mxu1 %v2674_v14 }
 0xaa3   : > { %2723 = vmatpush.msrb.mxu1 %v2673_v15 }
 0xaa5   : > { %2724 = vmatpush.msrb.mxu1 %v2672_v17 }
 0xaa7   : > { %2725 = vmatpush.msrb.mxu1 %v2671_v20 }
 0xaa9   : > { %2726 = vmatpush.msrb.mxu1 %v2670_v22 }
 0xaab   : > { %2727 = vmatpush.msrb.mxu1 %v2669_v24 }
 0xb06   : > { %v2473_v41 = vpop.f32.mrf.mxu1 }
 0xb07   : > { %v2474_v42 = vadd.f32 %v3428_v40, %v2473_v41 }
 0xb09   : > { %v2479_v44 = vadd.f32 %v2474_v42, %v4504_v47 }
 0xb0b   : > { %2483 = vadd.xlane.f32.xlu1 %v2479_v44 }
 0xb0f   : > { %v2476_v45 = vpop.f32.mrf.mxu1 }
 0xb10   : > { %v2477_v46 = vadd.f32 %v3428_v40, %v2476_v45 }
 0xb12   : > { %v2480_v48 = vadd.f32 %v2477_v46, %v4508_v53 }
 0xb14   : > { %2485 = vadd.xlane.f32.xlu0 %v2480_v48 }
 0xb7e   : > { %v2484_v52 = vpop.xlane.xlu1 %2483 }
 0xb7f   : > { %v2487_v47 = vmul.f32 %v2484_v52, %v4451_v58 }
 0xb81   : > { %v4642_v49 = vsub.f32 %v2479_v44, %v2487_v47 }
 0xb83   : > { %v2491_v53 = vmul.f32 %v4642_v49, %v4642_v49 }
 0xb85   : > { %2493 = vadd.xlane.f32.xlu2 %v2491_v53 }
 0xb87   : > { %v2486_v57 = vpop.xlane.xlu0 %2485 }
 0xb88   : > { %v2488_v59 = vmul.f32 %v2486_v57, %v4451_v58 }
 0xb8a   : > { %v4647_v60 = vsub.f32 %v2480_v48, %v2488_v59  ;;  %v3429_v48 = vld [vmem:[%s4931_s14] ss:$0 sm:$0xff] }
 0xb8c   : > { %v2492_v61 = vmul.f32 %v4647_v60, %v4647_v60 }
 0xb8e   : > { %2495 = vadd.xlane.f32.xlu1 %v2492_v61 }
 0xbf8   : > { %v2494_v26 = vpop.xlane.xlu2 %2493 }
 0xbf9   : > { %v2497_v27 = vmul.f32 %v2494_v26, %v4451_v58 }
 0xbfb   : > { %v2499_v28 = vadd.f32 1e-05, %v2497_v27 }
 0xbfd   : > { %3504 = vrsqrt.f32 %v2499_v28  ;;  %vm2507_vm15 = vweird.f32 %v2499_v28 }
 0xc01   : > { %v2496_v35 = vpop.xlane.xlu1 %2495 }
 0xc02   : > { %v2498_v36 = vmul.f32 %v2496_v35, %v4451_v58 }
 0xc03   : > { %v3505_v38 = vpop.eup %3504 }
 0xc04   : > { %v2502_v39 = vmul.f32 %v3505_v38, %v2499_v28  ;;  %v2500_v56 = vadd.f32 1e-05, %v2498_v36  ;;  %vm2508_vm14 = vweird.f32 %v3505_v38 }
 0xc05   : > { %vm2509_vm0 = vmor %vm2507_vm15, %vm2508_vm14 }
 0xc06   : > { %v2503_v40 = vmul.f32 %v3505_v38, %v2502_v39  ;;  %3506 = vrsqrt.f32 %v2500_v56  ;;  %vm2517_vm2 = vweird.f32 %v2500_v56 }
 0xc08   : > { %v2504_v41 = vmul.f32 0.5, %v2503_v40 }
 0xc0a   : > { %v2505_v42 = vsub.f32 1.5, %v2504_v41 }
 0xc0c   : > { %v3507_v44 = vpop.eup %3506  ;;  %v2506_v45 = vmul.f32 %v3505_v38, %v2505_v42 }
 0xc0d   : > { %v2512_v46 = vmul.f32 %v3507_v44, %v2500_v56  ;;  %vm2518_vm1 = vweird.f32 %v3507_v44 }
 0xc0e   : > { %v2510_v43 = vsel %vm2509_vm0, %v3505_v38, %v2506_v45  ;;  %vm2519_vm3 = vmor %vm2517_vm2, %vm2518_vm1 }
 0xc0f   : > { %v2521_v50 = vmul.f32 %v2510_v43, %v4642_v49  ;;  %v2513_v18 = vmul.f32 %v3507_v44, %v2512_v46 }
 0xc11   : > { %v2514_v52 = vmul.f32 0.5, %v2513_v18  ;;  %v2526_v47 = vmul.f32 %v3429_v48, %v2521_v50 }
 0xc13   : > { %v2515_v53 = vsub.f32 1.5, %v2514_v52  ;;  %v4700_v57 = vadd.f32 %v3430_v51, %v2526_v47 }
 0xc15   : > { %v2516_v59 = vmul.f32 %v3507_v44, %v2515_v53  ;;  %2587 = vmatmul.f32.vlgmr.msra.gmra.mxu2 %v4700_v57  ;;  %2610 = vmatmul.f32.vlgmr.msra.gmra.mxu3 %v4700_v57 }
 0xc17   : > { %v2520_v49 = vsel %vm2519_vm3, %v3507_v44, %v2516_v59 }
 0xc18   : > { %v2522_v61 = vmul.f32 %v2520_v49, %v4647_v60  ;;  %v2662_v60 = vld [vmem:[%s4246_s29 + $0x48] sm:$0xff] }
 0xc19   : > { %2695 = vmatpush.msra.mxu0 %v2662_v60 }
 0xc1a   : > { %v2527_v62 = vmul.f32 %v3429_v48, %v2522_v61 }
 0xc1b   : > { %2696 = vmatpush.msra.mxu0 %v2661_v7 }
 0xc1c   : > { %v4705_v63 = vadd.f32 %v3430_v51, %v2527_v62 }
 0xc1d   : > { %2697 = vmatpush.msra.mxu0 %v2660_v9 }
 0xc1e   : > { %2590 = vmatmul.f32.gmra.mxu2 %v4705_v63  ;;  %2613 = vmatmul.f32.gmra.mxu3 %v4705_v63 }
 0xc1f   : > { %2698 = vmatpush.msra.mxu0 %v2659_v11  ;;  %v3431_v11 = vld [vmem:[%s1252_s15] ss:$0 sm:$0xff] }
 0xc21   : > { %2699 = vmatpush.msra.mxu0 %v2658_v13 }
 0xc23   : > { %2700 = vmatpush.msra.mxu0 %v2657_v54 }
 0xc25   : > { %2701 = vmatpush.msra.mxu0 %v2656_v16 }
 0xc27   : > { %2702 = vmatpush.msra.mxu0 %v2655_v19 }
 0xc29   : > { %2703 = vmatpush.msra.mxu0 %v2654_v21 }
 0xc2b   : > { %2704 = vmatpush.msra.mxu0 %v2653_v23 }
 0xc98   : > { %v2588_v26 = vpop.f32.mrf.mxu2  ;;  %v2611_v27 = vpop.f32.mrf.mxu3 }
 0xc99   : > { %v2589_v28 = vadd.f32 %v2588_v26, %v2567_v5  ;;  %v2612_v29 = vadd.f32 %v2611_v27, %v2568_v25 }
 0xc9b   : > { %v2621_v30 = vmul.f32 0.044715, %v2589_v28  ;;  %v2622_v31 = vmul.f32 0.044715, %v2612_v29  ;;  %v2617_v47 = vmul.f32 0.5, %v2589_v28  ;;  %v2618_v61 = vmul.f32 0.5, %v2612_v29 }
 0xc9d   : > { %v2625_v32 = vmul.f32 %v2621_v30, %v2589_v28  ;;  %v2626_v33 = vmul.f32 %v2622_v31, %v2612_v29 }
 0xc9f   : > { %v2629_v34 = vmul.f32 %v2625_v32, %v2589_v28  ;;  %v2630_v35 = vmul.f32 %v2626_v33, %v2612_v29 }
 0xca1   : > { %v2591_v36 = vpop.f32.mrf.mxu2  ;;  %v2614_v55 = vpop.f32.mrf.mxu3  ;;  %v2633_v37 = vadd.f32 %v2629_v34, %v2589_v28  ;;  %v2634_v38 = vadd.f32 %v2630_v35, %v2612_v29 }
 0xca2   : > { %v2592_v39 = vadd.f32 %v2591_v36, %v2567_v5  ;;  %v2615_v56 = vadd.f32 %v2614_v55, %v2568_v25 }
 0xca3   : > { %v2637_v40 = vmul.f32 0.7978846, %v2633_v37  ;;  %v2638_v41 = vmul.f32 0.7978846, %v2634_v38  ;;  %v3432_v38 = vld [vmem:[%s1255_s11] ss:$0 sm:$0xff] }
 0xca4   : > { %v2623_v42 = vmul.f32 0.044715, %v2592_v39  ;;  %v2624_v44 = vmul.f32 0.044715, %v2615_v56  ;;  %v2619_v60 = vmul.f32 0.5, %v2592_v39  ;;  %v2620_v7 = vmul.f32 0.5, %v2615_v56 }
 0xca5   : > { %3508 = vtanh.f32 %v2637_v40  ;;  %s4937_s11 = sld [smem:[#allocation20_spill]] }
 0xca6   : > { %3510 = vtanh.f32 %v2638_v41  ;;  %v2627_v45 = vmul.f32 %v2623_v42, %v2592_v39  ;;  %v2628_v46 = vmul.f32 %v2624_v44, %v2615_v56 }
 0xca8   : > { %v2631_v48 = vmul.f32 %v2627_v45, %v2592_v39  ;;  %v2632_v43 = vmul.f32 %v2628_v46, %v2615_v56 }
 0xcaa   : > { %v2635_v50 = vadd.f32 %v2631_v48, %v2592_v39  ;;  %v2636_v18 = vadd.f32 %v2632_v43, %v2615_v56  ;;  %v3433_v56 = vld [vmem:[%s1258_s22] ss:$0 sm:$0xff] }
 0xcab   : > { %v3509_v51 = vpop.eup %3508  ;;  %p3282_p3 = scmp.ne.s32.totalorder %s4937_s11, 1 }
 0xcac   : > { %v3511_v52 = vpop.eup %3510  ;;  %v2645_v53 = vadd.f32 1.0, %v3509_v51  ;;  %v2639_v59 = vmul.f32 0.7978846, %v2635_v50  ;;  %v2640_v49 = vmul.f32 0.7978846, %v2636_v18  ;;  %s4938_s12 = sld [smem:[#allocation54_spill]] (!%p3282_p3) }
 0xcad   : > { %v2646_v62 = vadd.f32 1.0, %v3511_v52  ;;  %s4939_s0 = sld [smem:[#allocation55_spill]] (!%p3282_p3) }
 0xcae   : > { %v2649_v0 = vmul.f32 %v2645_v53, %v2617_v47  ;;  %3512 = vtanh.f32 %v2639_v59 }
 0xcaf   : > { %v2650_v1 = vmul.f32 %v2646_v62, %v2618_v61  ;;  %3514 = vtanh.f32 %v2640_v49 }
 0xcb0   : > { %2705 = vmatmul.f32.vlgmr.msra.gmra.mxu0 %v2649_v0 }
 0xcb1   : > { %2728 = vmatmul.f32.vlgmr.msrb.gmra.mxu1 %v2650_v1 }
 0xcb4   : > { %v3513_v2 = vpop.eup %3512 }
 0xcb5   : > { %v3515_v3 = vpop.eup %3514  ;;  %v2647_v6 = vadd.f32 1.0, %v3513_v2 }
 0xcb6   : > { %v2648_v8 = vadd.f32 1.0, %v3515_v3 }
 0xcb7   : > { %v2651_v9 = vmul.f32 %v2647_v6, %v2619_v60 }
 0xcb8   : > { %v2652_v10 = vmul.f32 %v2648_v8, %v2620_v7 }
 0xcb9   : > { %2708 = vmatmul.f32.gmra.mxu0 %v2651_v9 }
 0xcba   : > { %2731 = vmatmul.f32.gmra.mxu1 %v2652_v10 }
 0xd2d   : > { %v2706_v12 = vpop.f32.mrf.mxu0 }
 0xd2e   : > { %v2707_v13 = vadd.f32 %v3431_v11, %v2706_v12  ;;  %v2729_v14 = vpop.f32.mrf.mxu1 }
 0xd30   : > { %v2730_v54 = vadd.f32 %v2729_v14, %v2707_v13 }
 0xd32   : > { %v2735_v15 = vadd.f32 %v2730_v54, %v4700_v57 }
 0xd34   : > { %2739 = vadd.xlane.f32.xlu2 %v2735_v15 }
 0xd36   : > { %v2709_v16 = vpop.f32.mrf.mxu0 }
 0xd37   : > { %v2710_v17 = vadd.f32 %v3431_v11, %v2709_v16  ;;  %v2732_v19 = vpop.f32.mrf.mxu1 }
 0xd39   : > { %v2733_v20 = vadd.f32 %v2732_v19, %v2710_v17 }
 0xd3b   : > { %v2736_v21 = vadd.f32 %v2733_v20, %v4705_v63 }
 0xd3d   : > { %2741 = vadd.xlane.f32.xlu0 %v2736_v21 }
 0xda7   : > { %v2740_v22 = vpop.xlane.xlu2 %2739 }
 0xda8   : > { %v2743_v23 = vmul.f32 %v2740_v22, %v4451_v58 }
 0xdaa   : > { %v2745_v24 = vsub.f32 %v2735_v15, %v2743_v23 }
 0xdac   : > { %v2747_v4 = vmul.f32 %v2745_v24, %v2745_v24 }
 0xdae   : > { %2749 = vadd.xlane.f32.xlu1 %v2747_v4 }
 0xdb0   : > { %v2742_v5 = vpop.xlane.xlu0 %2741 }
 0xdb1   : > { %v2744_v25 = vmul.f32 %v2742_v5, %v4451_v58 }
 0xdb3   : > { %v2746_v26 = vsub.f32 %v2736_v21, %v2744_v25 }
 0xdb5   : > { %v2748_v27 = vmul.f32 %v2746_v26, %v2746_v26 }
 0xdb7   : > { %2751 = vadd.xlane.f32.xlu2 %v2748_v27 }
 0xe21   : > { %v2750_v57 = vpop.xlane.xlu1 %2749 }
 0xe22   : > { %v2753_v28 = vmul.f32 %v2750_v57, %v4451_v58 }
 0xe24   : > { %v2755_v29 = vadd.f32 1e-05, %v2753_v28 }
 0xe26   : > { %3516 = vrsqrt.f32 %v2755_v29  ;;  %vm2763_vm5 = vweird.f32 %v2755_v29 }
 0xe2a   : > { %v2752_v63 = vpop.xlane.xlu2 %2751 }
 0xe2b   : > { %v2754_v30 = vmul.f32 %v2752_v63, %v4451_v58 }
 0xe2c   : > { %v3517_v31 = vpop.eup %3516 }
 0xe2d   : > { %v2758_v32 = vmul.f32 %v3517_v31, %v2755_v29  ;;  %v2756_v33 = vadd.f32 1e-05, %v2754_v30  ;;  %vm2764_vm4 = vweird.f32 %v3517_v31 }
 0xe2e   : > { %vm2765_vm6 = vmor %vm2763_vm5, %vm2764_vm4 }
 0xe2f   : > { %v2759_v34 = vmul.f32 %v3517_v31, %v2758_v32  ;;  %3518 = vrsqrt.f32 %v2756_v33  ;;  %vm2773_vm8 = vweird.f32 %v2756_v33 }
 0xe31   : > { %v2760_v35 = vmul.f32 0.5, %v2759_v34 }
 0xe33   : > { %v2761_v36 = vsub.f32 1.5, %v2760_v35 }
 0xe35   : > { %v3519_v55 = vpop.eup %3518  ;;  %v2762_v37 = vmul.f32 %v3517_v31, %v2761_v36 }
 0xe36   : > { %v2768_v39 = vmul.f32 %v3519_v55, %v2756_v33  ;;  %vm2774_vm7 = vweird.f32 %v3519_v55 }
 0xe37   : > { %v2766_v58 = vsel %vm2765_vm6, %v3517_v31, %v2762_v37  ;;  %vm2775_vm9 = vmor %vm2773_vm8, %vm2774_vm7 }
 0xe38   : > { %v2777_v40 = vmul.f32 %v2766_v58, %v2745_v24  ;;  %v2769_v41 = vmul.f32 %v3519_v55, %v2768_v39 }
 0xe3a   : > { %v2782_v42 = vmul.f32 %v3432_v38, %v2777_v40  ;;  %v2770_v44 = vmul.f32 0.5, %v2769_v41 }
 0xe3c   : > { %v2787_v45 = vadd.f32 %v3433_v56, %v2782_v42  ;;  %v2771_v46 = vsub.f32 1.5, %v2770_v44 }
 0xe3e   : > { %2789 = vst [vmem:[#allocation2] sm:$0xff] %v2787_v45  ;;  %v2772_v48 = vmul.f32 %v3519_v55, %v2771_v46 }
 0xe40   : > { %v2776_v43 = vsel %vm2775_vm9, %v3519_v55, %v2772_v48 }
 0xe41   : > { %v2778_v50 = vmul.f32 %v2776_v43, %v2746_v26 }
 0xe43   : > { %v2783_v18 = vmul.f32 %v3432_v38, %v2778_v50  ;;  %2794 = sbr.rel (%p3282_p3) target bundleno = 3816 (0xee8), region = 156 }
 0xe45   : > { %v2788_v51 = vadd.f32 %v3433_v56, %v2783_v18 }
 0xe47   : > { %2790 = vst [vmem:[#allocation2 + $0x8] sm:$0xff] %v2788_v51 }
 0xe48   : > { %v2795_v52 = vld [vmem:[%s4938_s12] sm:$0xff]  ;;  %v2796_v53 = vld [vmem:[%s4938_s12 + $0x8] sm:$0xff]  ;;  %vm2845_vm12 = vcmask 7168  }
 0xe49   : > { %v2797_v47 = vmul.f32 %v2795_v52, %v2787_v45  ;;  %v2798_v59 = vmul.f32 %v2796_v53, %v2788_v51  ;;  %v2803_v49 = vld [vmem:[%s4939_s0] sm:$0xff]  ;;  %v2804_v2 = vld [vmem:[%s4939_s0 + $0x8] sm:$0xff] }
 0xe4b   : > { %2799 = vadd.xlane.f32.xlu0 %v2797_v47 }
 0xe53   : > { %2801 = vadd.xlane.f32.xlu0 %v2798_v59 }
 0xebe   : > { %v2800_v61 = vpop.xlane.xlu0 %2799 }
 0xebf   : > { %v2805_v62 = vadd.f32 %v2803_v49, %v2800_v61 }
 0xec1   : > { %v2807_v0 = vsub.f32 0.0, %v2805_v62 }
 0xec3   : > { %v2809_v1 = vmul.f32 1.442695, %v2807_v0 }
 0xec5   : > { %3520 = vpow2.f32 %v2809_v1 }
 0xec6   : > { %v2802_v3 = vpop.xlane.xlu0 %2801 }
 0xec7   : > { %v2806_v60 = vadd.f32 %v2804_v2, %v2802_v3 }
 0xec9   : > { %v2808_v6 = vsub.f32 0.0, %v2806_v60 }
 0xecb   : > { %v3521_v7 = vpop.eup %3520  ;;  %v2811_v8 = vmul.f32 1.442695, %v2808_v6 }
 0xecc   : > { %v2813_v9 = vadd.f32 1.0, %v3521_v7 }
 0xecd   : > { %3522 = vpow2.f32 %v2811_v8 }
 0xece   : > { %3524 = vrcp.f32 %v2813_v9  ;;  %v2826_v54 = vand.u32 2147483648, %v2813_v9  ;;  %v2824_v16 = vand.u32 2147483647, %v2813_v9  ;;  %vm2820_vm11 = vweird.f32 %v2813_v9 }
 0xed0   : > { %v2827_v20 = vor.u32 1.1754944e-38, %v2826_v54  ;;  %vm2825_vm14 = vcmp.eq.f32.partialorder %v2824_v16, 8.507059e+37 }
 0xed3   : > { %v3523_v10 = vpop.eup %3522 }
 0xed4   : > { %v3525_v11 = vpop.eup %3524  ;;  %v2814_v12 = vadd.f32 1.0, %v3523_v10 }
 0xed5   : > { %v2816_v13 = vmul.f32 %v3525_v11, %v2813_v9  ;;  %vm2821_vm10 = vweird.f32 %v3525_v11 }
 0xed6   : > { %3526 = vrcp.f32 %v2814_v12  ;;  %vm2822_vm13 = vmor %vm2820_vm11, %vm2821_vm10  ;;  %v2841_v4 = vand.u32 2147483648, %v2814_v12  ;;  %v2839_v25 = vand.u32 2147483647, %v2814_v12  ;;  %vm2835_vm0 = vweird.f32 %v2814_v12 }
 0xed7   : > { %v2817_v14 = vsub.f32 1.0, %v2816_v13 }
 0xed8   : > { %v2842_v27 = vor.u32 1.1754944e-38, %v2841_v4  ;;  %vm2840_vm2 = vcmp.eq.f32.partialorder %v2839_v25, 8.507059e+37 }
 0xed9   : > { %v2818_v15 = vmul.f32 %v3525_v11, %v2817_v14 }
 0xedb   : > { %v2819_v17 = vadd.f32 %v3525_v11, %v2818_v15 }
 0xedc   : > { %v3527_v19 = vpop.eup %3526 }
 0xedd   : > { %v2823_v21 = vsel %vm2822_vm13, %v3525_v11, %v2819_v17  ;;  %v2831_v22 = vmul.f32 %v3527_v19, %v2814_v12  ;;  %vm2836_vm15 = vweird.f32 %v3527_v19 }
 0xede   : > { %v2828_v23 = vsel %vm2825_vm14, %v2827_v20, %v2823_v21  ;;  %vm2837_vm1 = vmor %vm2835_vm0, %vm2836_vm15 }
 0xedf   : > { %2846 = vst.msk [vmem:[%s4243_s28] sm:$0xff] %vm2845_vm12, %v2828_v23  ;;  %v2832_v24 = vsub.f32 1.0, %v2831_v22 }
 0xee1   : > { %v2833_v5 = vmul.f32 %v3527_v19, %v2832_v24 }
 0xee3   : > { %v2834_v26 = vadd.f32 %v3527_v19, %v2833_v5 }
 0xee5   : > { %v2838_v57 = vsel %vm2837_vm1, %v3527_v19, %v2834_v26 }
 0xee6   : > { %v2843_v28 = vsel %vm2840_vm2, %v2842_v27, %v2838_v57 }
 0xee7   : > { %2847 = vst.msk [vmem:[%s4243_s28 + $0x8] sm:$0xff] %vm2845_vm12, %v2843_v28 }
 0xee8 PF: > { %s4940_s8 = sld [smem:[#allocation23_spill]] }
 0xee9   : > { %s4941_s29 = sld [smem:[#allocation18_spill]] }
 0xeea   : > { %s4942_s2 = sld [smem:[#allocation19_spill]] }
 0xeeb   : > { %s4943_s6 = sld [smem:[#allocation26_spill]] }
 0xeec   : > { %s4944_s30 = sld [smem:[#allocation21_spill]] }
 0xeed   : > { %s4945_s7 = sld [smem:[#allocation22_spill]] }
 0xeee   : > { %s47_s1 = sadd.s32 1, %s4940_s8   ;;  %s4946_s3 = sld [smem:[#allocation24_spill]] }
 0xeef   : > { %p44_p4 = scmp.ge.s32.totalorder %s47_s1, 6   ;;  %s4947_s26 = sld [smem:[#allocation25_spill]] }
 0xef1   :  { %46 = sbr.rel (!%p44_p4) target bundleno = 38 (0x26), region = 285 }
 0xef6   :  { %2869 = vsyncpa [#allocation4], 1 }
 0xef7   :  { %2871 = vsyncpa [#allocation4 + $0x1], 1 }
 0xef8   :  { %2872 = vsyncpa [#allocation6], 1 }
 0xef9   :  { %2874 = vsyncpa [#allocation6 + $0x1], 1 }
 0xefa   :  { %2875 = vsyncpa [#allocation9], 1 }
 0xefb   :  { %2877 = vsyncpa [#allocation9 + $0x1], 1 }
 0xefc   :  { %2878 = vsyncpa [#allocation12], 1 }
 0xefd   :  { %2880 = vsyncpa [#allocation12 + $0x1], 1 }

</bundles_post_ra>
